<compile_context>
chip_gen: v7x
topology: tpu7x:2x2x1
jax: 0.10.0
libtpu: 0.0.40
codegen_flags: <defaults>
</compile_context>

<pallas_src>
import jax
import jax.numpy as jnp
from jax.experimental import pallas as pl
from jax.experimental.pallas import tpu as pltpu

_EPS = 1e-5
_PAD = 128   # lane padding on each side of the flattened spatial axis


# ----------------------------- Pallas kernel ------------------------------- #

def _make_kernel(N, C, H, W):
    HW = H * W
    NC = N * C
    inv_count = 1.0 / float(N * HW)
    assert _PAD >= W + 1, "_PAD must absorb the h-direction stencil overflow"
    assert _PAD % 128 == 0, "keep the interior store lane-aligned"

    def kernel(x_ref, w1_ref, w2_ref, b2_ref, gamma_ref, beta_ref,
               out_ref, pad_ref, stage_ref):
        # w-direction boundary masks, shared by both convs and applied once per
        # dw-group.  h-direction overflow reads the zero pad and needs no mask.
        lane = jax.lax.broadcasted_iota(jnp.int32, (NC, HW), 1)
        w_pos = lane % W
        mask_wneg = w_pos >= 1          # valid sources when the kw shift is -1
        mask_wpos = w_pos <= W - 2      # valid sources when the kw shift is +1

        # Zero the padded scratch once; only the interiors are rewritten below,
        # so the pad lanes stay zero for both convs.
        pad_ref[...] = jnp.zeros((C, NC, HW + 2 * _PAD), jnp.float32)

        def conv3x3(w_ref):
            """3x3 'same' conv over the replicated planes held in pad_ref.

            pad_ref[ci] holds input channel ci replicated across the C output-
            channel sublane groups, so each (tap, ci) term is one full-width
            FMA:  acc[n*C + co] += w[co, ci, kh, kw] * plane_ci[n].  The three
            kh taps of each dw sign share an accumulator so the w-boundary mask
            is applied only once per dw group.
            """
            zero = jnp.zeros((NC, HW), jnp.float32)
            acc = {-1: zero, 0: zero, 1: zero}
            for ci in range(C):
                for kh in range(3):
                    for kw in range(3):
                        dh, dw = kh - 1, kw - 1
                        d = dh * W + dw
                        sh = pad_ref[ci, :, pl.ds(_PAD + d, HW)]          # (NC, HW)
                        col = w_ref[:, pl.ds(ci * 9 + kh * 3 + kw, 1)]    # (NC, 1)
                        acc[dw] = acc[dw] + col * sh
            return (acc[0]
                    + jnp.where(mask_wneg, acc[-1], 0.0)
                    + jnp.where(mask_wpos, acc[1], 0.0))

        # ---- conv1 input fill: replicate each (n, ci) row across the co group.
        for c in range(C):
            for n in range(N):
                row = x_ref[pl.ds(n * C + c, 1), :]                       # (1, HW)
                pad_ref[c, pl.ds(n * C, C), pl.ds(_PAD, HW)] = (
                    jnp.broadcast_to(row, (C, HW)))

        # ---- conv1 (bias omitted: cancels in train-mode BN's (x - mean)) ---- #
        stage_ref[...] = conv3x3(w1_ref)              # raw conv1 out, rows (n, co)

        # ---- BatchNorm batch stats (two-pass, centered variance) ------------ #
        rows_c, scale_c, shift_c = [], [], []
        for c in range(C):
            rows = [stage_ref[pl.ds(n * C + c, 1), :] for n in range(N)]  # (1, HW)
            tot = rows[0]
            for r in rows[1:]:
                tot = tot + r
            mean = jnp.sum(tot, keepdims=True) * inv_count                # (1, 1)
            d0 = rows[0] - mean
            sq = d0 * d0
            for r in rows[1:]:
                dr = r - mean
                sq = sq + dr * dr
            var = jnp.sum(sq, keepdims=True) * inv_count                  # biased
            scale = gamma_ref[c] * jax.lax.rsqrt(var + _EPS)              # (1, 1)
            shift = beta_ref[c] - mean * scale                            # (1, 1)
            rows_c.append(rows)
            scale_c.append(scale)
            shift_c.append(shift)

        # ---- BN apply + ReLU fused into the conv2 input fill ---------------- #
        for c in range(C):
            for n in range(N):
                h = jnp.maximum(rows_c[c][n] * scale_c[c] + shift_c[c], 0.0)
                pad_ref[c, pl.ds(n * C, C), pl.ds(_PAD, HW)] = (
                    jnp.broadcast_to(h, (C, HW)))

        # ---- conv2 + bias + residual + ReLU (one unmasked (8,256) store) ----- #
        acc2 = conv3x3(w2_ref)
        out_ref[...] = jnp.maximum(acc2 + b2_ref[...] + x_ref[...], 0.0)

    return kernel


# ------------------------------ JAX wrapper -------------------------------- #

def residual_block(x_nchw, w1_oihw, b1, gamma, beta, w2_oihw, b2):
    """Forward pass of ResidualBlock (train-mode BatchNorm).  x: (N, C, H, W)."""
    del b1  # per-channel constant before train-mode BN cancels exactly
    N, C, H, W = x_nchw.shape
    HW = H * W
    NC = N * C

    # Free contiguous reshape -- no transposes on either side of the kernel.
    x_rows = x_nchw.astype(jnp.float32).reshape(NC, HW)

    # Weight columns matching the packed sublane order:
    #   row r = n*C + co, column k = ci*9 + kh*3 + kw  ->  w[co, ci, kh, kw].
    w1_cols = jnp.tile(w1_oihw.astype(jnp.float32).reshape(C, C * 9), (N, 1))
    w2_cols = jnp.tile(w2_oihw.astype(jnp.float32).reshape(C, C * 9), (N, 1))
    b2_col = jnp.tile(b2.astype(jnp.float32).reshape(C, 1), (N, 1))        # (NC, 1)

    vmem = pl.BlockSpec(memory_space=pltpu.MemorySpace.VMEM)
    smem = pl.BlockSpec(memory_space=pltpu.MemorySpace.SMEM)

    out_rows = pl.pallas_call(
        _make_kernel(N, C, H, W),
        out_shape=jax.ShapeDtypeStruct((NC, HW), jnp.float32),
        in_specs=[vmem, vmem, vmem, vmem, smem, smem],
        out_specs=vmem,
        scratch_shapes=[
            pltpu.VMEM((C, NC, HW + 2 * _PAD), jnp.float32),  # replicated padded planes
            pltpu.VMEM((NC, HW), jnp.float32),                # raw conv1 output (pre-BN)
        ],
    )(x_rows, w1_cols, w2_cols, b2_col,
      gamma.astype(jnp.float32), beta.astype(jnp.float32))

    return out_rows.reshape(N, C, H, W)


# --------------------------- pure-JAX reference ----------------------------- #

def _ref_forward(x, w1_oihw, b1, gamma, beta, w2_oihw, b2):
    dn = ('NCHW', 'OIHW', 'NCHW')
    h = jax.lax.conv_general_dilated(x, w1_oihw, (1, 1), 'SAME',
                                     dimension_numbers=dn,
                                     precision=jax.lax.Precision.HIGHEST)
    h = h + b1[None, :, None, None]
    mean = jnp.mean(h, axis=(0, 2, 3), keepdims=True)
    var = jnp.mean((h - mean) ** 2, axis=(0, 2, 3), keepdims=True)
    h = (h - mean) / jnp.sqrt(var + _EPS)
    h = h * gamma[None, :, None, None] + beta[None, :, None, None]
    h = jnp.maximum(h, 0.0)
    o = jax.lax.conv_general_dilated(h, w2_oihw, (1, 1), 'SAME',
                                     dimension_numbers=dn,
                                     precision=jax.lax.Precision.HIGHEST)
    o = o + b2[None, :, None, None] + x
    return jnp.maximum(o, 0.0)


# ---------------------------------- main ------------------------------------ #

if __name__ == "__main__":
    key = jax.random.PRNGKey(0)
    ks = jax.random.split(key, 7)

    N, C, H, W = 2, 4, 16, 16                     # channel = 4

    x = jax.random.normal(ks[0], (N, C, H, W), jnp.float32)
    w1 = 0.1 * jax.random.normal(ks[1], (C, C, 3, 3), jnp.float32)   # conv1 weight (OIHW)
    b1 = 0.1 * jax.random.normal(ks[2], (C,), jnp.float32)           # conv1 bias
    gamma = 1.0 + 0.1 * jax.random.normal(ks[3], (C,), jnp.float32)  # BN weight
    beta = 0.1 * jax.random.normal(ks[4], (C,), jnp.float32)         # BN bias
    w2 = 0.1 * jax.random.normal(ks[5], (C, C, 3, 3), jnp.float32)   # conv2 weight (OIHW)
    b2 = 0.1 * jax.random.normal(ks[6], (C,), jnp.float32)           # conv2 bias

    out = jax.jit(residual_block)(x, w1, b1, gamma, beta, w2, b2)
    out = jax.block_until_ready(out)

    ref = _ref_forward(x, w1, b1, gamma, beta, w2, b2)
    assert out.shape == (N, C, H, W)
    assert bool(jnp.allclose(out, ref, atol=1e-3, rtol=1e-3)), "mismatch vs reference"

    print("KERNEL_OK")
</pallas_src>

<mosaic_0001>
module attributes {stable_mosaic.version = 11 : i64} {
  func.func @kernel(%arg0: memref<8x256xf32, #tpu.memory_space<vmem>>, %arg1: memref<8x36xf32, #tpu.memory_space<vmem>>, %arg2: memref<8x36xf32, #tpu.memory_space<vmem>>, %arg3: memref<8x1xf32, #tpu.memory_space<vmem>>, %arg4: memref<4xf32, #tpu.memory_space<smem>>, %arg5: memref<4xf32, #tpu.memory_space<smem>>, %arg6: memref<8x256xf32, #tpu.memory_space<vmem>>, %arg7: memref<4x8x512xf32, #tpu.memory_space<vmem>>, %arg8: memref<8x256xf32, #tpu.memory_space<vmem>>) attributes {dimension_semantics = [], scalar_prefetch = 0 : i64, scratch_operands = 2 : i64, tpu.core_type = #tpu.core_type<tc>} {
    %0 = tpu.iota {dimensions = array<i32: 1>} : vector<8x256xi32>
    %c16_i32 = arith.constant 16 : i32
    %c0_i32 = arith.constant 0 : i32
    %1 = arith.cmpi eq, %c16_i32, %c0_i32 : i32
    %c1_i32 = arith.constant 1 : i32
    %2 = arith.select %1, %c1_i32, %c16_i32 : i32
    %3 = vector.broadcast %2 : i32 to vector<8x256xi32>
    %4 = arith.remsi %0, %3 : vector<8x256xi32>
    %c0_i32_0 = arith.constant 0 : i32
    %5 = vector.broadcast %c0_i32_0 : i32 to vector<8x256xi32>
    %6 = arith.cmpi ne, %4, %5 : vector<8x256xi32>
    %c0_i32_1 = arith.constant 0 : i32
    %7 = vector.broadcast %c0_i32_1 : i32 to vector<8x256xi32>
    %8 = arith.cmpi slt, %4, %7 : vector<8x256xi32>
    %c0_i32_2 = arith.constant 0 : i32
    %9 = arith.cmpi slt, %2, %c0_i32_2 : i32
    %10 = vector.broadcast %9 : i1 to vector<8x256xi1>
    %11 = vector.broadcast %10 : vector<8x256xi1> to vector<8x256xi1>
    %12 = arith.xori %8, %11 : vector<8x256xi1>
    %13 = arith.andi %12, %6 : vector<8x256xi1>
    %14 = vector.broadcast %2 : i32 to vector<8x256xi32>
    %15 = arith.addi %4, %14 : vector<8x256xi32>
    %16 = arith.select %13, %15, %4 : vector<8x256xi1>, vector<8x256xi32>
    %c1_i32_3 = arith.constant 1 : i32
    %17 = vector.broadcast %c1_i32_3 : i32 to vector<8x256xi32>
    %18 = arith.cmpi sge, %16, %17 : vector<8x256xi32>
    %c14_i32 = arith.constant 14 : i32
    %19 = vector.broadcast %c14_i32 : i32 to vector<8x256xi32>
    %20 = arith.cmpi sle, %16, %19 : vector<8x256xi32>
    %cst = arith.constant 0.000000e+00 : f32
    %21 = vector.broadcast %cst : f32 to vector<4x8x512xf32>
    %c0 = arith.constant 0 : index
    %c0_4 = arith.constant 0 : index
    %c0_5 = arith.constant 0 : index
    %22 = vector.load %arg7[%c0, %c0_4, %c0_5] : memref<4x8x512xf32, #tpu.memory_space<vmem>>, vector<4x8x512xf32>
    tpu.vector_store %arg7[%c0, %c0_4, %c0_5], %21 {strides = array<i32>} : memref<4x8x512xf32, #tpu.memory_space<vmem>>, vector<4x8x512xf32>,
    %c0_6 = arith.constant 0 : index
    %c0_7 = arith.constant 0 : index
    %23 = vector.load %arg0[%c0_6, %c0_7] : memref<8x256xf32, #tpu.memory_space<vmem>>, vector<1x256xf32>
    %24 = vector.shape_cast %23 : vector<1x256xf32> to vector<1x256xf32>
    %25 = vector.broadcast %24 : vector<1x256xf32> to vector<4x256xf32>
    %c0_8 = arith.constant 0 : index
    %c0_9 = arith.constant 0 : index
    %c128 = arith.constant 128 : index
    %26 = vector.load %arg7[%c0_8, %c0_9, %c128] : memref<4x8x512xf32, #tpu.memory_space<vmem>>, vector<1x4x256xf32>
    %27 = vector.shape_cast %26 : vector<1x4x256xf32> to vector<4x256xf32>
    %28 = vector.shape_cast %25 : vector<4x256xf32> to vector<1x4x256xf32>
    tpu.vector_store %arg7[%c0_8, %c0_9, %c128], %28 {strides = array<i32>} : memref<4x8x512xf32, #tpu.memory_space<vmem>>, vector<1x4x256xf32>,
    %c4 = arith.constant 4 : index
    %c0_10 = arith.constant 0 : index
    %29 = vector.load %arg0[%c4, %c0_10] : memref<8x256xf32, #tpu.memory_space<vmem>>, vector<1x256xf32>
    %30 = vector.shape_cast %29 : vector<1x256xf32> to vector<1x256xf32>
    %31 = vector.broadcast %30 : vector<1x256xf32> to vector<4x256xf32>
    %c0_11 = arith.constant 0 : index
    %c4_12 = arith.constant 4 : index
    %c128_13 = arith.constant 128 : index
    %32 = vector.load %arg7[%c0_11, %c4_12, %c128_13] : memref<4x8x512xf32, #tpu.memory_space<vmem>>, vector<1x4x256xf32>
    %33 = vector.shape_cast %32 : vector<1x4x256xf32> to vector<4x256xf32>
    %34 = vector.shape_cast %31 : vector<4x256xf32> to vector<1x4x256xf32>
    tpu.vector_store %arg7[%c0_11, %c4_12, %c128_13], %34 {strides = array<i32>} : memref<4x8x512xf32, #tpu.memory_space<vmem>>, vector<1x4x256xf32>,
    %c1 = arith.constant 1 : index
    %c0_14 = arith.constant 0 : index
    %35 = vector.load %arg0[%c1, %c0_14] : memref<8x256xf32, #tpu.memory_space<vmem>>, vector<1x256xf32>
    %36 = vector.shape_cast %35 : vector<1x256xf32> to vector<1x256xf32>
    %37 = vector.broadcast %36 : vector<1x256xf32> to vector<4x256xf32>
    %c1_15 = arith.constant 1 : index
    %c0_16 = arith.constant 0 : index
    %c128_17 = arith.constant 128 : index
    %38 = vector.load %arg7[%c1_15, %c0_16, %c128_17] : memref<4x8x512xf32, #tpu.memory_space<vmem>>, vector<1x4x256xf32>
    %39 = vector.shape_cast %38 : vector<1x4x256xf32> to vector<4x256xf32>
    %40 = vector.shape_cast %37 : vector<4x256xf32> to vector<1x4x256xf32>
    tpu.vector_store %arg7[%c1_15, %c0_16, %c128_17], %40 {strides = array<i32>} : memref<4x8x512xf32, #tpu.memory_space<vmem>>, vector<1x4x256xf32>,
    %c5 = arith.constant 5 : index
    %c0_18 = arith.constant 0 : index
    %41 = vector.load %arg0[%c5, %c0_18] : memref<8x256xf32, #tpu.memory_space<vmem>>, vector<1x256xf32>
    %42 = vector.shape_cast %41 : vector<1x256xf32> to vector<1x256xf32>
    %43 = vector.broadcast %42 : vector<1x256xf32> to vector<4x256xf32>
    %c1_19 = arith.constant 1 : index
    %c4_20 = arith.constant 4 : index
    %c128_21 = arith.constant 128 : index
    %44 = vector.load %arg7[%c1_19, %c4_20, %c128_21] : memref<4x8x512xf32, #tpu.memory_space<vmem>>, vector<1x4x256xf32>
    %45 = vector.shape_cast %44 : vector<1x4x256xf32> to vector<4x256xf32>
    %46 = vector.shape_cast %43 : vector<4x256xf32> to vector<1x4x256xf32>
    tpu.vector_store %arg7[%c1_19, %c4_20, %c128_21], %46 {strides = array<i32>} : memref<4x8x512xf32, #tpu.memory_space<vmem>>, vector<1x4x256xf32>,
    %c2 = arith.constant 2 : index
    %c0_22 = arith.constant 0 : index
    %47 = vector.load %arg0[%c2, %c0_22] : memref<8x256xf32, #tpu.memory_space<vmem>>, vector<1x256xf32>
    %48 = vector.shape_cast %47 : vector<1x256xf32> to vector<1x256xf32>
    %49 = vector.broadcast %48 : vector<1x256xf32> to vector<4x256xf32>
    %c2_23 = arith.constant 2 : index
    %c0_24 = arith.constant 0 : index
    %c128_25 = arith.constant 128 : index
    %50 = vector.load %arg7[%c2_23, %c0_24, %c128_25] : memref<4x8x512xf32, #tpu.memory_space<vmem>>, vector<1x4x256xf32>
    %51 = vector.shape_cast %50 : vector<1x4x256xf32> to vector<4x256xf32>
    %52 = vector.shape_cast %49 : vector<4x256xf32> to vector<1x4x256xf32>
    tpu.vector_store %arg7[%c2_23, %c0_24, %c128_25], %52 {strides = array<i32>} : memref<4x8x512xf32, #tpu.memory_space<vmem>>, vector<1x4x256xf32>,
    %c6 = arith.constant 6 : index
    %c0_26 = arith.constant 0 : index
    %53 = vector.load %arg0[%c6, %c0_26] : memref<8x256xf32, #tpu.memory_space<vmem>>, vector<1x256xf32>
    %54 = vector.shape_cast %53 : vector<1x256xf32> to vector<1x256xf32>
    %55 = vector.broadcast %54 : vector<1x256xf32> to vector<4x256xf32>
    %c2_27 = arith.constant 2 : index
    %c4_28 = arith.constant 4 : index
    %c128_29 = arith.constant 128 : index
    %56 = vector.load %arg7[%c2_27, %c4_28, %c128_29] : memref<4x8x512xf32, #tpu.memory_space<vmem>>, vector<1x4x256xf32>
    %57 = vector.shape_cast %56 : vector<1x4x256xf32> to vector<4x256xf32>
    %58 = vector.shape_cast %55 : vector<4x256xf32> to vector<1x4x256xf32>
    tpu.vector_store %arg7[%c2_27, %c4_28, %c128_29], %58 {strides = array<i32>} : memref<4x8x512xf32, #tpu.memory_space<vmem>>, vector<1x4x256xf32>,
    %c3 = arith.constant 3 : index
    %c0_30 = arith.constant 0 : index
    %59 = vector.load %arg0[%c3, %c0_30] : memref<8x256xf32, #tpu.memory_space<vmem>>, vector<1x256xf32>
    %60 = vector.shape_cast %59 : vector<1x256xf32> to vector<1x256xf32>
    %61 = vector.broadcast %60 : vector<1x256xf32> to vector<4x256xf32>
    %c3_31 = arith.constant 3 : index
    %c0_32 = arith.constant 0 : index
    %c128_33 = arith.constant 128 : index
    %62 = vector.load %arg7[%c3_31, %c0_32, %c128_33] : memref<4x8x512xf32, #tpu.memory_space<vmem>>, vector<1x4x256xf32>
    %63 = vector.shape_cast %62 : vector<1x4x256xf32> to vector<4x256xf32>
    %64 = vector.shape_cast %61 : vector<4x256xf32> to vector<1x4x256xf32>
    tpu.vector_store %arg7[%c3_31, %c0_32, %c128_33], %64 {strides = array<i32>} : memref<4x8x512xf32, #tpu.memory_space<vmem>>, vector<1x4x256xf32>,
    %c7 = arith.constant 7 : index
    %c0_34 = arith.constant 0 : index
    %65 = vector.load %arg0[%c7, %c0_34] : memref<8x256xf32, #tpu.memory_space<vmem>>, vector<1x256xf32>
    %66 = vector.shape_cast %65 : vector<1x256xf32> to vector<1x256xf32>
    %67 = vector.broadcast %66 : vector<1x256xf32> to vector<4x256xf32>
    %c3_35 = arith.constant 3 : index
    %c4_36 = arith.constant 4 : index
    %c128_37 = arith.constant 128 : index
    %68 = vector.load %arg7[%c3_35, %c4_36, %c128_37] : memref<4x8x512xf32, #tpu.memory_space<vmem>>, vector<1x4x256xf32>
    %69 = vector.shape_cast %68 : vector<1x4x256xf32> to vector<4x256xf32>
    %70 = vector.shape_cast %67 : vector<4x256xf32> to vector<1x4x256xf32>
    tpu.vector_store %arg7[%c3_35, %c4_36, %c128_37], %70 {strides = array<i32>} : memref<4x8x512xf32, #tpu.memory_space<vmem>>, vector<1x4x256xf32>,
    %cst_38 = arith.constant 0.000000e+00 : f32
    %71 = vector.broadcast %cst_38 : f32 to vector<8x256xf32>
    %c0_39 = arith.constant 0 : index
    %c0_40 = arith.constant 0 : index
    %c111 = arith.constant 111 : index
    %72 = vector.load %arg7[%c0_39, %c0_40, %c111] : memref<4x8x512xf32, #tpu.memory_space<vmem>>, vector<1x8x256xf32>
    %73 = vector.shape_cast %72 : vector<1x8x256xf32> to vector<8x256xf32>
    %c0_41 = arith.constant 0 : index
    %c0_42 = arith.constant 0 : index
    %74 = vector.load %arg1[%c0_41, %c0_42] : memref<8x36xf32, #tpu.memory_space<vmem>>, vector<8x1xf32>
    %75 = vector.broadcast %74 : vector<8x1xf32> to vector<8x256xf32>
    %76 = arith.mulf %75, %73 : vector<8x256xf32>
    %77 = arith.addf %71, %76 : vector<8x256xf32>
    %c0_43 = arith.constant 0 : index
    %c0_44 = arith.constant 0 : index
    %c112 = arith.constant 112 : index
    %78 = vector.load %arg7[%c0_43, %c0_44, %c112] : memref<4x8x512xf32, #tpu.memory_space<vmem>>, vector<1x8x256xf32>
    %79 = vector.shape_cast %78 : vector<1x8x256xf32> to vector<8x256xf32>
    %c0_45 = arith.constant 0 : index
    %c1_46 = arith.constant 1 : index
    %80 = vector.load %arg1[%c0_45, %c1_46] : memref<8x36xf32, #tpu.memory_space<vmem>>, vector<8x1xf32>
    %81 = vector.broadcast %80 : vector<8x1xf32> to vector<8x256xf32>
    %82 = arith.mulf %81, %79 : vector<8x256xf32>
    %83 = arith.addf %71, %82 : vector<8x256xf32>
    %c0_47 = arith.constant 0 : index
    %c0_48 = arith.constant 0 : index
    %c113 = arith.constant 113 : index
    %84 = vector.load %arg7[%c0_47, %c0_48, %c113] : memref<4x8x512xf32, #tpu.memory_space<vmem>>, vector<1x8x256xf32>
    %85 = vector.shape_cast %84 : vector<1x8x256xf32> to vector<8x256xf32>
    %c0_49 = arith.constant 0 : index
    %c2_50 = arith.constant 2 : index
    %86 = vector.load %arg1[%c0_49, %c2_50] : memref<8x36xf32, #tpu.memory_space<vmem>>, vector<8x1xf32>
    %87 = vector.broadcast %86 : vector<8x1xf32> to vector<8x256xf32>
    %88 = arith.mulf %87, %85 : vector<8x256xf32>
    %89 = arith.addf %71, %88 : vector<8x256xf32>
    %c0_51 = arith.constant 0 : index
    %c0_52 = arith.constant 0 : index
    %c127 = arith.constant 127 : index
    %90 = vector.load %arg7[%c0_51, %c0_52, %c127] : memref<4x8x512xf32, #tpu.memory_space<vmem>>, vector<1x8x256xf32>
    %91 = vector.shape_cast %90 : vector<1x8x256xf32> to vector<8x256xf32>
    %c0_53 = arith.constant 0 : index
    %c3_54 = arith.constant 3 : index
    %92 = vector.load %arg1[%c0_53, %c3_54] : memref<8x36xf32, #tpu.memory_space<vmem>>, vector<8x1xf32>
    %93 = vector.broadcast %92 : vector<8x1xf32> to vector<8x256xf32>
    %94 = arith.mulf %93, %91 : vector<8x256xf32>
    %95 = arith.addf %77, %94 : vector<8x256xf32>
    %c0_55 = arith.constant 0 : index
    %c0_56 = arith.constant 0 : index
    %c128_57 = arith.constant 128 : index
    %96 = vector.load %arg7[%c0_55, %c0_56, %c128_57] : memref<4x8x512xf32, #tpu.memory_space<vmem>>, vector<1x8x256xf32>
    %97 = vector.shape_cast %96 : vector<1x8x256xf32> to vector<8x256xf32>
    %c0_58 = arith.constant 0 : index
    %c4_59 = arith.constant 4 : index
    %98 = vector.load %arg1[%c0_58, %c4_59] : memref<8x36xf32, #tpu.memory_space<vmem>>, vector<8x1xf32>
    %99 = vector.broadcast %98 : vector<8x1xf32> to vector<8x256xf32>
    %100 = arith.mulf %99, %97 : vector<8x256xf32>
    %101 = arith.addf %83, %100 : vector<8x256xf32>
    %c0_60 = arith.constant 0 : index
    %c0_61 = arith.constant 0 : index
    %c129 = arith.constant 129 : index
    %102 = vector.load %arg7[%c0_60, %c0_61, %c129] : memref<4x8x512xf32, #tpu.memory_space<vmem>>, vector<1x8x256xf32>
    %103 = vector.shape_cast %102 : vector<1x8x256xf32> to vector<8x256xf32>
    %c0_62 = arith.constant 0 : index
    %c5_63 = arith.constant 5 : index
    %104 = vector.load %arg1[%c0_62, %c5_63] : memref<8x36xf32, #tpu.memory_space<vmem>>, vector<8x1xf32>
    %105 = vector.broadcast %104 : vector<8x1xf32> to vector<8x256xf32>
    %106 = arith.mulf %105, %103 : vector<8x256xf32>
    %107 = arith.addf %89, %106 : vector<8x256xf32>
    %c0_64 = arith.constant 0 : index
    %c0_65 = arith.constant 0 : index
    %c143 = arith.constant 143 : index
    %108 = vector.load %arg7[%c0_64, %c0_65, %c143] : memref<4x8x512xf32, #tpu.memory_space<vmem>>, vector<1x8x256xf32>
    %109 = vector.shape_cast %108 : vector<1x8x256xf32> to vector<8x256xf32>
    %c0_66 = arith.constant 0 : index
    %c6_67 = arith.constant 6 : index
    %110 = vector.load %arg1[%c0_66, %c6_67] : memref<8x36xf32, #tpu.memory_space<vmem>>, vector<8x1xf32>
    %111 = vector.broadcast %110 : vector<8x1xf32> to vector<8x256xf32>
    %112 = arith.mulf %111, %109 : vector<8x256xf32>
    %113 = arith.addf %95, %112 : vector<8x256xf32>
    %c0_68 = arith.constant 0 : index
    %c0_69 = arith.constant 0 : index
    %c144 = arith.constant 144 : index
    %114 = vector.load %arg7[%c0_68, %c0_69, %c144] : memref<4x8x512xf32, #tpu.memory_space<vmem>>, vector<1x8x256xf32>
    %115 = vector.shape_cast %114 : vector<1x8x256xf32> to vector<8x256xf32>
    %c0_70 = arith.constant 0 : index
    %c7_71 = arith.constant 7 : index
    %116 = vector.load %arg1[%c0_70, %c7_71] : memref<8x36xf32, #tpu.memory_space<vmem>>, vector<8x1xf32>
    %117 = vector.broadcast %116 : vector<8x1xf32> to vector<8x256xf32>
    %118 = arith.mulf %117, %115 : vector<8x256xf32>
    %119 = arith.addf %101, %118 : vector<8x256xf32>
    %c0_72 = arith.constant 0 : index
    %c0_73 = arith.constant 0 : index
    %c145 = arith.constant 145 : index
    %120 = vector.load %arg7[%c0_72, %c0_73, %c145] : memref<4x8x512xf32, #tpu.memory_space<vmem>>, vector<1x8x256xf32>
    %121 = vector.shape_cast %120 : vector<1x8x256xf32> to vector<8x256xf32>
    %c0_74 = arith.constant 0 : index
    %c8 = arith.constant 8 : index
    %122 = vector.load %arg1[%c0_74, %c8] : memref<8x36xf32, #tpu.memory_space<vmem>>, vector<8x1xf32>
    %123 = vector.broadcast %122 : vector<8x1xf32> to vector<8x256xf32>
    %124 = arith.mulf %123, %121 : vector<8x256xf32>
    %125 = arith.addf %107, %124 : vector<8x256xf32>
    %c1_75 = arith.constant 1 : index
    %c0_76 = arith.constant 0 : index
    %c111_77 = arith.constant 111 : index
    %126 = vector.load %arg7[%c1_75, %c0_76, %c111_77] : memref<4x8x512xf32, #tpu.memory_space<vmem>>, vector<1x8x256xf32>
    %127 = vector.shape_cast %126 : vector<1x8x256xf32> to vector<8x256xf32>
    %c0_78 = arith.constant 0 : index
    %c9 = arith.constant 9 : index
    %128 = vector.load %arg1[%c0_78, %c9] : memref<8x36xf32, #tpu.memory_space<vmem>>, vector<8x1xf32>
    %129 = vector.broadcast %128 : vector<8x1xf32> to vector<8x256xf32>
    %130 = arith.mulf %129, %127 : vector<8x256xf32>
    %131 = arith.addf %113, %130 : vector<8x256xf32>
    %c1_79 = arith.constant 1 : index
    %c0_80 = arith.constant 0 : index
    %c112_81 = arith.constant 112 : index
    %132 = vector.load %arg7[%c1_79, %c0_80, %c112_81] : memref<4x8x512xf32, #tpu.memory_space<vmem>>, vector<1x8x256xf32>
    %133 = vector.shape_cast %132 : vector<1x8x256xf32> to vector<8x256xf32>
    %c0_82 = arith.constant 0 : index
    %c10 = arith.constant 10 : index
    %134 = vector.load %arg1[%c0_82, %c10] : memref<8x36xf32, #tpu.memory_space<vmem>>, vector<8x1xf32>
    %135 = vector.broadcast %134 : vector<8x1xf32> to vector<8x256xf32>
    %136 = arith.mulf %135, %133 : vector<8x256xf32>
    %137 = arith.addf %119, %136 : vector<8x256xf32>
    %c1_83 = arith.constant 1 : index
    %c0_84 = arith.constant 0 : index
    %c113_85 = arith.constant 113 : index
    %138 = vector.load %arg7[%c1_83, %c0_84, %c113_85] : memref<4x8x512xf32, #tpu.memory_space<vmem>>, vector<1x8x256xf32>
    %139 = vector.shape_cast %138 : vector<1x8x256xf32> to vector<8x256xf32>
    %c0_86 = arith.constant 0 : index
    %c11 = arith.constant 11 : index
    %140 = vector.load %arg1[%c0_86, %c11] : memref<8x36xf32, #tpu.memory_space<vmem>>, vector<8x1xf32>
    %141 = vector.broadcast %140 : vector<8x1xf32> to vector<8x256xf32>
    %142 = arith.mulf %141, %139 : vector<8x256xf32>
    %143 = arith.addf %125, %142 : vector<8x256xf32>
    %c1_87 = arith.constant 1 : index
    %c0_88 = arith.constant 0 : index
    %c127_89 = arith.constant 127 : index
    %144 = vector.load %arg7[%c1_87, %c0_88, %c127_89] : memref<4x8x512xf32, #tpu.memory_space<vmem>>, vector<1x8x256xf32>
    %145 = vector.shape_cast %144 : vector<1x8x256xf32> to vector<8x256xf32>
    %c0_90 = arith.constant 0 : index
    %c12 = arith.constant 12 : index
    %146 = vector.load %arg1[%c0_90, %c12] : memref<8x36xf32, #tpu.memory_space<vmem>>, vector<8x1xf32>
    %147 = vector.broadcast %146 : vector<8x1xf32> to vector<8x256xf32>
    %148 = arith.mulf %147, %145 : vector<8x256xf32>
    %149 = arith.addf %131, %148 : vector<8x256xf32>
    %c1_91 = arith.constant 1 : index
    %c0_92 = arith.constant 0 : index
    %c128_93 = arith.constant 128 : index
    %150 = vector.load %arg7[%c1_91, %c0_92, %c128_93] : memref<4x8x512xf32, #tpu.memory_space<vmem>>, vector<1x8x256xf32>
    %151 = vector.shape_cast %150 : vector<1x8x256xf32> to vector<8x256xf32>
    %c0_94 = arith.constant 0 : index
    %c13 = arith.constant 13 : index
    %152 = vector.load %arg1[%c0_94, %c13] : memref<8x36xf32, #tpu.memory_space<vmem>>, vector<8x1xf32>
    %153 = vector.broadcast %152 : vector<8x1xf32> to vector<8x256xf32>
    %154 = arith.mulf %153, %151 : vector<8x256xf32>
    %155 = arith.addf %137, %154 : vector<8x256xf32>
    %c1_95 = arith.constant 1 : index
    %c0_96 = arith.constant 0 : index
    %c129_97 = arith.constant 129 : index
    %156 = vector.load %arg7[%c1_95, %c0_96, %c129_97] : memref<4x8x512xf32, #tpu.memory_space<vmem>>, vector<1x8x256xf32>
    %157 = vector.shape_cast %156 : vector<1x8x256xf32> to vector<8x256xf32>
    %c0_98 = arith.constant 0 : index
    %c14 = arith.constant 14 : index
    %158 = vector.load %arg1[%c0_98, %c14] : memref<8x36xf32, #tpu.memory_space<vmem>>, vector<8x1xf32>
    %159 = vector.broadcast %158 : vector<8x1xf32> to vector<8x256xf32>
    %160 = arith.mulf %159, %157 : vector<8x256xf32>
    %161 = arith.addf %143, %160 : vector<8x256xf32>
    %c1_99 = arith.constant 1 : index
    %c0_100 = arith.constant 0 : index
    %c143_101 = arith.constant 143 : index
    %162 = vector.load %arg7[%c1_99, %c0_100, %c143_101] : memref<4x8x512xf32, #tpu.memory_space<vmem>>, vector<1x8x256xf32>
    %163 = vector.shape_cast %162 : vector<1x8x256xf32> to vector<8x256xf32>
    %c0_102 = arith.constant 0 : index
    %c15 = arith.constant 15 : index
    %164 = vector.load %arg1[%c0_102, %c15] : memref<8x36xf32, #tpu.memory_space<vmem>>, vector<8x1xf32>
    %165 = vector.broadcast %164 : vector<8x1xf32> to vector<8x256xf32>
    %166 = arith.mulf %165, %163 : vector<8x256xf32>
    %167 = arith.addf %149, %166 : vector<8x256xf32>
    %c1_103 = arith.constant 1 : index
    %c0_104 = arith.constant 0 : index
    %c144_105 = arith.constant 144 : index
    %168 = vector.load %arg7[%c1_103, %c0_104, %c144_105] : memref<4x8x512xf32, #tpu.memory_space<vmem>>, vector<1x8x256xf32>
    %169 = vector.shape_cast %168 : vector<1x8x256xf32> to vector<8x256xf32>
    %c0_106 = arith.constant 0 : index
    %c16 = arith.constant 16 : index
    %170 = vector.load %arg1[%c0_106, %c16] : memref<8x36xf32, #tpu.memory_space<vmem>>, vector<8x1xf32>
    %171 = vector.broadcast %170 : vector<8x1xf32> to vector<8x256xf32>
    %172 = arith.mulf %171, %169 : vector<8x256xf32>
    %173 = arith.addf %155, %172 : vector<8x256xf32>
    %c1_107 = arith.constant 1 : index
    %c0_108 = arith.constant 0 : index
    %c145_109 = arith.constant 145 : index
    %174 = vector.load %arg7[%c1_107, %c0_108, %c145_109] : memref<4x8x512xf32, #tpu.memory_space<vmem>>, vector<1x8x256xf32>
    %175 = vector.shape_cast %174 : vector<1x8x256xf32> to vector<8x256xf32>
    %c0_110 = arith.constant 0 : index
    %c17 = arith.constant 17 : index
    %176 = vector.load %arg1[%c0_110, %c17] : memref<8x36xf32, #tpu.memory_space<vmem>>, vector<8x1xf32>
    %177 = vector.broadcast %176 : vector<8x1xf32> to vector<8x256xf32>
    %178 = arith.mulf %177, %175 : vector<8x256xf32>
    %179 = arith.addf %161, %178 : vector<8x256xf32>
    %c2_111 = arith.constant 2 : index
    %c0_112 = arith.constant 0 : index
    %c111_113 = arith.constant 111 : index
    %180 = vector.load %arg7[%c2_111, %c0_112, %c111_113] : memref<4x8x512xf32, #tpu.memory_space<vmem>>, vector<1x8x256xf32>
    %181 = vector.shape_cast %180 : vector<1x8x256xf32> to vector<8x256xf32>
    %c0_114 = arith.constant 0 : index
    %c18 = arith.constant 18 : index
    %182 = vector.load %arg1[%c0_114, %c18] : memref<8x36xf32, #tpu.memory_space<vmem>>, vector<8x1xf32>
    %183 = vector.broadcast %182 : vector<8x1xf32> to vector<8x256xf32>
    %184 = arith.mulf %183, %181 : vector<8x256xf32>
    %185 = arith.addf %167, %184 : vector<8x256xf32>
    %c2_115 = arith.constant 2 : index
    %c0_116 = arith.constant 0 : index
    %c112_117 = arith.constant 112 : index
    %186 = vector.load %arg7[%c2_115, %c0_116, %c112_117] : memref<4x8x512xf32, #tpu.memory_space<vmem>>, vector<1x8x256xf32>
    %187 = vector.shape_cast %186 : vector<1x8x256xf32> to vector<8x256xf32>
    %c0_118 = arith.constant 0 : index
    %c19 = arith.constant 19 : index
    %188 = vector.load %arg1[%c0_118, %c19] : memref<8x36xf32, #tpu.memory_space<vmem>>, vector<8x1xf32>
    %189 = vector.broadcast %188 : vector<8x1xf32> to vector<8x256xf32>
    %190 = arith.mulf %189, %187 : vector<8x256xf32>
    %191 = arith.addf %173, %190 : vector<8x256xf32>
    %c2_119 = arith.constant 2 : index
    %c0_120 = arith.constant 0 : index
    %c113_121 = arith.constant 113 : index
    %192 = vector.load %arg7[%c2_119, %c0_120, %c113_121] : memref<4x8x512xf32, #tpu.memory_space<vmem>>, vector<1x8x256xf32>
    %193 = vector.shape_cast %192 : vector<1x8x256xf32> to vector<8x256xf32>
    %c0_122 = arith.constant 0 : index
    %c20 = arith.constant 20 : index
    %194 = vector.load %arg1[%c0_122, %c20] : memref<8x36xf32, #tpu.memory_space<vmem>>, vector<8x1xf32>
    %195 = vector.broadcast %194 : vector<8x1xf32> to vector<8x256xf32>
    %196 = arith.mulf %195, %193 : vector<8x256xf32>
    %197 = arith.addf %179, %196 : vector<8x256xf32>
    %c2_123 = arith.constant 2 : index
    %c0_124 = arith.constant 0 : index
    %c127_125 = arith.constant 127 : index
    %198 = vector.load %arg7[%c2_123, %c0_124, %c127_125] : memref<4x8x512xf32, #tpu.memory_space<vmem>>, vector<1x8x256xf32>
    %199 = vector.shape_cast %198 : vector<1x8x256xf32> to vector<8x256xf32>
    %c0_126 = arith.constant 0 : index
    %c21 = arith.constant 21 : index
    %200 = vector.load %arg1[%c0_126, %c21] : memref<8x36xf32, #tpu.memory_space<vmem>>, vector<8x1xf32>
    %201 = vector.broadcast %200 : vector<8x1xf32> to vector<8x256xf32>
    %202 = arith.mulf %201, %199 : vector<8x256xf32>
    %203 = arith.addf %185, %202 : vector<8x256xf32>
    %c2_127 = arith.constant 2 : index
    %c0_128 = arith.constant 0 : index
    %c128_129 = arith.constant 128 : index
    %204 = vector.load %arg7[%c2_127, %c0_128, %c128_129] : memref<4x8x512xf32, #tpu.memory_space<vmem>>, vector<1x8x256xf32>
    %205 = vector.shape_cast %204 : vector<1x8x256xf32> to vector<8x256xf32>
    %c0_130 = arith.constant 0 : index
    %c22 = arith.constant 22 : index
    %206 = vector.load %arg1[%c0_130, %c22] : memref<8x36xf32, #tpu.memory_space<vmem>>, vector<8x1xf32>
    %207 = vector.broadcast %206 : vector<8x1xf32> to vector<8x256xf32>
    %208 = arith.mulf %207, %205 : vector<8x256xf32>
    %209 = arith.addf %191, %208 : vector<8x256xf32>
    %c2_131 = arith.constant 2 : index
    %c0_132 = arith.constant 0 : index
    %c129_133 = arith.constant 129 : index
    %210 = vector.load %arg7[%c2_131, %c0_132, %c129_133] : memref<4x8x512xf32, #tpu.memory_space<vmem>>, vector<1x8x256xf32>
    %211 = vector.shape_cast %210 : vector<1x8x256xf32> to vector<8x256xf32>
    %c0_134 = arith.constant 0 : index
    %c23 = arith.constant 23 : index
    %212 = vector.load %arg1[%c0_134, %c23] : memref<8x36xf32, #tpu.memory_space<vmem>>, vector<8x1xf32>
    %213 = vector.broadcast %212 : vector<8x1xf32> to vector<8x256xf32>
    %214 = arith.mulf %213, %211 : vector<8x256xf32>
    %215 = arith.addf %197, %214 : vector<8x256xf32>
    %c2_135 = arith.constant 2 : index
    %c0_136 = arith.constant 0 : index
    %c143_137 = arith.constant 143 : index
    %216 = vector.load %arg7[%c2_135, %c0_136, %c143_137] : memref<4x8x512xf32, #tpu.memory_space<vmem>>, vector<1x8x256xf32>
    %217 = vector.shape_cast %216 : vector<1x8x256xf32> to vector<8x256xf32>
    %c0_138 = arith.constant 0 : index
    %c24 = arith.constant 24 : index
    %218 = vector.load %arg1[%c0_138, %c24] : memref<8x36xf32, #tpu.memory_space<vmem>>, vector<8x1xf32>
    %219 = vector.broadcast %218 : vector<8x1xf32> to vector<8x256xf32>
    %220 = arith.mulf %219, %217 : vector<8x256xf32>
    %221 = arith.addf %203, %220 : vector<8x256xf32>
    %c2_139 = arith.constant 2 : index
    %c0_140 = arith.constant 0 : index
    %c144_141 = arith.constant 144 : index
    %222 = vector.load %arg7[%c2_139, %c0_140, %c144_141] : memref<4x8x512xf32, #tpu.memory_space<vmem>>, vector<1x8x256xf32>
    %223 = vector.shape_cast %222 : vector<1x8x256xf32> to vector<8x256xf32>
    %c0_142 = arith.constant 0 : index
    %c25 = arith.constant 25 : index
    %224 = vector.load %arg1[%c0_142, %c25] : memref<8x36xf32, #tpu.memory_space<vmem>>, vector<8x1xf32>
    %225 = vector.broadcast %224 : vector<8x1xf32> to vector<8x256xf32>
    %226 = arith.mulf %225, %223 : vector<8x256xf32>
    %227 = arith.addf %209, %226 : vector<8x256xf32>
    %c2_143 = arith.constant 2 : index
    %c0_144 = arith.constant 0 : index
    %c145_145 = arith.constant 145 : index
    %228 = vector.load %arg7[%c2_143, %c0_144, %c145_145] : memref<4x8x512xf32, #tpu.memory_space<vmem>>, vector<1x8x256xf32>
    %229 = vector.shape_cast %228 : vector<1x8x256xf32> to vector<8x256xf32>
    %c0_146 = arith.constant 0 : index
    %c26 = arith.constant 26 : index
    %230 = vector.load %arg1[%c0_146, %c26] : memref<8x36xf32, #tpu.memory_space<vmem>>, vector<8x1xf32>
    %231 = vector.broadcast %230 : vector<8x1xf32> to vector<8x256xf32>
    %232 = arith.mulf %231, %229 : vector<8x256xf32>
    %233 = arith.addf %215, %232 : vector<8x256xf32>
    %c3_147 = arith.constant 3 : index
    %c0_148 = arith.constant 0 : index
    %c111_149 = arith.constant 111 : index
    %234 = vector.load %arg7[%c3_147, %c0_148, %c111_149] : memref<4x8x512xf32, #tpu.memory_space<vmem>>, vector<1x8x256xf32>
    %235 = vector.shape_cast %234 : vector<1x8x256xf32> to vector<8x256xf32>
    %c0_150 = arith.constant 0 : index
    %c27 = arith.constant 27 : index
    %236 = vector.load %arg1[%c0_150, %c27] : memref<8x36xf32, #tpu.memory_space<vmem>>, vector<8x1xf32>
    %237 = vector.broadcast %236 : vector<8x1xf32> to vector<8x256xf32>
    %238 = arith.mulf %237, %235 : vector<8x256xf32>
    %239 = arith.addf %221, %238 : vector<8x256xf32>
    %c3_151 = arith.constant 3 : index
    %c0_152 = arith.constant 0 : index
    %c112_153 = arith.constant 112 : index
    %240 = vector.load %arg7[%c3_151, %c0_152, %c112_153] : memref<4x8x512xf32, #tpu.memory_space<vmem>>, vector<1x8x256xf32>
    %241 = vector.shape_cast %240 : vector<1x8x256xf32> to vector<8x256xf32>
    %c0_154 = arith.constant 0 : index
    %c28 = arith.constant 28 : index
    %242 = vector.load %arg1[%c0_154, %c28] : memref<8x36xf32, #tpu.memory_space<vmem>>, vector<8x1xf32>
    %243 = vector.broadcast %242 : vector<8x1xf32> to vector<8x256xf32>
    %244 = arith.mulf %243, %241 : vector<8x256xf32>
    %245 = arith.addf %227, %244 : vector<8x256xf32>
    %c3_155 = arith.constant 3 : index
    %c0_156 = arith.constant 0 : index
    %c113_157 = arith.constant 113 : index
    %246 = vector.load %arg7[%c3_155, %c0_156, %c113_157] : memref<4x8x512xf32, #tpu.memory_space<vmem>>, vector<1x8x256xf32>
    %247 = vector.shape_cast %246 : vector<1x8x256xf32> to vector<8x256xf32>
    %c0_158 = arith.constant 0 : index
    %c29 = arith.constant 29 : index
    %248 = vector.load %arg1[%c0_158, %c29] : memref<8x36xf32, #tpu.memory_space<vmem>>, vector<8x1xf32>
    %249 = vector.broadcast %248 : vector<8x1xf32> to vector<8x256xf32>
    %250 = arith.mulf %249, %247 : vector<8x256xf32>
    %251 = arith.addf %233, %250 : vector<8x256xf32>
    %c3_159 = arith.constant 3 : index
    %c0_160 = arith.constant 0 : index
    %c127_161 = arith.constant 127 : index
    %252 = vector.load %arg7[%c3_159, %c0_160, %c127_161] : memref<4x8x512xf32, #tpu.memory_space<vmem>>, vector<1x8x256xf32>
    %253 = vector.shape_cast %252 : vector<1x8x256xf32> to vector<8x256xf32>
    %c0_162 = arith.constant 0 : index
    %c30 = arith.constant 30 : index
    %254 = vector.load %arg1[%c0_162, %c30] : memref<8x36xf32, #tpu.memory_space<vmem>>, vector<8x1xf32>
    %255 = vector.broadcast %254 : vector<8x1xf32> to vector<8x256xf32>
    %256 = arith.mulf %255, %253 : vector<8x256xf32>
    %257 = arith.addf %239, %256 : vector<8x256xf32>
    %c3_163 = arith.constant 3 : index
    %c0_164 = arith.constant 0 : index
    %c128_165 = arith.constant 128 : index
    %258 = vector.load %arg7[%c3_163, %c0_164, %c128_165] : memref<4x8x512xf32, #tpu.memory_space<vmem>>, vector<1x8x256xf32>
    %259 = vector.shape_cast %258 : vector<1x8x256xf32> to vector<8x256xf32>
    %c0_166 = arith.constant 0 : index
    %c31 = arith.constant 31 : index
    %260 = vector.load %arg1[%c0_166, %c31] : memref<8x36xf32, #tpu.memory_space<vmem>>, vector<8x1xf32>
    %261 = vector.broadcast %260 : vector<8x1xf32> to vector<8x256xf32>
    %262 = arith.mulf %261, %259 : vector<8x256xf32>
    %263 = arith.addf %245, %262 : vector<8x256xf32>
    %c3_167 = arith.constant 3 : index
    %c0_168 = arith.constant 0 : index
    %c129_169 = arith.constant 129 : index
    %264 = vector.load %arg7[%c3_167, %c0_168, %c129_169] : memref<4x8x512xf32, #tpu.memory_space<vmem>>, vector<1x8x256xf32>
    %265 = vector.shape_cast %264 : vector<1x8x256xf32> to vector<8x256xf32>
    %c0_170 = arith.constant 0 : index
    %c32 = arith.constant 32 : index
    %266 = vector.load %arg1[%c0_170, %c32] : memref<8x36xf32, #tpu.memory_space<vmem>>, vector<8x1xf32>
    %267 = vector.broadcast %266 : vector<8x1xf32> to vector<8x256xf32>
    %268 = arith.mulf %267, %265 : vector<8x256xf32>
    %269 = arith.addf %251, %268 : vector<8x256xf32>
    %c3_171 = arith.constant 3 : index
    %c0_172 = arith.constant 0 : index
    %c143_173 = arith.constant 143 : index
    %270 = vector.load %arg7[%c3_171, %c0_172, %c143_173] : memref<4x8x512xf32, #tpu.memory_space<vmem>>, vector<1x8x256xf32>
    %271 = vector.shape_cast %270 : vector<1x8x256xf32> to vector<8x256xf32>
    %c0_174 = arith.constant 0 : index
    %c33 = arith.constant 33 : index
    %272 = vector.load %arg1[%c0_174, %c33] : memref<8x36xf32, #tpu.memory_space<vmem>>, vector<8x1xf32>
    %273 = vector.broadcast %272 : vector<8x1xf32> to vector<8x256xf32>
    %274 = arith.mulf %273, %271 : vector<8x256xf32>
    %275 = arith.addf %257, %274 : vector<8x256xf32>
    %c3_175 = arith.constant 3 : index
    %c0_176 = arith.constant 0 : index
    %c144_177 = arith.constant 144 : index
    %276 = vector.load %arg7[%c3_175, %c0_176, %c144_177] : memref<4x8x512xf32, #tpu.memory_space<vmem>>, vector<1x8x256xf32>
    %277 = vector.shape_cast %276 : vector<1x8x256xf32> to vector<8x256xf32>
    %c0_178 = arith.constant 0 : index
    %c34 = arith.constant 34 : index
    %278 = vector.load %arg1[%c0_178, %c34] : memref<8x36xf32, #tpu.memory_space<vmem>>, vector<8x1xf32>
    %279 = vector.broadcast %278 : vector<8x1xf32> to vector<8x256xf32>
    %280 = arith.mulf %279, %277 : vector<8x256xf32>
    %281 = arith.addf %263, %280 : vector<8x256xf32>
    %c3_179 = arith.constant 3 : index
    %c0_180 = arith.constant 0 : index
    %c145_181 = arith.constant 145 : index
    %282 = vector.load %arg7[%c3_179, %c0_180, %c145_181] : memref<4x8x512xf32, #tpu.memory_space<vmem>>, vector<1x8x256xf32>
    %283 = vector.shape_cast %282 : vector<1x8x256xf32> to vector<8x256xf32>
    %c0_182 = arith.constant 0 : index
    %c35 = arith.constant 35 : index
    %284 = vector.load %arg1[%c0_182, %c35] : memref<8x36xf32, #tpu.memory_space<vmem>>, vector<8x1xf32>
    %285 = vector.broadcast %284 : vector<8x1xf32> to vector<8x256xf32>
    %286 = arith.mulf %285, %283 : vector<8x256xf32>
    %287 = arith.addf %269, %286 : vector<8x256xf32>
    %cst_183 = arith.constant 0.000000e+00 : f32
    %288 = vector.broadcast %cst_183 : f32 to vector<8x256xf32>
    %289 = arith.select %18, %275, %288 : vector<8x256xi1>, vector<8x256xf32>
    %290 = arith.addf %281, %289 : vector<8x256xf32>
    %cst_184 = arith.constant 0.000000e+00 : f32
    %291 = vector.broadcast %cst_184 : f32 to vector<8x256xf32>
    %292 = arith.select %20, %287, %291 : vector<8x256xi1>, vector<8x256xf32>
    %293 = arith.addf %290, %292 : vector<8x256xf32>
    %c0_185 = arith.constant 0 : index
    %c0_186 = arith.constant 0 : index
    %294 = vector.load %arg8[%c0_185, %c0_186] : memref<8x256xf32, #tpu.memory_space<vmem>>, vector<8x256xf32>
    tpu.vector_store %arg8[%c0_185, %c0_186], %293 {strides = array<i32>} : memref<8x256xf32, #tpu.memory_space<vmem>>, vector<8x256xf32>,
    %c0_187 = arith.constant 0 : index
    %c0_188 = arith.constant 0 : index
    %295 = vector.load %arg8[%c0_187, %c0_188] : memref<8x256xf32, #tpu.memory_space<vmem>>, vector<1x256xf32>
    %c4_189 = arith.constant 4 : index
    %c0_190 = arith.constant 0 : index
    %296 = vector.load %arg8[%c4_189, %c0_190] : memref<8x256xf32, #tpu.memory_space<vmem>>, vector<1x256xf32>
    %297 = arith.addf %295, %296 : vector<1x256xf32>
    %298 = vector.shape_cast %297 : vector<1x256xf32> to vector<1x1x256xf32>
    %cst_191 = arith.constant dense<0.000000e+00> : vector<1xf32>
    %299 = vector.multi_reduction <add>, %298, %cst_191 [1, 2] : vector<1x1x256xf32> to vector<1xf32>
    %300 = vector.shape_cast %299 : vector<1xf32> to vector<1x1x1xf32>
    %301 = vector.extract %300[0, 0, 0] : f32 from vector<1x1x1xf32>
    %302 = vector.broadcast %301 : f32 to vector<1x1xf32>
    %cst_192 = arith.constant 0.001953125 : f32
    %303 = vector.broadcast %cst_192 : f32 to vector<1x1xf32>
    %304 = arith.mulf %302, %303 : vector<1x1xf32>
    %305 = vector.broadcast %304 : vector<1x1xf32> to vector<1x256xf32>
    %306 = arith.subf %295, %305 : vector<1x256xf32>
    %307 = arith.mulf %306, %306 : vector<1x256xf32>
    %308 = vector.broadcast %304 : vector<1x1xf32> to vector<1x256xf32>
    %309 = arith.subf %296, %308 : vector<1x256xf32>
    %310 = arith.mulf %309, %309 : vector<1x256xf32>
    %311 = arith.addf %307, %310 : vector<1x256xf32>
    %312 = vector.shape_cast %311 : vector<1x256xf32> to vector<1x1x256xf32>
    %cst_193 = arith.constant dense<0.000000e+00> : vector<1xf32>
    %313 = vector.multi_reduction <add>, %312, %cst_193 [1, 2] : vector<1x1x256xf32> to vector<1xf32>
    %314 = vector.shape_cast %313 : vector<1xf32> to vector<1x1x1xf32>
    %315 = vector.extract %314[0, 0, 0] : f32 from vector<1x1x1xf32>
    %316 = vector.broadcast %315 : f32 to vector<1x1xf32>
    %cst_194 = arith.constant 0.001953125 : f32
    %317 = vector.broadcast %cst_194 : f32 to vector<1x1xf32>
    %318 = arith.mulf %316, %317 : vector<1x1xf32>
    %c0_195 = arith.constant 0 : index
    %319 = memref.load %arg4[%c0_195] : memref<4xf32, #tpu.memory_space<smem>>
    %cst_196 = arith.constant 9.99999974E-6 : f32
    %320 = vector.broadcast %cst_196 : f32 to vector<1x1xf32>
    %321 = arith.addf %318, %320 : vector<1x1xf32>
    %322 = math.rsqrt %321 : vector<1x1xf32>
    %323 = vector.broadcast %319 : f32 to vector<1x1xf32>
    %324 = arith.mulf %323, %322 : vector<1x1xf32>
    %c0_197 = arith.constant 0 : index
    %325 = memref.load %arg5[%c0_197] : memref<4xf32, #tpu.memory_space<smem>>
    %326 = arith.mulf %304, %324 : vector<1x1xf32>
    %327 = vector.broadcast %325 : f32 to vector<1x1xf32>
    %328 = arith.subf %327, %326 : vector<1x1xf32>
    %c1_198 = arith.constant 1 : index
    %c0_199 = arith.constant 0 : index
    %329 = vector.load %arg8[%c1_198, %c0_199] : memref<8x256xf32, #tpu.memory_space<vmem>>, vector<1x256xf32>
    %c5_200 = arith.constant 5 : index
    %c0_201 = arith.constant 0 : index
    %330 = vector.load %arg8[%c5_200, %c0_201] : memref<8x256xf32, #tpu.memory_space<vmem>>, vector<1x256xf32>
    %331 = arith.addf %329, %330 : vector<1x256xf32>
    %332 = vector.shape_cast %331 : vector<1x256xf32> to vector<1x1x256xf32>
    %cst_202 = arith.constant dense<0.000000e+00> : vector<1xf32>
    %333 = vector.multi_reduction <add>, %332, %cst_202 [1, 2] : vector<1x1x256xf32> to vector<1xf32>
    %334 = vector.shape_cast %333 : vector<1xf32> to vector<1x1x1xf32>
    %335 = vector.extract %334[0, 0, 0] : f32 from vector<1x1x1xf32>
    %336 = vector.broadcast %335 : f32 to vector<1x1xf32>
    %cst_203 = arith.constant 0.001953125 : f32
    %337 = vector.broadcast %cst_203 : f32 to vector<1x1xf32>
    %338 = arith.mulf %336, %337 : vector<1x1xf32>
    %339 = vector.broadcast %338 : vector<1x1xf32> to vector<1x256xf32>
    %340 = arith.subf %329, %339 : vector<1x256xf32>
    %341 = arith.mulf %340, %340 : vector<1x256xf32>
    %342 = vector.broadcast %338 : vector<1x1xf32> to vector<1x256xf32>
    %343 = arith.subf %330, %342 : vector<1x256xf32>
    %344 = arith.mulf %343, %343 : vector<1x256xf32>
    %345 = arith.addf %341, %344 : vector<1x256xf32>
    %346 = vector.shape_cast %345 : vector<1x256xf32> to vector<1x1x256xf32>
    %cst_204 = arith.constant dense<0.000000e+00> : vector<1xf32>
    %347 = vector.multi_reduction <add>, %346, %cst_204 [1, 2] : vector<1x1x256xf32> to vector<1xf32>
    %348 = vector.shape_cast %347 : vector<1xf32> to vector<1x1x1xf32>
    %349 = vector.extract %348[0, 0, 0] : f32 from vector<1x1x1xf32>
    %350 = vector.broadcast %349 : f32 to vector<1x1xf32>
    %cst_205 = arith.constant 0.001953125 : f32
    %351 = vector.broadcast %cst_205 : f32 to vector<1x1xf32>
    %352 = arith.mulf %350, %351 : vector<1x1xf32>
    %c1_206 = arith.constant 1 : index
    %353 = memref.load %arg4[%c1_206] : memref<4xf32, #tpu.memory_space<smem>>
    %cst_207 = arith.constant 9.99999974E-6 : f32
    %354 = vector.broadcast %cst_207 : f32 to vector<1x1xf32>
    %355 = arith.addf %352, %354 : vector<1x1xf32>
    %356 = math.rsqrt %355 : vector<1x1xf32>
    %357 = vector.broadcast %353 : f32 to vector<1x1xf32>
    %358 = arith.mulf %357, %356 : vector<1x1xf32>
    %c1_208 = arith.constant 1 : index
    %359 = memref.load %arg5[%c1_208] : memref<4xf32, #tpu.memory_space<smem>>
    %360 = arith.mulf %338, %358 : vector<1x1xf32>
    %361 = vector.broadcast %359 : f32 to vector<1x1xf32>
    %362 = arith.subf %361, %360 : vector<1x1xf32>
    %c2_209 = arith.constant 2 : index
    %c0_210 = arith.constant 0 : index
    %363 = vector.load %arg8[%c2_209, %c0_210] : memref<8x256xf32, #tpu.memory_space<vmem>>, vector<1x256xf32>
    %c6_211 = arith.constant 6 : index
    %c0_212 = arith.constant 0 : index
    %364 = vector.load %arg8[%c6_211, %c0_212] : memref<8x256xf32, #tpu.memory_space<vmem>>, vector<1x256xf32>
    %365 = arith.addf %363, %364 : vector<1x256xf32>
    %366 = vector.shape_cast %365 : vector<1x256xf32> to vector<1x1x256xf32>
    %cst_213 = arith.constant dense<0.000000e+00> : vector<1xf32>
    %367 = vector.multi_reduction <add>, %366, %cst_213 [1, 2] : vector<1x1x256xf32> to vector<1xf32>
    %368 = vector.shape_cast %367 : vector<1xf32> to vector<1x1x1xf32>
    %369 = vector.extract %368[0, 0, 0] : f32 from vector<1x1x1xf32>
    %370 = vector.broadcast %369 : f32 to vector<1x1xf32>
    %cst_214 = arith.constant 0.001953125 : f32
    %371 = vector.broadcast %cst_214 : f32 to vector<1x1xf32>
    %372 = arith.mulf %370, %371 : vector<1x1xf32>
    %373 = vector.broadcast %372 : vector<1x1xf32> to vector<1x256xf32>
    %374 = arith.subf %363, %373 : vector<1x256xf32>
    %375 = arith.mulf %374, %374 : vector<1x256xf32>
    %376 = vector.broadcast %372 : vector<1x1xf32> to vector<1x256xf32>
    %377 = arith.subf %364, %376 : vector<1x256xf32>
    %378 = arith.mulf %377, %377 : vector<1x256xf32>
    %379 = arith.addf %375, %378 : vector<1x256xf32>
    %380 = vector.shape_cast %379 : vector<1x256xf32> to vector<1x1x256xf32>
    %cst_215 = arith.constant dense<0.000000e+00> : vector<1xf32>
    %381 = vector.multi_reduction <add>, %380, %cst_215 [1, 2] : vector<1x1x256xf32> to vector<1xf32>
    %382 = vector.shape_cast %381 : vector<1xf32> to vector<1x1x1xf32>
    %383 = vector.extract %382[0, 0, 0] : f32 from vector<1x1x1xf32>
    %384 = vector.broadcast %383 : f32 to vector<1x1xf32>
    %cst_216 = arith.constant 0.001953125 : f32
    %385 = vector.broadcast %cst_216 : f32 to vector<1x1xf32>
    %386 = arith.mulf %384, %385 : vector<1x1xf32>
    %c2_217 = arith.constant 2 : index
    %387 = memref.load %arg4[%c2_217] : memref<4xf32, #tpu.memory_space<smem>>
    %cst_218 = arith.constant 9.99999974E-6 : f32
    %388 = vector.broadcast %cst_218 : f32 to vector<1x1xf32>
    %389 = arith.addf %386, %388 : vector<1x1xf32>
    %390 = math.rsqrt %389 : vector<1x1xf32>
    %391 = vector.broadcast %387 : f32 to vector<1x1xf32>
    %392 = arith.mulf %391, %390 : vector<1x1xf32>
    %c2_219 = arith.constant 2 : index
    %393 = memref.load %arg5[%c2_219] : memref<4xf32, #tpu.memory_space<smem>>
    %394 = arith.mulf %372, %392 : vector<1x1xf32>
    %395 = vector.broadcast %393 : f32 to vector<1x1xf32>
    %396 = arith.subf %395, %394 : vector<1x1xf32>
    %c3_220 = arith.constant 3 : index
    %c0_221 = arith.constant 0 : index
    %397 = vector.load %arg8[%c3_220, %c0_221] : memref<8x256xf32, #tpu.memory_space<vmem>>, vector<1x256xf32>
    %c7_222 = arith.constant 7 : index
    %c0_223 = arith.constant 0 : index
    %398 = vector.load %arg8[%c7_222, %c0_223] : memref<8x256xf32, #tpu.memory_space<vmem>>, vector<1x256xf32>
    %399 = arith.addf %397, %398 : vector<1x256xf32>
    %400 = vector.shape_cast %399 : vector<1x256xf32> to vector<1x1x256xf32>
    %cst_224 = arith.constant dense<0.000000e+00> : vector<1xf32>
    %401 = vector.multi_reduction <add>, %400, %cst_224 [1, 2] : vector<1x1x256xf32> to vector<1xf32>
    %402 = vector.shape_cast %401 : vector<1xf32> to vector<1x1x1xf32>
    %403 = vector.extract %402[0, 0, 0] : f32 from vector<1x1x1xf32>
    %404 = vector.broadcast %403 : f32 to vector<1x1xf32>
    %cst_225 = arith.constant 0.001953125 : f32
    %405 = vector.broadcast %cst_225 : f32 to vector<1x1xf32>
    %406 = arith.mulf %404, %405 : vector<1x1xf32>
    %407 = vector.broadcast %406 : vector<1x1xf32> to vector<1x256xf32>
    %408 = arith.subf %397, %407 : vector<1x256xf32>
    %409 = arith.mulf %408, %408 : vector<1x256xf32>
    %410 = vector.broadcast %406 : vector<1x1xf32> to vector<1x256xf32>
    %411 = arith.subf %398, %410 : vector<1x256xf32>
    %412 = arith.mulf %411, %411 : vector<1x256xf32>
    %413 = arith.addf %409, %412 : vector<1x256xf32>
    %414 = vector.shape_cast %413 : vector<1x256xf32> to vector<1x1x256xf32>
    %cst_226 = arith.constant dense<0.000000e+00> : vector<1xf32>
    %415 = vector.multi_reduction <add>, %414, %cst_226 [1, 2] : vector<1x1x256xf32> to vector<1xf32>
    %416 = vector.shape_cast %415 : vector<1xf32> to vector<1x1x1xf32>
    %417 = vector.extract %416[0, 0, 0] : f32 from vector<1x1x1xf32>
    %418 = vector.broadcast %417 : f32 to vector<1x1xf32>
    %cst_227 = arith.constant 0.001953125 : f32
    %419 = vector.broadcast %cst_227 : f32 to vector<1x1xf32>
    %420 = arith.mulf %418, %419 : vector<1x1xf32>
    %c3_228 = arith.constant 3 : index
    %421 = memref.load %arg4[%c3_228] : memref<4xf32, #tpu.memory_space<smem>>
    %cst_229 = arith.constant 9.99999974E-6 : f32
    %422 = vector.broadcast %cst_229 : f32 to vector<1x1xf32>
    %423 = arith.addf %420, %422 : vector<1x1xf32>
    %424 = math.rsqrt %423 : vector<1x1xf32>
    %425 = vector.broadcast %421 : f32 to vector<1x1xf32>
    %426 = arith.mulf %425, %424 : vector<1x1xf32>
    %c3_230 = arith.constant 3 : index
    %427 = memref.load %arg5[%c3_230] : memref<4xf32, #tpu.memory_space<smem>>
    %428 = arith.mulf %406, %426 : vector<1x1xf32>
    %429 = vector.broadcast %427 : f32 to vector<1x1xf32>
    %430 = arith.subf %429, %428 : vector<1x1xf32>
    %431 = vector.broadcast %324 : vector<1x1xf32> to vector<1x256xf32>
    %432 = arith.mulf %295, %431 : vector<1x256xf32>
    %433 = vector.broadcast %328 : vector<1x1xf32> to vector<1x256xf32>
    %434 = arith.addf %432, %433 : vector<1x256xf32>
    %cst_231 = arith.constant 0.000000e+00 : f32
    %435 = vector.broadcast %cst_231 : f32 to vector<1x256xf32>
    %436 = arith.maximumf %434, %435 : vector<1x256xf32>
    %437 = vector.shape_cast %436 : vector<1x256xf32> to vector<1x256xf32>
    %438 = vector.broadcast %437 : vector<1x256xf32> to vector<4x256xf32>
    %c0_232 = arith.constant 0 : index
    %c0_233 = arith.constant 0 : index
    %c128_234 = arith.constant 128 : index
    %439 = vector.load %arg7[%c0_232, %c0_233, %c128_234] : memref<4x8x512xf32, #tpu.memory_space<vmem>>, vector<1x4x256xf32>
    %440 = vector.shape_cast %439 : vector<1x4x256xf32> to vector<4x256xf32>
    %441 = vector.shape_cast %438 : vector<4x256xf32> to vector<1x4x256xf32>
    tpu.vector_store %arg7[%c0_232, %c0_233, %c128_234], %441 {strides = array<i32>} : memref<4x8x512xf32, #tpu.memory_space<vmem>>, vector<1x4x256xf32>,
    %442 = vector.broadcast %324 : vector<1x1xf32> to vector<1x256xf32>
    %443 = arith.mulf %296, %442 : vector<1x256xf32>
    %444 = vector.broadcast %328 : vector<1x1xf32> to vector<1x256xf32>
    %445 = arith.addf %443, %444 : vector<1x256xf32>
    %cst_235 = arith.constant 0.000000e+00 : f32
    %446 = vector.broadcast %cst_235 : f32 to vector<1x256xf32>
    %447 = arith.maximumf %445, %446 : vector<1x256xf32>
    %448 = vector.shape_cast %447 : vector<1x256xf32> to vector<1x256xf32>
    %449 = vector.broadcast %448 : vector<1x256xf32> to vector<4x256xf32>
    %c0_236 = arith.constant 0 : index
    %c4_237 = arith.constant 4 : index
    %c128_238 = arith.constant 128 : index
    %450 = vector.load %arg7[%c0_236, %c4_237, %c128_238] : memref<4x8x512xf32, #tpu.memory_space<vmem>>, vector<1x4x256xf32>
    %451 = vector.shape_cast %450 : vector<1x4x256xf32> to vector<4x256xf32>
    %452 = vector.shape_cast %449 : vector<4x256xf32> to vector<1x4x256xf32>
    tpu.vector_store %arg7[%c0_236, %c4_237, %c128_238], %452 {strides = array<i32>} : memref<4x8x512xf32, #tpu.memory_space<vmem>>, vector<1x4x256xf32>,
    %453 = vector.broadcast %358 : vector<1x1xf32> to vector<1x256xf32>
    %454 = arith.mulf %329, %453 : vector<1x256xf32>
    %455 = vector.broadcast %362 : vector<1x1xf32> to vector<1x256xf32>
    %456 = arith.addf %454, %455 : vector<1x256xf32>
    %cst_239 = arith.constant 0.000000e+00 : f32
    %457 = vector.broadcast %cst_239 : f32 to vector<1x256xf32>
    %458 = arith.maximumf %456, %457 : vector<1x256xf32>
    %459 = vector.shape_cast %458 : vector<1x256xf32> to vector<1x256xf32>
    %460 = vector.broadcast %459 : vector<1x256xf32> to vector<4x256xf32>
    %c1_240 = arith.constant 1 : index
    %c0_241 = arith.constant 0 : index
    %c128_242 = arith.constant 128 : index
    %461 = vector.load %arg7[%c1_240, %c0_241, %c128_242] : memref<4x8x512xf32, #tpu.memory_space<vmem>>, vector<1x4x256xf32>
    %462 = vector.shape_cast %461 : vector<1x4x256xf32> to vector<4x256xf32>
    %463 = vector.shape_cast %460 : vector<4x256xf32> to vector<1x4x256xf32>
    tpu.vector_store %arg7[%c1_240, %c0_241, %c128_242], %463 {strides = array<i32>} : memref<4x8x512xf32, #tpu.memory_space<vmem>>, vector<1x4x256xf32>,
    %464 = vector.broadcast %358 : vector<1x1xf32> to vector<1x256xf32>
    %465 = arith.mulf %330, %464 : vector<1x256xf32>
    %466 = vector.broadcast %362 : vector<1x1xf32> to vector<1x256xf32>
    %467 = arith.addf %465, %466 : vector<1x256xf32>
    %cst_243 = arith.constant 0.000000e+00 : f32
    %468 = vector.broadcast %cst_243 : f32 to vector<1x256xf32>
    %469 = arith.maximumf %467, %468 : vector<1x256xf32>
    %470 = vector.shape_cast %469 : vector<1x256xf32> to vector<1x256xf32>
    %471 = vector.broadcast %470 : vector<1x256xf32> to vector<4x256xf32>
    %c1_244 = arith.constant 1 : index
    %c4_245 = arith.constant 4 : index
    %c128_246 = arith.constant 128 : index
    %472 = vector.load %arg7[%c1_244, %c4_245, %c128_246] : memref<4x8x512xf32, #tpu.memory_space<vmem>>, vector<1x4x256xf32>
    %473 = vector.shape_cast %472 : vector<1x4x256xf32> to vector<4x256xf32>
    %474 = vector.shape_cast %471 : vector<4x256xf32> to vector<1x4x256xf32>
    tpu.vector_store %arg7[%c1_244, %c4_245, %c128_246], %474 {strides = array<i32>} : memref<4x8x512xf32, #tpu.memory_space<vmem>>, vector<1x4x256xf32>,
    %475 = vector.broadcast %392 : vector<1x1xf32> to vector<1x256xf32>
    %476 = arith.mulf %363, %475 : vector<1x256xf32>
    %477 = vector.broadcast %396 : vector<1x1xf32> to vector<1x256xf32>
    %478 = arith.addf %476, %477 : vector<1x256xf32>
    %cst_247 = arith.constant 0.000000e+00 : f32
    %479 = vector.broadcast %cst_247 : f32 to vector<1x256xf32>
    %480 = arith.maximumf %478, %479 : vector<1x256xf32>
    %481 = vector.shape_cast %480 : vector<1x256xf32> to vector<1x256xf32>
    %482 = vector.broadcast %481 : vector<1x256xf32> to vector<4x256xf32>
    %c2_248 = arith.constant 2 : index
    %c0_249 = arith.constant 0 : index
    %c128_250 = arith.constant 128 : index
    %483 = vector.load %arg7[%c2_248, %c0_249, %c128_250] : memref<4x8x512xf32, #tpu.memory_space<vmem>>, vector<1x4x256xf32>
    %484 = vector.shape_cast %483 : vector<1x4x256xf32> to vector<4x256xf32>
    %485 = vector.shape_cast %482 : vector<4x256xf32> to vector<1x4x256xf32>
    tpu.vector_store %arg7[%c2_248, %c0_249, %c128_250], %485 {strides = array<i32>} : memref<4x8x512xf32, #tpu.memory_space<vmem>>, vector<1x4x256xf32>,
    %486 = vector.broadcast %392 : vector<1x1xf32> to vector<1x256xf32>
    %487 = arith.mulf %364, %486 : vector<1x256xf32>
    %488 = vector.broadcast %396 : vector<1x1xf32> to vector<1x256xf32>
    %489 = arith.addf %487, %488 : vector<1x256xf32>
    %cst_251 = arith.constant 0.000000e+00 : f32
    %490 = vector.broadcast %cst_251 : f32 to vector<1x256xf32>
    %491 = arith.maximumf %489, %490 : vector<1x256xf32>
    %492 = vector.shape_cast %491 : vector<1x256xf32> to vector<1x256xf32>
    %493 = vector.broadcast %492 : vector<1x256xf32> to vector<4x256xf32>
    %c2_252 = arith.constant 2 : index
    %c4_253 = arith.constant 4 : index
    %c128_254 = arith.constant 128 : index
    %494 = vector.load %arg7[%c2_252, %c4_253, %c128_254] : memref<4x8x512xf32, #tpu.memory_space<vmem>>, vector<1x4x256xf32>
    %495 = vector.shape_cast %494 : vector<1x4x256xf32> to vector<4x256xf32>
    %496 = vector.shape_cast %493 : vector<4x256xf32> to vector<1x4x256xf32>
    tpu.vector_store %arg7[%c2_252, %c4_253, %c128_254], %496 {strides = array<i32>} : memref<4x8x512xf32, #tpu.memory_space<vmem>>, vector<1x4x256xf32>,
    %497 = vector.broadcast %426 : vector<1x1xf32> to vector<1x256xf32>
    %498 = arith.mulf %397, %497 : vector<1x256xf32>
    %499 = vector.broadcast %430 : vector<1x1xf32> to vector<1x256xf32>
    %500 = arith.addf %498, %499 : vector<1x256xf32>
    %cst_255 = arith.constant 0.000000e+00 : f32
    %501 = vector.broadcast %cst_255 : f32 to vector<1x256xf32>
    %502 = arith.maximumf %500, %501 : vector<1x256xf32>
    %503 = vector.shape_cast %502 : vector<1x256xf32> to vector<1x256xf32>
    %504 = vector.broadcast %503 : vector<1x256xf32> to vector<4x256xf32>
    %c3_256 = arith.constant 3 : index
    %c0_257 = arith.constant 0 : index
    %c128_258 = arith.constant 128 : index
    %505 = vector.load %arg7[%c3_256, %c0_257, %c128_258] : memref<4x8x512xf32, #tpu.memory_space<vmem>>, vector<1x4x256xf32>
    %506 = vector.shape_cast %505 : vector<1x4x256xf32> to vector<4x256xf32>
    %507 = vector.shape_cast %504 : vector<4x256xf32> to vector<1x4x256xf32>
    tpu.vector_store %arg7[%c3_256, %c0_257, %c128_258], %507 {strides = array<i32>} : memref<4x8x512xf32, #tpu.memory_space<vmem>>, vector<1x4x256xf32>,
    %508 = vector.broadcast %426 : vector<1x1xf32> to vector<1x256xf32>
    %509 = arith.mulf %398, %508 : vector<1x256xf32>
    %510 = vector.broadcast %430 : vector<1x1xf32> to vector<1x256xf32>
    %511 = arith.addf %509, %510 : vector<1x256xf32>
    %cst_259 = arith.constant 0.000000e+00 : f32
    %512 = vector.broadcast %cst_259 : f32 to vector<1x256xf32>
    %513 = arith.maximumf %511, %512 : vector<1x256xf32>
    %514 = vector.shape_cast %513 : vector<1x256xf32> to vector<1x256xf32>
    %515 = vector.broadcast %514 : vector<1x256xf32> to vector<4x256xf32>
    %c3_260 = arith.constant 3 : index
    %c4_261 = arith.constant 4 : index
    %c128_262 = arith.constant 128 : index
    %516 = vector.load %arg7[%c3_260, %c4_261, %c128_262] : memref<4x8x512xf32, #tpu.memory_space<vmem>>, vector<1x4x256xf32>
    %517 = vector.shape_cast %516 : vector<1x4x256xf32> to vector<4x256xf32>
    %518 = vector.shape_cast %515 : vector<4x256xf32> to vector<1x4x256xf32>
    tpu.vector_store %arg7[%c3_260, %c4_261, %c128_262], %518 {strides = array<i32>} : memref<4x8x512xf32, #tpu.memory_space<vmem>>, vector<1x4x256xf32>,
    %cst_263 = arith.constant 0.000000e+00 : f32
    %519 = vector.broadcast %cst_263 : f32 to vector<8x256xf32>
    %c0_264 = arith.constant 0 : index
    %c0_265 = arith.constant 0 : index
    %c111_266 = arith.constant 111 : index
    %520 = vector.load %arg7[%c0_264, %c0_265, %c111_266] : memref<4x8x512xf32, #tpu.memory_space<vmem>>, vector<1x8x256xf32>
    %521 = vector.shape_cast %520 : vector<1x8x256xf32> to vector<8x256xf32>
    %c0_267 = arith.constant 0 : index
    %c0_268 = arith.constant 0 : index
    %522 = vector.load %arg2[%c0_267, %c0_268] : memref<8x36xf32, #tpu.memory_space<vmem>>, vector<8x1xf32>
    %523 = vector.broadcast %522 : vector<8x1xf32> to vector<8x256xf32>
    %524 = arith.mulf %523, %521 : vector<8x256xf32>
    %525 = arith.addf %519, %524 : vector<8x256xf32>
    %c0_269 = arith.constant 0 : index
    %c0_270 = arith.constant 0 : index
    %c112_271 = arith.constant 112 : index
    %526 = vector.load %arg7[%c0_269, %c0_270, %c112_271] : memref<4x8x512xf32, #tpu.memory_space<vmem>>, vector<1x8x256xf32>
    %527 = vector.shape_cast %526 : vector<1x8x256xf32> to vector<8x256xf32>
    %c0_272 = arith.constant 0 : index
    %c1_273 = arith.constant 1 : index
    %528 = vector.load %arg2[%c0_272, %c1_273] : memref<8x36xf32, #tpu.memory_space<vmem>>, vector<8x1xf32>
    %529 = vector.broadcast %528 : vector<8x1xf32> to vector<8x256xf32>
    %530 = arith.mulf %529, %527 : vector<8x256xf32>
    %531 = arith.addf %519, %530 : vector<8x256xf32>
    %c0_274 = arith.constant 0 : index
    %c0_275 = arith.constant 0 : index
    %c113_276 = arith.constant 113 : index
    %532 = vector.load %arg7[%c0_274, %c0_275, %c113_276] : memref<4x8x512xf32, #tpu.memory_space<vmem>>, vector<1x8x256xf32>
    %533 = vector.shape_cast %532 : vector<1x8x256xf32> to vector<8x256xf32>
    %c0_277 = arith.constant 0 : index
    %c2_278 = arith.constant 2 : index
    %534 = vector.load %arg2[%c0_277, %c2_278] : memref<8x36xf32, #tpu.memory_space<vmem>>, vector<8x1xf32>
    %535 = vector.broadcast %534 : vector<8x1xf32> to vector<8x256xf32>
    %536 = arith.mulf %535, %533 : vector<8x256xf32>
    %537 = arith.addf %519, %536 : vector<8x256xf32>
    %c0_279 = arith.constant 0 : index
    %c0_280 = arith.constant 0 : index
    %c127_281 = arith.constant 127 : index
    %538 = vector.load %arg7[%c0_279, %c0_280, %c127_281] : memref<4x8x512xf32, #tpu.memory_space<vmem>>, vector<1x8x256xf32>
    %539 = vector.shape_cast %538 : vector<1x8x256xf32> to vector<8x256xf32>
    %c0_282 = arith.constant 0 : index
    %c3_283 = arith.constant 3 : index
    %540 = vector.load %arg2[%c0_282, %c3_283] : memref<8x36xf32, #tpu.memory_space<vmem>>, vector<8x1xf32>
    %541 = vector.broadcast %540 : vector<8x1xf32> to vector<8x256xf32>
    %542 = arith.mulf %541, %539 : vector<8x256xf32>
    %543 = arith.addf %525, %542 : vector<8x256xf32>
    %c0_284 = arith.constant 0 : index
    %c0_285 = arith.constant 0 : index
    %c128_286 = arith.constant 128 : index
    %544 = vector.load %arg7[%c0_284, %c0_285, %c128_286] : memref<4x8x512xf32, #tpu.memory_space<vmem>>, vector<1x8x256xf32>
    %545 = vector.shape_cast %544 : vector<1x8x256xf32> to vector<8x256xf32>
    %c0_287 = arith.constant 0 : index
    %c4_288 = arith.constant 4 : index
    %546 = vector.load %arg2[%c0_287, %c4_288] : memref<8x36xf32, #tpu.memory_space<vmem>>, vector<8x1xf32>
    %547 = vector.broadcast %546 : vector<8x1xf32> to vector<8x256xf32>
    %548 = arith.mulf %547, %545 : vector<8x256xf32>
    %549 = arith.addf %531, %548 : vector<8x256xf32>
    %c0_289 = arith.constant 0 : index
    %c0_290 = arith.constant 0 : index
    %c129_291 = arith.constant 129 : index
    %550 = vector.load %arg7[%c0_289, %c0_290, %c129_291] : memref<4x8x512xf32, #tpu.memory_space<vmem>>, vector<1x8x256xf32>
    %551 = vector.shape_cast %550 : vector<1x8x256xf32> to vector<8x256xf32>
    %c0_292 = arith.constant 0 : index
    %c5_293 = arith.constant 5 : index
    %552 = vector.load %arg2[%c0_292, %c5_293] : memref<8x36xf32, #tpu.memory_space<vmem>>, vector<8x1xf32>
    %553 = vector.broadcast %552 : vector<8x1xf32> to vector<8x256xf32>
    %554 = arith.mulf %553, %551 : vector<8x256xf32>
    %555 = arith.addf %537, %554 : vector<8x256xf32>
    %c0_294 = arith.constant 0 : index
    %c0_295 = arith.constant 0 : index
    %c143_296 = arith.constant 143 : index
    %556 = vector.load %arg7[%c0_294, %c0_295, %c143_296] : memref<4x8x512xf32, #tpu.memory_space<vmem>>, vector<1x8x256xf32>
    %557 = vector.shape_cast %556 : vector<1x8x256xf32> to vector<8x256xf32>
    %c0_297 = arith.constant 0 : index
    %c6_298 = arith.constant 6 : index
    %558 = vector.load %arg2[%c0_297, %c6_298] : memref<8x36xf32, #tpu.memory_space<vmem>>, vector<8x1xf32>
    %559 = vector.broadcast %558 : vector<8x1xf32> to vector<8x256xf32>
    %560 = arith.mulf %559, %557 : vector<8x256xf32>
    %561 = arith.addf %543, %560 : vector<8x256xf32>
    %c0_299 = arith.constant 0 : index
    %c0_300 = arith.constant 0 : index
    %c144_301 = arith.constant 144 : index
    %562 = vector.load %arg7[%c0_299, %c0_300, %c144_301] : memref<4x8x512xf32, #tpu.memory_space<vmem>>, vector<1x8x256xf32>
    %563 = vector.shape_cast %562 : vector<1x8x256xf32> to vector<8x256xf32>
    %c0_302 = arith.constant 0 : index
    %c7_303 = arith.constant 7 : index
    %564 = vector.load %arg2[%c0_302, %c7_303] : memref<8x36xf32, #tpu.memory_space<vmem>>, vector<8x1xf32>
    %565 = vector.broadcast %564 : vector<8x1xf32> to vector<8x256xf32>
    %566 = arith.mulf %565, %563 : vector<8x256xf32>
    %567 = arith.addf %549, %566 : vector<8x256xf32>
    %c0_304 = arith.constant 0 : index
    %c0_305 = arith.constant 0 : index
    %c145_306 = arith.constant 145 : index
    %568 = vector.load %arg7[%c0_304, %c0_305, %c145_306] : memref<4x8x512xf32, #tpu.memory_space<vmem>>, vector<1x8x256xf32>
    %569 = vector.shape_cast %568 : vector<1x8x256xf32> to vector<8x256xf32>
    %c0_307 = arith.constant 0 : index
    %c8_308 = arith.constant 8 : index
    %570 = vector.load %arg2[%c0_307, %c8_308] : memref<8x36xf32, #tpu.memory_space<vmem>>, vector<8x1xf32>
    %571 = vector.broadcast %570 : vector<8x1xf32> to vector<8x256xf32>
    %572 = arith.mulf %571, %569 : vector<8x256xf32>
    %573 = arith.addf %555, %572 : vector<8x256xf32>
    %c1_309 = arith.constant 1 : index
    %c0_310 = arith.constant 0 : index
    %c111_311 = arith.constant 111 : index
    %574 = vector.load %arg7[%c1_309, %c0_310, %c111_311] : memref<4x8x512xf32, #tpu.memory_space<vmem>>, vector<1x8x256xf32>
    %575 = vector.shape_cast %574 : vector<1x8x256xf32> to vector<8x256xf32>
    %c0_312 = arith.constant 0 : index
    %c9_313 = arith.constant 9 : index
    %576 = vector.load %arg2[%c0_312, %c9_313] : memref<8x36xf32, #tpu.memory_space<vmem>>, vector<8x1xf32>
    %577 = vector.broadcast %576 : vector<8x1xf32> to vector<8x256xf32>
    %578 = arith.mulf %577, %575 : vector<8x256xf32>
    %579 = arith.addf %561, %578 : vector<8x256xf32>
    %c1_314 = arith.constant 1 : index
    %c0_315 = arith.constant 0 : index
    %c112_316 = arith.constant 112 : index
    %580 = vector.load %arg7[%c1_314, %c0_315, %c112_316] : memref<4x8x512xf32, #tpu.memory_space<vmem>>, vector<1x8x256xf32>
    %581 = vector.shape_cast %580 : vector<1x8x256xf32> to vector<8x256xf32>
    %c0_317 = arith.constant 0 : index
    %c10_318 = arith.constant 10 : index
    %582 = vector.load %arg2[%c0_317, %c10_318] : memref<8x36xf32, #tpu.memory_space<vmem>>, vector<8x1xf32>
    %583 = vector.broadcast %582 : vector<8x1xf32> to vector<8x256xf32>
    %584 = arith.mulf %583, %581 : vector<8x256xf32>
    %585 = arith.addf %567, %584 : vector<8x256xf32>
    %c1_319 = arith.constant 1 : index
    %c0_320 = arith.constant 0 : index
    %c113_321 = arith.constant 113 : index
    %586 = vector.load %arg7[%c1_319, %c0_320, %c113_321] : memref<4x8x512xf32, #tpu.memory_space<vmem>>, vector<1x8x256xf32>
    %587 = vector.shape_cast %586 : vector<1x8x256xf32> to vector<8x256xf32>
    %c0_322 = arith.constant 0 : index
    %c11_323 = arith.constant 11 : index
    %588 = vector.load %arg2[%c0_322, %c11_323] : memref<8x36xf32, #tpu.memory_space<vmem>>, vector<8x1xf32>
    %589 = vector.broadcast %588 : vector<8x1xf32> to vector<8x256xf32>
    %590 = arith.mulf %589, %587 : vector<8x256xf32>
    %591 = arith.addf %573, %590 : vector<8x256xf32>
    %c1_324 = arith.constant 1 : index
    %c0_325 = arith.constant 0 : index
    %c127_326 = arith.constant 127 : index
    %592 = vector.load %arg7[%c1_324, %c0_325, %c127_326] : memref<4x8x512xf32, #tpu.memory_space<vmem>>, vector<1x8x256xf32>
    %593 = vector.shape_cast %592 : vector<1x8x256xf32> to vector<8x256xf32>
    %c0_327 = arith.constant 0 : index
    %c12_328 = arith.constant 12 : index
    %594 = vector.load %arg2[%c0_327, %c12_328] : memref<8x36xf32, #tpu.memory_space<vmem>>, vector<8x1xf32>
    %595 = vector.broadcast %594 : vector<8x1xf32> to vector<8x256xf32>
    %596 = arith.mulf %595, %593 : vector<8x256xf32>
    %597 = arith.addf %579, %596 : vector<8x256xf32>
    %c1_329 = arith.constant 1 : index
    %c0_330 = arith.constant 0 : index
    %c128_331 = arith.constant 128 : index
    %598 = vector.load %arg7[%c1_329, %c0_330, %c128_331] : memref<4x8x512xf32, #tpu.memory_space<vmem>>, vector<1x8x256xf32>
    %599 = vector.shape_cast %598 : vector<1x8x256xf32> to vector<8x256xf32>
    %c0_332 = arith.constant 0 : index
    %c13_333 = arith.constant 13 : index
    %600 = vector.load %arg2[%c0_332, %c13_333] : memref<8x36xf32, #tpu.memory_space<vmem>>, vector<8x1xf32>
    %601 = vector.broadcast %600 : vector<8x1xf32> to vector<8x256xf32>
    %602 = arith.mulf %601, %599 : vector<8x256xf32>
    %603 = arith.addf %585, %602 : vector<8x256xf32>
    %c1_334 = arith.constant 1 : index
    %c0_335 = arith.constant 0 : index
    %c129_336 = arith.constant 129 : index
    %604 = vector.load %arg7[%c1_334, %c0_335, %c129_336] : memref<4x8x512xf32, #tpu.memory_space<vmem>>, vector<1x8x256xf32>
    %605 = vector.shape_cast %604 : vector<1x8x256xf32> to vector<8x256xf32>
    %c0_337 = arith.constant 0 : index
    %c14_338 = arith.constant 14 : index
    %606 = vector.load %arg2[%c0_337, %c14_338] : memref<8x36xf32, #tpu.memory_space<vmem>>, vector<8x1xf32>
    %607 = vector.broadcast %606 : vector<8x1xf32> to vector<8x256xf32>
    %608 = arith.mulf %607, %605 : vector<8x256xf32>
    %609 = arith.addf %591, %608 : vector<8x256xf32>
    %c1_339 = arith.constant 1 : index
    %c0_340 = arith.constant 0 : index
    %c143_341 = arith.constant 143 : index
    %610 = vector.load %arg7[%c1_339, %c0_340, %c143_341] : memref<4x8x512xf32, #tpu.memory_space<vmem>>, vector<1x8x256xf32>
    %611 = vector.shape_cast %610 : vector<1x8x256xf32> to vector<8x256xf32>
    %c0_342 = arith.constant 0 : index
    %c15_343 = arith.constant 15 : index
    %612 = vector.load %arg2[%c0_342, %c15_343] : memref<8x36xf32, #tpu.memory_space<vmem>>, vector<8x1xf32>
    %613 = vector.broadcast %612 : vector<8x1xf32> to vector<8x256xf32>
    %614 = arith.mulf %613, %611 : vector<8x256xf32>
    %615 = arith.addf %597, %614 : vector<8x256xf32>
    %c1_344 = arith.constant 1 : index
    %c0_345 = arith.constant 0 : index
    %c144_346 = arith.constant 144 : index
    %616 = vector.load %arg7[%c1_344, %c0_345, %c144_346] : memref<4x8x512xf32, #tpu.memory_space<vmem>>, vector<1x8x256xf32>
    %617 = vector.shape_cast %616 : vector<1x8x256xf32> to vector<8x256xf32>
    %c0_347 = arith.constant 0 : index
    %c16_348 = arith.constant 16 : index
    %618 = vector.load %arg2[%c0_347, %c16_348] : memref<8x36xf32, #tpu.memory_space<vmem>>, vector<8x1xf32>
    %619 = vector.broadcast %618 : vector<8x1xf32> to vector<8x256xf32>
    %620 = arith.mulf %619, %617 : vector<8x256xf32>
    %621 = arith.addf %603, %620 : vector<8x256xf32>
    %c1_349 = arith.constant 1 : index
    %c0_350 = arith.constant 0 : index
    %c145_351 = arith.constant 145 : index
    %622 = vector.load %arg7[%c1_349, %c0_350, %c145_351] : memref<4x8x512xf32, #tpu.memory_space<vmem>>, vector<1x8x256xf32>
    %623 = vector.shape_cast %622 : vector<1x8x256xf32> to vector<8x256xf32>
    %c0_352 = arith.constant 0 : index
    %c17_353 = arith.constant 17 : index
    %624 = vector.load %arg2[%c0_352, %c17_353] : memref<8x36xf32, #tpu.memory_space<vmem>>, vector<8x1xf32>
    %625 = vector.broadcast %624 : vector<8x1xf32> to vector<8x256xf32>
    %626 = arith.mulf %625, %623 : vector<8x256xf32>
    %627 = arith.addf %609, %626 : vector<8x256xf32>
    %c2_354 = arith.constant 2 : index
    %c0_355 = arith.constant 0 : index
    %c111_356 = arith.constant 111 : index
    %628 = vector.load %arg7[%c2_354, %c0_355, %c111_356] : memref<4x8x512xf32, #tpu.memory_space<vmem>>, vector<1x8x256xf32>
    %629 = vector.shape_cast %628 : vector<1x8x256xf32> to vector<8x256xf32>
    %c0_357 = arith.constant 0 : index
    %c18_358 = arith.constant 18 : index
    %630 = vector.load %arg2[%c0_357, %c18_358] : memref<8x36xf32, #tpu.memory_space<vmem>>, vector<8x1xf32>
    %631 = vector.broadcast %630 : vector<8x1xf32> to vector<8x256xf32>
    %632 = arith.mulf %631, %629 : vector<8x256xf32>
    %633 = arith.addf %615, %632 : vector<8x256xf32>
    %c2_359 = arith.constant 2 : index
    %c0_360 = arith.constant 0 : index
    %c112_361 = arith.constant 112 : index
    %634 = vector.load %arg7[%c2_359, %c0_360, %c112_361] : memref<4x8x512xf32, #tpu.memory_space<vmem>>, vector<1x8x256xf32>
    %635 = vector.shape_cast %634 : vector<1x8x256xf32> to vector<8x256xf32>
    %c0_362 = arith.constant 0 : index
    %c19_363 = arith.constant 19 : index
    %636 = vector.load %arg2[%c0_362, %c19_363] : memref<8x36xf32, #tpu.memory_space<vmem>>, vector<8x1xf32>
    %637 = vector.broadcast %636 : vector<8x1xf32> to vector<8x256xf32>
    %638 = arith.mulf %637, %635 : vector<8x256xf32>
    %639 = arith.addf %621, %638 : vector<8x256xf32>
    %c2_364 = arith.constant 2 : index
    %c0_365 = arith.constant 0 : index
    %c113_366 = arith.constant 113 : index
    %640 = vector.load %arg7[%c2_364, %c0_365, %c113_366] : memref<4x8x512xf32, #tpu.memory_space<vmem>>, vector<1x8x256xf32>
    %641 = vector.shape_cast %640 : vector<1x8x256xf32> to vector<8x256xf32>
    %c0_367 = arith.constant 0 : index
    %c20_368 = arith.constant 20 : index
    %642 = vector.load %arg2[%c0_367, %c20_368] : memref<8x36xf32, #tpu.memory_space<vmem>>, vector<8x1xf32>
    %643 = vector.broadcast %642 : vector<8x1xf32> to vector<8x256xf32>
    %644 = arith.mulf %643, %641 : vector<8x256xf32>
    %645 = arith.addf %627, %644 : vector<8x256xf32>
    %c2_369 = arith.constant 2 : index
    %c0_370 = arith.constant 0 : index
    %c127_371 = arith.constant 127 : index
    %646 = vector.load %arg7[%c2_369, %c0_370, %c127_371] : memref<4x8x512xf32, #tpu.memory_space<vmem>>, vector<1x8x256xf32>
    %647 = vector.shape_cast %646 : vector<1x8x256xf32> to vector<8x256xf32>
    %c0_372 = arith.constant 0 : index
    %c21_373 = arith.constant 21 : index
    %648 = vector.load %arg2[%c0_372, %c21_373] : memref<8x36xf32, #tpu.memory_space<vmem>>, vector<8x1xf32>
    %649 = vector.broadcast %648 : vector<8x1xf32> to vector<8x256xf32>
    %650 = arith.mulf %649, %647 : vector<8x256xf32>
    %651 = arith.addf %633, %650 : vector<8x256xf32>
    %c2_374 = arith.constant 2 : index
    %c0_375 = arith.constant 0 : index
    %c128_376 = arith.constant 128 : index
    %652 = vector.load %arg7[%c2_374, %c0_375, %c128_376] : memref<4x8x512xf32, #tpu.memory_space<vmem>>, vector<1x8x256xf32>
    %653 = vector.shape_cast %652 : vector<1x8x256xf32> to vector<8x256xf32>
    %c0_377 = arith.constant 0 : index
    %c22_378 = arith.constant 22 : index
    %654 = vector.load %arg2[%c0_377, %c22_378] : memref<8x36xf32, #tpu.memory_space<vmem>>, vector<8x1xf32>
    %655 = vector.broadcast %654 : vector<8x1xf32> to vector<8x256xf32>
    %656 = arith.mulf %655, %653 : vector<8x256xf32>
    %657 = arith.addf %639, %656 : vector<8x256xf32>
    %c2_379 = arith.constant 2 : index
    %c0_380 = arith.constant 0 : index
    %c129_381 = arith.constant 129 : index
    %658 = vector.load %arg7[%c2_379, %c0_380, %c129_381] : memref<4x8x512xf32, #tpu.memory_space<vmem>>, vector<1x8x256xf32>
    %659 = vector.shape_cast %658 : vector<1x8x256xf32> to vector<8x256xf32>
    %c0_382 = arith.constant 0 : index
    %c23_383 = arith.constant 23 : index
    %660 = vector.load %arg2[%c0_382, %c23_383] : memref<8x36xf32, #tpu.memory_space<vmem>>, vector<8x1xf32>
    %661 = vector.broadcast %660 : vector<8x1xf32> to vector<8x256xf32>
    %662 = arith.mulf %661, %659 : vector<8x256xf32>
    %663 = arith.addf %645, %662 : vector<8x256xf32>
    %c2_384 = arith.constant 2 : index
    %c0_385 = arith.constant 0 : index
    %c143_386 = arith.constant 143 : index
    %664 = vector.load %arg7[%c2_384, %c0_385, %c143_386] : memref<4x8x512xf32, #tpu.memory_space<vmem>>, vector<1x8x256xf32>
    %665 = vector.shape_cast %664 : vector<1x8x256xf32> to vector<8x256xf32>
    %c0_387 = arith.constant 0 : index
    %c24_388 = arith.constant 24 : index
    %666 = vector.load %arg2[%c0_387, %c24_388] : memref<8x36xf32, #tpu.memory_space<vmem>>, vector<8x1xf32>
    %667 = vector.broadcast %666 : vector<8x1xf32> to vector<8x256xf32>
    %668 = arith.mulf %667, %665 : vector<8x256xf32>
    %669 = arith.addf %651, %668 : vector<8x256xf32>
    %c2_389 = arith.constant 2 : index
    %c0_390 = arith.constant 0 : index
    %c144_391 = arith.constant 144 : index
    %670 = vector.load %arg7[%c2_389, %c0_390, %c144_391] : memref<4x8x512xf32, #tpu.memory_space<vmem>>, vector<1x8x256xf32>
    %671 = vector.shape_cast %670 : vector<1x8x256xf32> to vector<8x256xf32>
    %c0_392 = arith.constant 0 : index
    %c25_393 = arith.constant 25 : index
    %672 = vector.load %arg2[%c0_392, %c25_393] : memref<8x36xf32, #tpu.memory_space<vmem>>, vector<8x1xf32>
    %673 = vector.broadcast %672 : vector<8x1xf32> to vector<8x256xf32>
    %674 = arith.mulf %673, %671 : vector<8x256xf32>
    %675 = arith.addf %657, %674 : vector<8x256xf32>
    %c2_394 = arith.constant 2 : index
    %c0_395 = arith.constant 0 : index
    %c145_396 = arith.constant 145 : index
    %676 = vector.load %arg7[%c2_394, %c0_395, %c145_396] : memref<4x8x512xf32, #tpu.memory_space<vmem>>, vector<1x8x256xf32>
    %677 = vector.shape_cast %676 : vector<1x8x256xf32> to vector<8x256xf32>
    %c0_397 = arith.constant 0 : index
    %c26_398 = arith.constant 26 : index
    %678 = vector.load %arg2[%c0_397, %c26_398] : memref<8x36xf32, #tpu.memory_space<vmem>>, vector<8x1xf32>
    %679 = vector.broadcast %678 : vector<8x1xf32> to vector<8x256xf32>
    %680 = arith.mulf %679, %677 : vector<8x256xf32>
    %681 = arith.addf %663, %680 : vector<8x256xf32>
    %c3_399 = arith.constant 3 : index
    %c0_400 = arith.constant 0 : index
    %c111_401 = arith.constant 111 : index
    %682 = vector.load %arg7[%c3_399, %c0_400, %c111_401] : memref<4x8x512xf32, #tpu.memory_space<vmem>>, vector<1x8x256xf32>
    %683 = vector.shape_cast %682 : vector<1x8x256xf32> to vector<8x256xf32>
    %c0_402 = arith.constant 0 : index
    %c27_403 = arith.constant 27 : index
    %684 = vector.load %arg2[%c0_402, %c27_403] : memref<8x36xf32, #tpu.memory_space<vmem>>, vector<8x1xf32>
    %685 = vector.broadcast %684 : vector<8x1xf32> to vector<8x256xf32>
    %686 = arith.mulf %685, %683 : vector<8x256xf32>
    %687 = arith.addf %669, %686 : vector<8x256xf32>
    %c3_404 = arith.constant 3 : index
    %c0_405 = arith.constant 0 : index
    %c112_406 = arith.constant 112 : index
    %688 = vector.load %arg7[%c3_404, %c0_405, %c112_406] : memref<4x8x512xf32, #tpu.memory_space<vmem>>, vector<1x8x256xf32>
    %689 = vector.shape_cast %688 : vector<1x8x256xf32> to vector<8x256xf32>
    %c0_407 = arith.constant 0 : index
    %c28_408 = arith.constant 28 : index
    %690 = vector.load %arg2[%c0_407, %c28_408] : memref<8x36xf32, #tpu.memory_space<vmem>>, vector<8x1xf32>
    %691 = vector.broadcast %690 : vector<8x1xf32> to vector<8x256xf32>
    %692 = arith.mulf %691, %689 : vector<8x256xf32>
    %693 = arith.addf %675, %692 : vector<8x256xf32>
    %c3_409 = arith.constant 3 : index
    %c0_410 = arith.constant 0 : index
    %c113_411 = arith.constant 113 : index
    %694 = vector.load %arg7[%c3_409, %c0_410, %c113_411] : memref<4x8x512xf32, #tpu.memory_space<vmem>>, vector<1x8x256xf32>
    %695 = vector.shape_cast %694 : vector<1x8x256xf32> to vector<8x256xf32>
    %c0_412 = arith.constant 0 : index
    %c29_413 = arith.constant 29 : index
    %696 = vector.load %arg2[%c0_412, %c29_413] : memref<8x36xf32, #tpu.memory_space<vmem>>, vector<8x1xf32>
    %697 = vector.broadcast %696 : vector<8x1xf32> to vector<8x256xf32>
    %698 = arith.mulf %697, %695 : vector<8x256xf32>
    %699 = arith.addf %681, %698 : vector<8x256xf32>
    %c3_414 = arith.constant 3 : index
    %c0_415 = arith.constant 0 : index
    %c127_416 = arith.constant 127 : index
    %700 = vector.load %arg7[%c3_414, %c0_415, %c127_416] : memref<4x8x512xf32, #tpu.memory_space<vmem>>, vector<1x8x256xf32>
    %701 = vector.shape_cast %700 : vector<1x8x256xf32> to vector<8x256xf32>
    %c0_417 = arith.constant 0 : index
    %c30_418 = arith.constant 30 : index
    %702 = vector.load %arg2[%c0_417, %c30_418] : memref<8x36xf32, #tpu.memory_space<vmem>>, vector<8x1xf32>
    %703 = vector.broadcast %702 : vector<8x1xf32> to vector<8x256xf32>
    %704 = arith.mulf %703, %701 : vector<8x256xf32>
    %705 = arith.addf %687, %704 : vector<8x256xf32>
    %c3_419 = arith.constant 3 : index
    %c0_420 = arith.constant 0 : index
    %c128_421 = arith.constant 128 : index
    %706 = vector.load %arg7[%c3_419, %c0_420, %c128_421] : memref<4x8x512xf32, #tpu.memory_space<vmem>>, vector<1x8x256xf32>
    %707 = vector.shape_cast %706 : vector<1x8x256xf32> to vector<8x256xf32>
    %c0_422 = arith.constant 0 : index
    %c31_423 = arith.constant 31 : index
    %708 = vector.load %arg2[%c0_422, %c31_423] : memref<8x36xf32, #tpu.memory_space<vmem>>, vector<8x1xf32>
    %709 = vector.broadcast %708 : vector<8x1xf32> to vector<8x256xf32>
    %710 = arith.mulf %709, %707 : vector<8x256xf32>
    %711 = arith.addf %693, %710 : vector<8x256xf32>
    %c3_424 = arith.constant 3 : index
    %c0_425 = arith.constant 0 : index
    %c129_426 = arith.constant 129 : index
    %712 = vector.load %arg7[%c3_424, %c0_425, %c129_426] : memref<4x8x512xf32, #tpu.memory_space<vmem>>, vector<1x8x256xf32>
    %713 = vector.shape_cast %712 : vector<1x8x256xf32> to vector<8x256xf32>
    %c0_427 = arith.constant 0 : index
    %c32_428 = arith.constant 32 : index
    %714 = vector.load %arg2[%c0_427, %c32_428] : memref<8x36xf32, #tpu.memory_space<vmem>>, vector<8x1xf32>
    %715 = vector.broadcast %714 : vector<8x1xf32> to vector<8x256xf32>
    %716 = arith.mulf %715, %713 : vector<8x256xf32>
    %717 = arith.addf %699, %716 : vector<8x256xf32>
    %c3_429 = arith.constant 3 : index
    %c0_430 = arith.constant 0 : index
    %c143_431 = arith.constant 143 : index
    %718 = vector.load %arg7[%c3_429, %c0_430, %c143_431] : memref<4x8x512xf32, #tpu.memory_space<vmem>>, vector<1x8x256xf32>
    %719 = vector.shape_cast %718 : vector<1x8x256xf32> to vector<8x256xf32>
    %c0_432 = arith.constant 0 : index
    %c33_433 = arith.constant 33 : index
    %720 = vector.load %arg2[%c0_432, %c33_433] : memref<8x36xf32, #tpu.memory_space<vmem>>, vector<8x1xf32>
    %721 = vector.broadcast %720 : vector<8x1xf32> to vector<8x256xf32>
    %722 = arith.mulf %721, %719 : vector<8x256xf32>
    %723 = arith.addf %705, %722 : vector<8x256xf32>
    %c3_434 = arith.constant 3 : index
    %c0_435 = arith.constant 0 : index
    %c144_436 = arith.constant 144 : index
    %724 = vector.load %arg7[%c3_434, %c0_435, %c144_436] : memref<4x8x512xf32, #tpu.memory_space<vmem>>, vector<1x8x256xf32>
    %725 = vector.shape_cast %724 : vector<1x8x256xf32> to vector<8x256xf32>
    %c0_437 = arith.constant 0 : index
    %c34_438 = arith.constant 34 : index
    %726 = vector.load %arg2[%c0_437, %c34_438] : memref<8x36xf32, #tpu.memory_space<vmem>>, vector<8x1xf32>
    %727 = vector.broadcast %726 : vector<8x1xf32> to vector<8x256xf32>
    %728 = arith.mulf %727, %725 : vector<8x256xf32>
    %729 = arith.addf %711, %728 : vector<8x256xf32>
    %c3_439 = arith.constant 3 : index
    %c0_440 = arith.constant 0 : index
    %c145_441 = arith.constant 145 : index
    %730 = vector.load %arg7[%c3_439, %c0_440, %c145_441] : memref<4x8x512xf32, #tpu.memory_space<vmem>>, vector<1x8x256xf32>
    %731 = vector.shape_cast %730 : vector<1x8x256xf32> to vector<8x256xf32>
    %c0_442 = arith.constant 0 : index
    %c35_443 = arith.constant 35 : index
    %732 = vector.load %arg2[%c0_442, %c35_443] : memref<8x36xf32, #tpu.memory_space<vmem>>, vector<8x1xf32>
    %733 = vector.broadcast %732 : vector<8x1xf32> to vector<8x256xf32>
    %734 = arith.mulf %733, %731 : vector<8x256xf32>
    %735 = arith.addf %717, %734 : vector<8x256xf32>
    %cst_444 = arith.constant 0.000000e+00 : f32
    %736 = vector.broadcast %cst_444 : f32 to vector<8x256xf32>
    %737 = arith.select %18, %723, %736 : vector<8x256xi1>, vector<8x256xf32>
    %738 = arith.addf %729, %737 : vector<8x256xf32>
    %cst_445 = arith.constant 0.000000e+00 : f32
    %739 = vector.broadcast %cst_445 : f32 to vector<8x256xf32>
    %740 = arith.select %20, %735, %739 : vector<8x256xi1>, vector<8x256xf32>
    %741 = arith.addf %738, %740 : vector<8x256xf32>
    %c0_446 = arith.constant 0 : index
    %c0_447 = arith.constant 0 : index
    %742 = vector.load %arg3[%c0_446, %c0_447] : memref<8x1xf32, #tpu.memory_space<vmem>>, vector<8x1xf32>
    %743 = vector.broadcast %742 : vector<8x1xf32> to vector<8x256xf32>
    %744 = arith.addf %741, %743 : vector<8x256xf32>
    %c0_448 = arith.constant 0 : index
    %c0_449 = arith.constant 0 : index
    %745 = vector.load %arg0[%c0_448, %c0_449] : memref<8x256xf32, #tpu.memory_space<vmem>>, vector<8x256xf32>
    %746 = arith.addf %744, %745 : vector<8x256xf32>
    %cst_450 = arith.constant 0.000000e+00 : f32
    %747 = vector.broadcast %cst_450 : f32 to vector<8x256xf32>
    %748 = arith.maximumf %746, %747 : vector<8x256xf32>
    %c0_451 = arith.constant 0 : index
    %c0_452 = arith.constant 0 : index
    %749 = vector.load %arg6[%c0_451, %c0_452] : memref<8x256xf32, #tpu.memory_space<vmem>>, vector<8x256xf32>
    tpu.vector_store %arg6[%c0_451, %c0_452], %748 {strides = array<i32>} : memref<8x256xf32, #tpu.memory_space<vmem>>, vector<8x256xf32>,
    return
  }
}

</mosaic_0001>

<bundles_post_ra>
// kernel: residual_block.1
= control target key start
LH: loop header
LB: loop body
LE: loop exit
PB: predicated region body
PF: predicated region fallthrough
CT: control target
= control target key end

     0   :  { %11 = vsyncpa [#allocation5], 0  ;;  %s3694_s0 = inlined_call_operand.vmem [shape: f32[8,256], index: 0, kind: input, shape index: {}]   ;;  %s3695_s1 = inlined_call_operand.vmem [shape: f32[8,36], index: 1, kind: input, shape index: {}]   ;;  %s3696_s2 = inlined_call_operand.vmem [shape: f32[8,36], index: 2, kind: input, shape index: {}]   ;;  %s3697_s3 = inlined_call_operand.vmem [shape: f32[8,1], index: 3, kind: input, shape index: {}]   ;;  %s3698_s4 = inlined_call_operand.vmem [shape: f32[4], index: 4, kind: input, shape index: {}]   ;;  %s3699_s5 = inlined_call_operand.vmem [shape: f32[4], index: 5, kind: input, shape index: {}]   ;;  %s3700_s6 = inlined_call_operand.vmem [shape: f32[8,256], index: 6, kind: output, shape index: {}]  }
   0x1   :  { %s27_s23 = sshll.u32 %s3698_s4, 4  ;;  %s28_s23 = int_to_ptr.vmem [resolvable:$true] %s27_s23 }
   0x2   :  { %12 = vsyncpa [#allocation7], 0  ;;  %s37_s26 = sshll.u32 %s3699_s5, 4  ;;  %s2366_s27 = scalar_lea.vmem %s28_s23, 16  ;;  %s38_s26 = int_to_ptr.vmem [resolvable:$true] %s37_s26 }
   0x3   :  { %p2367_p0 = scmp.ne.s32.totalorder %s28_s23, %s2366_s27  ;;  %p2371_p1 = scmp.lt.s32.totalorder %s28_s23, %s28_s23 }
   0x4   :  { %p2372_p2 = scmp.lt.s32.totalorder %s2366_s27, %s2366_s27 }
   0x6   :  { %p2373_p3 = por %p2372_p2, %p2371_p1 }
   0x8   :  { %p2374_p4 = pnand %p2373_p3, %p2367_p0 }
   0xa   :  { %2377 = shalt.err (!%p2374_p4)
}
   0xb   :  { %s2394_s28 = smov [#allocation4]   ;;  %s2378_s29 = scalar_lea.vmem %s38_s26, 16 }
   0xc   :  { %30 = dma.vmem_to_smem %s28_s23, 16, %s2394_s28, [#allocation5]  }
   0xd   :  { %p2379_p5 = scmp.ne.s32.totalorder %s38_s26, %s2378_s29  ;;  %p2383_p6 = scmp.lt.s32.totalorder %s38_s26, %s38_s26 }
   0xe   :  { %p2384_p7 = scmp.lt.s32.totalorder %s2378_s29, %s2378_s29 }
  0x10   :  { %p2385_p8 = por %p2384_p7, %p2383_p6 }
  0x12   :  { %p2386_p9 = pnand %p2385_p8, %p2379_p5 }
  0x14   :  { %2389 = shalt.err (!%p2386_p9)
}
  0x15   :  { %s2395_s4 = smov [#allocation6]  }
  0x16   :  { %40 = dma.vmem_to_smem %s38_s26, 16, %s2395_s4, [#allocation7]  }
  0x17   :  { %2390 = dma.done.wait [#allocation5], 16  }
  0x18   :  { %2391 = vsyncadd [#allocation5], 4294967280 }
  0x19   :  { %2392 = dma.done.wait [#allocation7], 16  }
  0x1a   :  { %2393 = vsyncadd [#allocation7], 4294967280 }
  0x1b   :  { %47 = sfence }
  0x1c   :  { %v2482_v0 = vld [vmem:[%s3695_s1] sm:$0xff]  ;;  %v3736_v1 = vmov 3   ;;  %v3728_v2 = vmov 6   ;;  %v3735_v3 = vmov 5   ;;  %v3727_v4 = vmov 8   ;;  %s2423_s23 = smov 112  }
  0x1d   :  { %3749 = vst [vmem:[#allocation10_spill] sm:$0xff] %v2482_v0  ;;  %2278 = vset.pattern.permute.xlu0 %v3736_v1  ;;  %2280 = vset.pattern.permute.xlu1 %v3728_v2  ;;  %v3734_v5 = vlaneseq  ;;  %v2400_v6 = vmov 0.0   ;;  %v95_v8 = vld [vmem:[%s3694_s0] ss:$8 sm:$0x3]  ;;  %v3726_v12 = vmov 12  }
  0x1e   :  { %253 = vperm.xlu0 %2278, %v2482_v0   ;;  %324 = vperm.xlu1 %2280, %v2482_v0   ;;  %79 = vst [vmem:[#allocation2] sm:$0xff] %v2400_v6  ;;  %80 = vst [vmem:[#allocation2 + $0x8] sm:$0xff] %v2400_v6  ;;  %v2205_v9 = vld [vmem:[%s3694_s0 + $0x4] ss:$8 sm:$0x3]  ;;  %v3725_v13 = vmov 14  }
  0x1f   :  { %81 = vst [vmem:[#allocation2 + $0x10] sm:$0xff] %v2400_v6  ;;  %84 = vst [vmem:[#allocation2 + $0x28] sm:$0xff] %v2400_v6  ;;  %v98_v7 = vshrl.u32 %v3734_v5, 7  ;;  %v2206_v17 = vld [vmem:[%s3694_s0 + $0x1] ss:$8 sm:$0x3] }
  0x20   :  { %85 = vst [vmem:[#allocation2 + $0x30] sm:$0xff] %v2400_v6  ;;  %88 = vst [vmem:[#allocation2 + $0x48] sm:$0xff] %v2400_v6  ;;  %v2207_v18 = vld [vmem:[%s3694_s0 + $0x5] ss:$8 sm:$0x3]  ;;  %v3724_v22 = vmov 15  }
  0x21   :  { %89 = vst [vmem:[#allocation2 + $0x50] sm:$0xff] %v2400_v6  ;;  %92 = vst [vmem:[#allocation2 + $0x68] sm:$0xff] %v2400_v6  ;;  %v2499_v10 = vsub.s32 0, %v98_v7  ;;  %v2501_v11 = vsub.s32 1, %v98_v7  ;;  %v3721_v23 = vmov 21   ;;  %v3723_v26 = vmov 17  }
  0x22   :  { %2279 = vset.pattern.permute.xlu0 %v3735_v3  ;;  %2281 = vset.pattern.permute.xlu1 %v3727_v4  ;;  %93 = vst [vmem:[#allocation2 + $0x70] sm:$0xff] %v2400_v6  ;;  %v3719_v27 = vmov 26   ;;  %v3733_v28 = vmov 23   ;;  %v3717_v29 = vmov 33   ;;  %v3720_v30 = vmov 24   ;;  %s2424_s24 = smov 96  }
  0x23   :  { %300 = vperm.xlu0 %2279, %v2482_v0   ;;  %373 = vperm.xlu1 %2281, %v2482_v0   ;;  %3750 = vst [vmem:[#allocation11_spill] sm:$0xff] %v2499_v10  ;;  %3751 = vst [vmem:[#allocation12_spill] sm:$0xff] %v2501_v11  ;;  %v100_v14 = vrot.slane %v95_v8, %v2499_v10  ;;  %v115_v15 = vrot.slane %v2205_v9, %v2499_v10  ;;  %v3714_v31 = vmov 2   ;;  %v2208_v32 = vld [vmem:[%s3694_s0 + $0x2] ss:$8 sm:$0x3] }
  0x24   :  { %v104_v16 = vrot.slane %v95_v8, %v2501_v11  ;;  %v119_v19 = vrot.slane %v2205_v9, %v2501_v11  ;;  %v130_v20 = vrot.slane %v2206_v17, %v2499_v10  ;;  %v146_v21 = vrot.slane %v2207_v18, %v2499_v10  ;;  %v2209_v33 = vld [vmem:[%s3694_s0 + $0x6] ss:$8 sm:$0x3]  ;;  %v2210_v43 = vld [vmem:[%s3694_s0 + $0x3] ss:$8 sm:$0x3] }
  0x25   :  { %107 = vst [vmem:[#allocation2 + $0x8] sm:$0xf] %v100_v14  ;;  %122 = vst [vmem:[#allocation2 + $0x8] sm:$0xf0] %v115_v15  ;;  %v134_v24 = vrot.slane %v2206_v17, %v2501_v11  ;;  %v150_v25 = vrot.slane %v2207_v18, %v2501_v11  ;;  %v161_v34 = vrot.slane %v2208_v32, %v2499_v10  ;;  %v3732_v36 = vmov 30   ;;  %s2433_s25 = smov 15  }
  0x26   :  { %108 = vst [vmem:[#allocation2 + $0x10] sm:$0xf] %v104_v16  ;;  %123 = vst [vmem:[#allocation2 + $0x10] sm:$0xf0] %v119_v19  ;;  %v177_v35 = vrot.slane %v2209_v33, %v2499_v10  ;;  %v3718_v37 = vmov 32   ;;  %v165_v38 = vrot.slane %v2208_v32, %v2501_v11  ;;  %v181_v39 = vrot.slane %v2209_v33, %v2501_v11  ;;  %s2434_s26 = smov 17  }
  0x27   :  { %2282 = vset.pattern.permute.xlu1 %v3726_v12  ;;  %2283 = vset.pattern.permute.xlu0 %v3725_v13  ;;  %138 = vst [vmem:[#allocation2 + $0x28] sm:$0xf] %v130_v20  ;;  %153 = vst [vmem:[#allocation2 + $0x28] sm:$0xf0] %v146_v21  ;;  %v3731_v40 = vmov 35   ;;  %v3715_v41 = vmov 0   ;;  %v192_v45 = vrot.slane %v2210_v43, %v2499_v10  ;;  %v196_v49 = vrot.slane %v2210_v43, %v2501_v11 }
  0x28   :  { %430 = vperm.xlu1 %2282, %v2482_v0   ;;  %476 = vperm.xlu0 %2283, %v2482_v0   ;;  %139 = vst [vmem:[#allocation2 + $0x30] sm:$0xf] %v134_v24  ;;  %154 = vst [vmem:[#allocation2 + $0x30] sm:$0xf0] %v150_v25  ;;  %v3730_v42 = vmov 9   ;;  %v3713_v47 = vmov 11  }
  0x29   :  { %169 = vst [vmem:[#allocation2 + $0x48] sm:$0xf] %v161_v34  ;;  %184 = vst [vmem:[#allocation2 + $0x48] sm:$0xf0] %v177_v35  ;;  %v3729_v48 = vmov 18   ;;  %v3712_v51 = vmov 20  }
  0x2a   :  { %170 = vst [vmem:[#allocation2 + $0x50] sm:$0xf] %v165_v38  ;;  %185 = vst [vmem:[#allocation2 + $0x50] sm:$0xf0] %v181_v39  ;;  %v3711_v52 = vmov 27   ;;  %v3710_v53 = vmov 29  }
  0x2b   :  { %v2211_v44 = vld [vmem:[%s3694_s0 + $0x7] ss:$8 sm:$0x3]  ;;  %200 = vst [vmem:[#allocation2 + $0x68] sm:$0xf] %v192_v45  ;;  %v3722_v54 = vmov 4  }
  0x2c   :  { %2284 = vset.pattern.permute.xlu1 %v3724_v22  ;;  %2286 = vset.pattern.permute.xlu0 %v3721_v23  ;;  %v208_v46 = vrot.slane %v2211_v44, %v2499_v10  ;;  %v212_v50 = vrot.slane %v2211_v44, %v2501_v11  ;;  %201 = vst [vmem:[#allocation2 + $0x70] sm:$0xf] %v196_v49  ;;  %v3709_v55 = vmov 7   ;;  %v2579_v56 = vld [vmem:[#allocation2 + $0x8] sm:$0xff]  ;;  %vm268_vm0 = vcmask 916480   ;;  %s1055_s8 = sld [smem:[#allocation4]] }
  0x2d   :  { %500 = vperm.xlu1 %2284, %v2482_v0   ;;  %605 = vperm.xlu0 %2286, %v2482_v0   ;;  %v2582_v60 = vld [vmem:[#allocation2 + $0x10] sm:$0xff]  ;;  %vm339_vm1 = vcmask 785408   ;;  %vm930_vm2 = vcmask 138240   ;;  %vm959_vm5 = vcmask 121856   ;;  %vm988_vm8 = vcmask 130048   ;;  %s1060_s9 = sld [smem:[#allocation6]] }
  0x2e   :  { %215 = vst [vmem:[#allocation2 + $0x68] sm:$0xf0] %v208_v46  ;;  %216 = vst [vmem:[#allocation2 + $0x70] sm:$0xf0] %v212_v50  ;;  %v2598_v19 = vld [vmem:[#allocation2 + $0x28] sm:$0xff]  ;;  %vm1010_vm9 = vcmask 1040384  }
  0x2f   :  { %3752 = vst [vmem:[#allocation13_spill] sm:$0xff] %v2582_v60  ;;  %v2609_v38 = vld [vmem:[#allocation2 + $0x30] sm:$0xff]  ;;  %s2212_s12 = sld [smem:[#allocation4 + $0x1]]  ;;  %s2214_s16 = sld [smem:[#allocation4 + $0x2]] }
  0x30   :  { %v2619_v50 = vld [vmem:[#allocation2 + $0x48] sm:$0xff]  ;;  %s2213_s13 = sld [smem:[#allocation6 + $0x1]]  ;;  %s2215_s17 = sld [smem:[#allocation6 + $0x2]] }
  0x31   :  { %2285 = vset.pattern.permute.xlu1 %v3723_v26  ;;  %2289 = vset.pattern.permute.xlu0 %v3719_v27  ;;  %s2216_s19 = sld [smem:[#allocation4 + $0x3]] }
  0x32   :  { %548 = vperm.xlu1 %2285, %v2482_v0   ;;  %723 = vperm.xlu0 %2289, %v2482_v0   ;;  %s2217_s20 = sld [smem:[#allocation6 + $0x3]] }
  0x36   :  { %2287 = vset.pattern.permute.xlu1 %v3733_v28  ;;  %2292 = vset.pattern.permute.xlu0 %v3717_v29 }
  0x37   :  { %651 = vperm.xlu1 %2287, %v2482_v0   ;;  %850 = vperm.xlu0 %2292, %v2482_v0  }
  0x3b   :  { %2288 = vset.pattern.permute.xlu1 %v3720_v30  ;;  %2295 = vset.pattern.permute.xlu0 %v3714_v31 }
  0x3c   :  { %675 = vperm.xlu1 %2288, %v2482_v0   ;;  %243 = vperm.xlu0 %2295, %v2482_v0  }
  0x40   :  { %2290 = vset.pattern.permute.xlu1 %v3732_v36  ;;  %2302 = vset.pattern.permute.xlu0 %v3722_v54 }
  0x41   :  { %780 = vperm.xlu1 %2290, %v2482_v0  }
  0x45   :  { %2291 = vset.pattern.permute.xlu1 %v3718_v37 }
  0x46   :  { %826 = vperm.xlu1 %2291, %v2482_v0  }
  0x4a   :  { %2293 = vset.pattern.permute.xlu1 %v3731_v40 }
  0x4b   :  { %898 = vperm.xlu1 %2293, %v2482_v0  }
  0x4f   :  { %2294 = vset.pattern.permute.xlu1 %v3715_v41 }
  0x50   :  { %223 = vperm.xlu1 %2294, %v2482_v0  }
  0x54   :  { %2296 = vset.pattern.permute.xlu1 %v3730_v42 }
  0x55   :  { %400 = vperm.xlu1 %2296, %v2482_v0  }
  0x59   :  { %2297 = vset.pattern.permute.xlu1 %v3713_v47 }
  0x5a   :  { %420 = vperm.xlu1 %2297, %v2482_v0  }
  0x5e   :  { %2298 = vset.pattern.permute.xlu1 %v3729_v48 }
  0x5f   :  { %575 = vperm.xlu1 %2298, %v2482_v0  }
  0x63   :  { %2299 = vset.pattern.permute.xlu1 %v3712_v51 }
  0x64   :  { %595 = vperm.xlu1 %2299, %v2482_v0  }
  0x68   :  { %2300 = vset.pattern.permute.xlu1 %v3711_v52 }
  0x69   :  { %750 = vperm.xlu1 %2300, %v2482_v0  }
  0x6d   :  { %2301 = vset.pattern.permute.xlu1 %v3710_v53 }
  0x6e   :  { %770 = vperm.xlu1 %2301, %v2482_v0  }
  0x72   :  { %2303 = vset.pattern.permute.xlu1 %v3709_v55 }
  0x9d   :  { %v254_v57 = vpop.permute.xlu0 %253  ;;  %v325_v63 = vpop.permute.xlu1 %324 }
  0x9e   :  { %v256_v58 = vmul.f32 0.0, %v254_v57  ;;  %v257_v59 = vmul.f32 %v254_v57, %v2579_v56  ;;  %v258_v62 = vmul.f32 %v254_v57, %v2582_v60  ;;  %v327_v9 = vmul.f32 %v325_v63, %v2579_v56 }
  0x9f   :  { %v328_v15 = vmul.f32 %v325_v63, %v2582_v60  ;;  %v329_v17 = vmul.f32 0.0, %v325_v63 }
  0xa0   :  { %262 = vrot.lane.b32.xlu0 %v256_v58, %s2423_s23  ;;  %264 = vrot.lane.b32.xlu1 %v257_v59, %s2423_s23 }
  0xa2   :  { %v301_v61 = vpop.permute.xlu0 %300  ;;  %v374_v14 = vpop.permute.xlu1 %373 }
  0xa3   :  { %v303_v6 = vmul.f32 %v301_v61, %v2579_v56  ;;  %v304_v7 = vmul.f32 %v301_v61, %v2582_v60  ;;  %v305_v8 = vmul.f32 0.0, %v301_v61  ;;  %v377_v16 = vmul.f32 %v374_v14, %v2582_v60 }
  0xa4   :  { %266 = vrot.lane.b32.xlu0 %v258_v62, %s2423_s23  ;;  %v376_v20 = vmul.f32 %v374_v14, %v2579_v56  ;;  %v378_v32 = vmul.f32 0.0, %v374_v14 }
  0xa5   :  { %309 = vrot.lane.b32.xlu1 %v303_v6, %s2423_s23 }
  0xa7   :  { %v431_v18 = vpop.permute.xlu1 %430  ;;  %v477_v24 = vpop.permute.xlu0 %476 }
  0xa8   :  { %311 = vrot.lane.b32.xlu0 %v304_v7, %s2423_s23  ;;  %v434_v21 = vmul.f32 %v431_v18, %v2598_v19  ;;  %v479_v25 = vmul.f32 %v477_v24, %v2598_v19  ;;  %v433_v33 = vmul.f32 0.0, %v431_v18  ;;  %v481_v35 = vmul.f32 0.0, %v477_v24 }
  0xa9   :  { %313 = vrot.lane.b32.xlu1 %v305_v8, %s2423_s23  ;;  %v435_v43 = vmul.f32 %v431_v18, %v2609_v38  ;;  %v480_v45 = vmul.f32 %v477_v24, %v2609_v38  ;;  %v2631_v8 = vld [vmem:[#allocation2 + $0x50] sm:$0xff]  ;;  %v2642_v24 = vld [vmem:[#allocation2 + $0x68] sm:$0xff] }
  0xac   :  { %333 = vrot.lane.b32.xlu0 %v327_v9, %s2424_s24  ;;  %v501_v34 = vpop.permute.xlu1 %500  ;;  %v606_v49 = vpop.permute.xlu0 %605 }
  0xad   :  { %335 = vrot.lane.b32.xlu1 %v328_v15, %s2424_s24  ;;  %v504_v39 = vmul.f32 %v501_v34, %v2609_v38  ;;  %v503_v57 = vmul.f32 %v501_v34, %v2598_v19  ;;  %v609_v58 = vmul.f32 %v606_v49, %v2619_v50  ;;  %v505_v62 = vmul.f32 0.0, %v501_v34 }
  0xb0   :  { %337 = vrot.lane.b32.xlu0 %v329_v17, %s2424_s24 }
  0xb1   :  { %384 = vrot.lane.b32.xlu1 %v377_v16, %s2424_s24  ;;  %v549_v44 = vpop.permute.xlu1 %548  ;;  %v724_v15 = vpop.permute.xlu0 %723  ;;  %v608_v16 = vmul.f32 0.0, %v606_v49 }
  0xb2   :  { %v552_v46 = vmul.f32 %v549_v44, %v2609_v38  ;;  %v551_v63 = vmul.f32 %v549_v44, %v2598_v19  ;;  %v553_v14 = vmul.f32 0.0, %v549_v44  ;;  %v726_v17 = vmul.f32 %v724_v15, %v2619_v50 }
  0xb4   :  { %382 = vrot.lane.b32.xlu0 %v376_v20, %s2424_s24  ;;  %v728_v20 = vmul.f32 0.0, %v724_v15 }
  0xb5   :  { %441 = vrot.lane.b32.xlu1 %v434_v21, %s2423_s23  ;;  %v610_v21 = vmul.f32 %v2631_v8, %v606_v49 }
  0xb6   :  { %v652_v59 = vpop.permute.xlu1 %651 }
  0xb7   :  { %v654_v61 = vmul.f32 %v652_v59, %v2619_v50  ;;  %v656_v6 = vmul.f32 0.0, %v652_v59 }
  0xb8   :  { %386 = vrot.lane.b32.xlu0 %v378_v32, %s2424_s24  ;;  %v655_v32 = vmul.f32 %v652_v59, %v2631_v8 }
  0xb9   :  { %485 = vrot.lane.b32.xlu1 %v479_v25, %s2423_s23 }
  0xbb   :  { %v676_v7 = vpop.permute.xlu1 %675 }
  0xbc   :  { %439 = vrot.lane.b32.xlu0 %v433_v33, %s2423_s23  ;;  %v679_v9 = vmul.f32 %v676_v7, %v2631_v8  ;;  %v678_v34 = vmul.f32 %v676_v7, %v2619_v50  ;;  %v680_v44 = vmul.f32 0.0, %v676_v7 }
  0xbd   :  { %489 = vrot.lane.b32.xlu1 %v481_v35, %s2423_s23 }
  0xc0   :  { %443 = vrot.lane.b32.xlu0 %v435_v43, %s2423_s23  ;;  %v781_v18 = vpop.permute.xlu1 %780 }
  0xc1   :  { %511 = vrot.lane.b32.xlu1 %v504_v39, %s2424_s24  ;;  %v784_v25 = vmul.f32 %v781_v18, %v2642_v24  ;;  %v783_v59 = vmul.f32 0.0, %v781_v18 }
  0xc4   :  { %487 = vrot.lane.b32.xlu0 %v480_v45, %s2423_s23  ;;  %v851_v45 = vpop.permute.xlu0 %850 }
  0xc5   :  { %559 = vrot.lane.b32.xlu1 %v552_v46, %s2424_s24  ;;  %v827_v33 = vpop.permute.xlu1 %826  ;;  %v2654_v46 = vld [vmem:[#allocation2 + $0x70] sm:$0xff] }
  0xc6   :  { %v829_v35 = vmul.f32 %v827_v33, %v2642_v24  ;;  %v831_v43 = vmul.f32 0.0, %v827_v33  ;;  %3753 = vst [vmem:[#allocation14_spill] sm:$0xff] %v2654_v46 }
  0xc8   :  { %509 = vrot.lane.b32.xlu0 %v503_v57, %s2424_s24  ;;  %v854_v57 = vmul.f32 %v851_v45, %v2654_v46 }
  0xc9   :  { %616 = vrot.lane.b32.xlu1 %v609_v58, %s2423_s23  ;;  %v727_v58 = vmul.f32 %v724_v15, %v2631_v8 }
  0xca   :  { %v899_v39 = vpop.permute.xlu1 %898 }
  0xcc   :  { %513 = vrot.lane.b32.xlu0 %v505_v62, %s2424_s24 }
  0xcd   :  { %660 = vrot.lane.b32.xlu1 %v654_v61, %s2423_s23  ;;  %v901_v61 = vmul.f32 %v899_v39, %v2642_v24 }
  0xcf   :  { %v2657_v49 = vpop.permute.xlu1 %223 }
  0xd0   :  { %557 = vrot.lane.b32.xlu0 %v551_v63, %s2424_s24  ;;  %v903_v63 = vmul.f32 0.0, %v899_v39  ;;  %v227_v36 = vmul.f32 %v2657_v49, %v2579_v56 }
  0xd1   :  { %664 = vrot.lane.b32.xlu1 %v656_v6, %s2423_s23  ;;  %v785_v6 = vmul.f32 %v2654_v46, %v781_v18 }
  0xd4   :  { %561 = vrot.lane.b32.xlu0 %v553_v14, %s2424_s24  ;;  %v2665_v62 = vpop.permute.xlu1 %400  ;;  %v853_v14 = vmul.f32 %v851_v45, %v2642_v24 }
  0xd5   :  { %686 = vrot.lane.b32.xlu1 %v679_v9, %s2424_s24  ;;  %v830_v9 = vmul.f32 %v827_v33, %v2654_v46 }
  0xd8   :  { %614 = vrot.lane.b32.xlu0 %v608_v16, %s2423_s23  ;;  %v3707_v16 = vmov 13  }
  0xd9   :  { %732 = vrot.lane.b32.xlu1 %v726_v17, %s2424_s24  ;;  %v2671_v7 = vpop.permute.xlu1 %420  ;;  %v855_v17 = vmul.f32 0.0, %v851_v45 }
  0xda   :  { %v423_v26 = vmul.f32 0.0, %v2671_v7 }
  0xdc   :  { %618 = vrot.lane.b32.xlu0 %v610_v21, %s2423_s23  ;;  %v3704_v21 = vmov 22  }
  0xdd   :  { %736 = vrot.lane.b32.xlu1 %v728_v20, %s2424_s24  ;;  %v902_v20 = vmul.f32 %v899_v39, %v2654_v46  ;;  %v3702_v39 = vmov 34  }
  0xde   :  { %v2678_v15 = vpop.permute.xlu1 %575 }
  0xe0   :  { %662 = vrot.lane.b32.xlu0 %v655_v32, %s2423_s23  ;;  %v3703_v32 = vmov 25  }
  0xe1   :  { %791 = vrot.lane.b32.xlu1 %v784_v25, %s2423_s23 }
  0xe3   :  { %v2684_v18 = vpop.permute.xlu1 %595 }
  0xe4   :  { %684 = vrot.lane.b32.xlu0 %v678_v34, %s2424_s24  ;;  %v2697_v34 = vpop.permute.xlu0 %243 }
  0xe5   :  { %835 = vrot.lane.b32.xlu1 %v829_v35, %s2423_s23  ;;  %v3708_v35 = vmov 16   ;;  %v246_v37 = vmul.f32 0.0, %v2697_v34 }
  0xe8   :  { %688 = vrot.lane.b32.xlu0 %v680_v44, %s2424_s24  ;;  %v2690_v25 = vpop.permute.xlu1 %750  ;;  %v3701_v44 = vmov 1  }
  0xe9   :  { %839 = vrot.lane.b32.xlu1 %v831_v43, %s2423_s23  ;;  %v3705_v43 = vmov 31  }
  0xec   :  { %734 = vrot.lane.b32.xlu0 %v727_v58, %s2424_s24 }
  0xed   :  { %861 = vrot.lane.b32.xlu1 %v854_v57, %s2424_s24  ;;  %v2695_v33 = vpop.permute.xlu1 %770 }
  0xee   :  { %3754 = vst [vmem:[#allocation15_spill] sm:$0xff] %v2695_v33 }
  0xf0   :  { %789 = vrot.lane.b32.xlu0 %v783_v59, %s2423_s23  ;;  %v3706_v59 = vmov 10  }
  0xf1   :  { %907 = vrot.lane.b32.xlu1 %v901_v61, %s2424_s24 }
  0xf4   :  { %793 = vrot.lane.b32.xlu0 %v785_v6, %s2423_s23 }
  0xf5   :  { %911 = vrot.lane.b32.xlu1 %v903_v63, %s2424_s24 }
  0xf8   :  { %837 = vrot.lane.b32.xlu0 %v830_v9, %s2423_s23 }
  0xf9   :  { %349 = vperm.xlu1 %2303, %v2482_v0  }
  0xfc   :  { %859 = vrot.lane.b32.xlu0 %v853_v14, %s2424_s24 }
  0xfd   :  { %2304 = vset.pattern.permute.xlu1 %v3707_v16 }
  0xfe   :  { %454 = vperm.xlu1 %2304, %v2482_v0  }
 0x100   :  { %863 = vrot.lane.b32.xlu0 %v855_v17, %s2424_s24 }
 0x102   :  { %2306 = vset.pattern.permute.xlu1 %v3704_v21 }
 0x103   :  { %629 = vperm.xlu1 %2306, %v2482_v0  }
 0x104   :  { %909 = vrot.lane.b32.xlu0 %v902_v20, %s2424_s24 }
 0x107   :  { %2307 = vset.pattern.permute.xlu1 %v3703_v32 }
 0x108   :  { %278 = vperm.xlu0 %2302, %v2482_v0   ;;  %699 = vperm.xlu1 %2307, %v2482_v0  }
 0x10c   :  { %2305 = vset.pattern.permute.xlu0 %v3708_v35  ;;  %2309 = vset.pattern.permute.xlu1 %v3702_v39 }
 0x10d   :  { %524 = vperm.xlu0 %2305, %v2482_v0   ;;  %874 = vperm.xlu1 %2309, %v2482_v0  }
 0x111   :  { %2308 = vset.pattern.permute.xlu0 %v3705_v43  ;;  %2310 = vset.pattern.permute.xlu1 %v3701_v44 }
 0x112   :  { %v263_v45 = vpop.permute.xlu0 %262  ;;  %v265_v57 = vpop.permute.xlu1 %264  ;;  %804 = vperm.xlu0 %2308, %v2482_v0   ;;  %v404_v0 = vmul.f32 %v2665_v62, %v2598_v19 }
 0x113   :  { %v269_v46 = vsel %vm268_vm0, %v263_v45, %v265_v57 }
 0x116   :  { %v267_v58 = vpop.permute.xlu0 %266  ;;  %2311 = vset.pattern.permute.xlu0 %v3706_v59 }
 0x117   :  { %v2707_v61 = vpop.permute.xlu1 %309 }
 0x118   :  { %v320_v27 = vadd.f32 %v2707_v61, %v246_v37 }
 0x11a   :  { %v2709_v63 = vpop.permute.xlu0 %311 }
 0x11b   :  { %v314_v6 = vpop.permute.xlu1 %313 }
 0x11e   :  { %v2711_v9 = vpop.permute.xlu0 %333 }
 0x11f   :  { %v336_v14 = vpop.permute.xlu1 %335 }
 0x122   :  { %v338_v17 = vpop.permute.xlu0 %337 }
 0x123   :  { %v2713_v20 = vpop.permute.xlu1 %384  ;;  %v341_v11 = vsel %vm339_vm1, %v336_v14, %v338_v17  ;;  %v405_v17 = vmul.f32 %v2665_v62, %v2609_v38 }
 0x126   :  { %v2715_v44 = vpop.permute.xlu0 %382 }
 0x127   :  { %v2717_v39 = vpop.permute.xlu1 %441  ;;  %v393_v54 = vadd.f32 %v2715_v44, %v320_v27  ;;  %v270_v27 = vsel %vm268_vm0, %v265_v57, %v267_v58 }
 0x128   :  { %v275_v28 = vadd.f32 %v270_v27, %v227_v36  ;;  %v316_v27 = vsel %vm268_vm0, %v2709_v63, %v314_v6 }
 0x129   :  { %v426_v12 = vadd.f32 %v423_v26, %v393_v54  ;;  %v598_v26 = vmul.f32 0.0, %v2684_v18  ;;  %v340_v54 = vsel %vm339_vm1, %v2711_v9, %v336_v14  ;;  %v248_v14 = vmul.f32 %v2697_v34, %v2582_v60 }
 0x12a   :  { %v387_v32 = vpop.permute.xlu0 %386  ;;  %v346_v1 = vadd.f32 %v340_v54, %v275_v28  ;;  %v315_v54 = vsel %vm268_vm0, %v2707_v61, %v2709_v63  ;;  %v403_v61 = vmul.f32 0.0, %v2665_v62  ;;  %v425_v63 = vmul.f32 %v2671_v7, %v2609_v38 }
 0x12b   :  { %v2719_v21 = vpop.permute.xlu1 %485  ;;  %v389_v6 = vsel %vm339_vm1, %v2713_v20, %v387_v32 }
 0x12c   :  { %v496_v48 = vadd.f32 %v2719_v21, %v426_v12  ;;  %v407_v45 = vadd.f32 %v404_v0, %v346_v1  ;;  %v322_v0 = vadd.f32 %v316_v27, %v248_v14 }
 0x12e   :  { %v2721_v43 = vpop.permute.xlu0 %439 }
 0x12f   :  { %v2723_v59 = vpop.permute.xlu1 %489 }
 0x132   :  { %v2725_v16 = vpop.permute.xlu0 %443 }
 0x133   :  { %v2727_v35 = vpop.permute.xlu1 %511  ;;  %v446_v28 = vsel %vm268_vm0, %v2717_v39, %v2725_v16 }
 0x134   :  { %v451_v1 = vadd.f32 %v446_v28, %v407_v45 }
 0x136   :  { %v2729_v55 = vpop.permute.xlu0 %487 }
 0x137   :  { %v2731_v53 = vpop.permute.xlu1 %559  ;;  %v492_v45 = vsel %vm268_vm0, %v2729_v55, %v2723_v59 }
 0x13a   :  { %v2733_v52 = vpop.permute.xlu0 %509 }
 0x13b   :  { %v2735_v51 = vpop.permute.xlu1 %616 }
 0x13e   :  { %v2737_v47 = vpop.permute.xlu0 %513 }
 0x13f   :  { %v2739_v31 = vpop.permute.xlu1 %660 }
 0x142   :  { %v2741_v41 = vpop.permute.xlu0 %557 }
 0x143   :  { %v2743_v29 = vpop.permute.xlu1 %664  ;;  %v568_v37 = vadd.f32 %v2741_v41, %v496_v48  ;;  %v228_v48 = vmul.f32 %v2657_v49, %v2582_v60  ;;  %v395_v60 = vadd.f32 %v389_v6, %v322_v0  ;;  %v580_v6 = vmul.f32 %v2631_v8, %v2678_v15 }
 0x144   :  { %v563_v0 = vsel %vm339_vm1, %v2741_v41, %v2731_v53 }
 0x145   :  { %v601_v12 = vadd.f32 %v598_v26, %v568_v37  ;;  %v276_v10 = vadd.f32 %v267_v58, %v228_v48  ;;  %v226_v37 = vmul.f32 0.0, %v2657_v49 }
 0x146   :  { %v2747_v30 = vpop.permute.xlu0 %561 }
 0x147   :  { %v2749_v23 = vpop.permute.xlu1 %686  ;;  %v347_v26 = vadd.f32 %v341_v11, %v276_v10  ;;  %v274_v49 = vadd.f32 %v269_v46, %v226_v37  ;;  %v515_v10 = vsel %vm339_vm1, %v2733_v52, %v2727_v35  ;;  %v773_v11 = vmul.f32 0.0, %v2695_v33 }
 0x148   :  { %v247_v46 = vmul.f32 %v2697_v34, %v2579_v56  ;;  %v388_v37 = vsel %vm339_vm1, %v2715_v44, %v2713_v20  ;;  %v516_v34 = vsel %vm339_vm1, %v2727_v35, %v2737_v47  ;;  %v445_v44 = vsel %vm268_vm0, %v2721_v43, %v2717_v39 }
 0x149   :  { %v408_v32 = vadd.f32 %v405_v17, %v347_v26 }
 0x14a   :  { %v2753_v22 = vpop.permute.xlu0 %614  ;;  %v321_v27 = vadd.f32 %v315_v54, %v247_v46 }
 0x14b   :  { %v2755_v13 = vpop.permute.xlu1 %732  ;;  %v452_v20 = vadd.f32 %v2725_v16, %v408_v32  ;;  %v600_v32 = vmul.f32 %v2631_v8, %v2684_v18  ;;  %v620_v41 = vsel %vm268_vm0, %v2753_v22, %v2735_v51  ;;  %v3758_v22 = vld [vmem:[#allocation14_spill] sm:$0xff] }
 0x14c   :  { %v394_v28 = vadd.f32 %v388_v37, %v321_v27 }
 0x14d   :  { %v522_v39 = vadd.f32 %v516_v34, %v452_v20 }
 0x14e   :  { %v2757_v4 = vpop.permute.xlu0 %618 }
 0x14f   :  { %v2759_v2 = vpop.permute.xlu1 %736  ;;  %v621_v47 = vsel %vm268_vm0, %v2735_v51, %v2757_v4  ;;  %v583_v54 = vadd.f32 %v580_v6, %v522_v39  ;;  %v755_v51 = vmul.f32 %v3758_v22, %v2690_v25 }
 0x150   :  { %3755 = vst [vmem:[#allocation16_spill] sm:$0xff] %v2759_v2  ;;  %v671_v2 = vadd.f32 %v2739_v31, %v601_v12  ;;  %v345_v12 = vadd.f32 %v2711_v9, %v274_v49  ;;  %v579_v9 = vmul.f32 %v2678_v15, %v2619_v50  ;;  %v564_v49 = vsel %vm339_vm1, %v2731_v53, %v2747_v30 }
 0x151   :  { %v627_v37 = vadd.f32 %v2757_v4, %v583_v54  ;;  %v599_v4 = vmul.f32 %v2684_v18, %v2619_v50 }
 0x152   :  { %v2763_v42 = vpop.permute.xlu0 %662  ;;  %v743_v57 = vadd.f32 %v2755_v13, %v671_v2  ;;  %v406_v14 = vadd.f32 %v403_v61, %v345_v12 }
 0x153   :  { %v2766_v40 = vpop.permute.xlu1 %791 }
 0x154   :  { %v776_v33 = vadd.f32 %v773_v11, %v743_v57  ;;  %v428_v57 = vadd.f32 %v425_v63, %v395_v60  ;;  %v450_v17 = vadd.f32 %v445_v44, %v406_v14  ;;  %v491_v60 = vsel %vm268_vm0, %v2719_v21, %v2729_v55 }
 0x155   :  { %v578_v21 = vmul.f32 0.0, %v2678_v15 }
 0x156   :  { %v2773_v5 = vpop.permute.xlu0 %684  ;;  %v520_v30 = vadd.f32 %v2733_v52, %v450_v17  ;;  %v754_v52 = vmul.f32 %v2690_v25, %v2642_v24  ;;  %v3759_v17 = vld [vmem:[#allocation15_spill] sm:$0xff] }
 0x157   :  { %v2777_v3 = vpop.permute.xlu1 %835  ;;  %v690_v59 = vsel %vm339_vm1, %v2773_v5, %v2749_v23 }
 0x158   :  { %v846_v26 = vadd.f32 %v2777_v3, %v776_v33  ;;  %v424_v33 = vmul.f32 %v2671_v7, %v2598_v19 }
 0x15a   :  { %v2784_v36 = vpop.permute.xlu0 %688  ;;  %v427_v7 = vadd.f32 %v424_v33, %v394_v28  ;;  %v753_v33 = vmul.f32 0.0, %v2690_v25 }
 0x15b   :  { %v2792_v58 = vpop.permute.xlu1 %839  ;;  %v691_v55 = vsel %vm339_vm1, %v2749_v23, %v2784_v36  ;;  %v667_v23 = vsel %vm268_vm0, %v2763_v42, %v2743_v29  ;;  %v581_v36 = vadd.f32 %v578_v21, %v520_v30 }
 0x15c   :  { %3756 = vst [vmem:[#allocation17_spill] sm:$0xff] %v2792_v58  ;;  %v521_v58 = vadd.f32 %v515_v10, %v451_v1  ;;  %v497_v12 = vadd.f32 %v491_v60, %v427_v7  ;;  %v697_v27 = vadd.f32 %v691_v55, %v627_v37 }
 0x15d   :  { %v625_v20 = vadd.f32 %v620_v41, %v581_v36 }
 0x15e   :  { %v2808_v2 = vpop.permute.xlu0 %734  ;;  %v582_v43 = vadd.f32 %v579_v9, %v521_v58  ;;  %v498_v58 = vadd.f32 %v492_v45, %v428_v57  ;;  %v569_v63 = vadd.f32 %v563_v0, %v497_v12  ;;  %v3757_v9 = vld [vmem:[#allocation16_spill] sm:$0xff]  ;;  %v666_v45 = vsel %vm268_vm0, %v2739_v31, %v2763_v42 }
 0x15f   :  { %v2813_v48 = vpop.permute.xlu1 %861  ;;  %v739_v44 = vsel %vm339_vm1, %v2808_v2, %v3757_v9  ;;  %v695_v18 = vadd.f32 %v2773_v5, %v625_v20  ;;  %v758_v57 = vadd.f32 %v755_v51, %v697_v27 }
 0x160   :  { %v626_v10 = vadd.f32 %v621_v47, %v582_v43  ;;  %v570_v1 = vadd.f32 %v564_v49, %v498_v58  ;;  %v602_v14 = vadd.f32 %v599_v4, %v569_v63  ;;  %v775_v49 = vmul.f32 %v3758_v22, %v3759_v17 }
 0x161   :  { %v2435_v63 = vmov 19  }
 0x162   :  { %v2831_v62 = vpop.permute.xlu0 %789  ;;  %v696_v46 = vadd.f32 %v690_v59, %v626_v10  ;;  %v603_v15 = vadd.f32 %v600_v32, %v570_v1  ;;  %v672_v59 = vadd.f32 %v666_v45, %v602_v14  ;;  %v2436_v14 = vmov 28  }
 0x163   :  { %v2839_v35 = vpop.permute.xlu1 %907  ;;  %v795_v5 = vsel %vm268_vm0, %v2831_v62, %v2766_v40  ;;  %v3760_v42 = vld [vmem:[#allocation17_spill] sm:$0xff] }
 0x164   :  { %v918_v16 = vadd.f32 %v2839_v35, %v846_v26  ;;  %v757_v34 = vadd.f32 %v754_v52, %v696_v46  ;;  %v673_v26 = vadd.f32 %v667_v23, %v603_v15  ;;  %v3761_v52 = vld [vmem:[#allocation10_spill] sm:$0xff]  ;;  %v3763_v15 = vld [vmem:[#allocation13_spill] sm:$0xff] }
 0x166   :  { %v794_v11 = vpop.permute.xlu0 %793  ;;  %953 = vrot.lane.b32.xlu0 %v918_v16, %s2433_s25  ;;  %v745_v39 = vadd.f32 %v739_v44, %v673_v26  ;;  %v738_v16 = vsel %vm339_vm1, %v2755_v13, %v2808_v2  ;;  %v756_v2 = vadd.f32 %v753_v33, %v695_v18 }
 0x167   :  { %v796_v53 = vsel %vm268_vm0, %v2766_v40, %v794_v11  ;;  %v802_v6 = vadd.f32 %v794_v11, %v758_v57  ;;  %v744_v25 = vadd.f32 %v738_v16, %v672_v59  ;;  %v774_v11 = vmul.f32 %v3759_v17, %v2642_v24  ;;  %v912_v54 = vpop.permute.xlu1 %911  ;;  %v2359_v57 = vld [vmem:[%s3695_s1] sm:$0xff]  ;;  %s2437_s1 = smov 16  }
 0x168   :  { %v801_v29 = vadd.f32 %v796_v53, %v757_v34  ;;  %v778_v58 = vadd.f32 %v775_v49, %v745_v39  ;;  %v800_v7 = vadd.f32 %v795_v5, %v756_v2  ;;  %v3764_v17 = vmov 5  }
 0x169   :  { %v777_v1 = vadd.f32 %v774_v11, %v744_v25  ;;  %v3765_v5 = vlaneseq }
 0x16a   :  { %v838_v61 = vpop.permute.xlu0 %837 }
 0x16b   :  { %v842_v60 = vsel %vm268_vm0, %v838_v61, %v3760_v42  ;;  %v841_v40 = vsel %vm268_vm0, %v2777_v3, %v838_v61  ;;  %v3762_v61 = vmov 3   ;;  %v49_v42 = vand.u32 127, %v3765_v5 }
 0x16c   :  { %v848_v30 = vadd.f32 %v842_v60, %v778_v58  ;;  %v847_v55 = vadd.f32 %v841_v40, %v777_v1 }
 0x16d   :  { %v50_v60 = vadd.s32 128, %v49_v42  ;;  %v55_v58 = vand.u32 15, %v49_v42 }
 0x16e   :  { %v860_v28 = vpop.permute.xlu0 %859 }
 0x16f   :  { %v865_v47 = vsel %vm339_vm1, %v860_v28, %v2813_v48  ;;  %vm2973_vm4 = vcmp.ge.s32.totalorder %v55_v58, 1  ;;  %vm2981_vm6 = vcmp.le.s32.totalorder %v55_v58, 14 }
 0x170   :  { %v871_v43 = vadd.f32 %v865_v47, %v801_v29 }
 0x172   :  { %v864_v31 = vpop.permute.xlu0 %863  ;;  %926 = vrot.lane.b32.xlu0 %v871_v43, %s2434_s26 }
 0x173   :  { %v866_v13 = vsel %vm339_vm1, %v2813_v48, %v864_v31  ;;  %v870_v48 = vadd.f32 %v860_v28, %v800_v7 }
 0x174   :  { %v872_v10 = vadd.f32 %v866_v13, %v802_v6  ;;  %v2959_v6 = vld [vmem:[#allocation2] sm:$0xff]  ;;  %v62_v13 = vand.u32 15, %v50_v60 }
 0x176   :  { %v910_v0 = vpop.permute.xlu0 %909  ;;  %928 = vrot.lane.b32.xlu1 %v872_v10, %s2434_s26  ;;  %vm2965_vm3 = vcmp.ge.s32.totalorder %v62_v13, 1  ;;  %vm2985_vm7 = vcmp.le.s32.totalorder %v62_v13, 14 }
 0x177   :  { %v914_v62 = vsel %vm339_vm1, %v910_v0, %v912_v54  ;;  %v913_v12 = vsel %vm339_vm1, %v2839_v35, %v910_v0 }
 0x178   :  { %v920_v46 = vadd.f32 %v914_v62, %v848_v30  ;;  %v919_v21 = vadd.f32 %v913_v12, %v847_v55  ;;  %v350_v32 = vpop.permute.xlu1 %349 }
 0x179   :  { %v352_v3 = vmul.f32 %v350_v32, %v2579_v56  ;;  %v354_v37 = vmul.f32 0.0, %v350_v32  ;;  %v353_v4 = vmul.f32 %v350_v32, %v3763_v15 }
 0x17a   :  { %924 = vrot.lane.b32.xlu1 %v870_v48, %s2434_s26  ;;  %957 = vrot.lane.b32.xlu0 %v920_v46, %s2433_s25 }
 0x17d   :  { %v455_v35 = vpop.permute.xlu1 %454 }
 0x17e   :  { %955 = vrot.lane.b32.xlu1 %v919_v21, %s2433_s25  ;;  %410 = vperm.xlu0 %2311, %v3761_v52   ;;  %v457_v41 = vmul.f32 %v455_v35, %v2598_v19  ;;  %v458_v26 = vmul.f32 %v455_v35, %v2609_v38 }
 0x182   :  { %233 = vperm.xlu1 %2310, %v3761_v52   ;;  %358 = vrot.lane.b32.xlu0 %v352_v3, %s2424_s24  ;;  %v630_v9 = vpop.permute.xlu1 %629 }
 0x183   :  { %2314 = vset.pattern.permute.xlu0 %v3762_v61  ;;  %v632_v51 = vmul.f32 %v630_v9, %v2619_v50  ;;  %v633_v39 = vmul.f32 %v2631_v8, %v630_v9 }
 0x186   :  { %2312 = vset.pattern.permute.xlu1 %v2435_v63  ;;  %362 = vrot.lane.b32.xlu0 %v354_v37, %s2424_s24 }
 0x187   :  { %v279_v23 = vpop.permute.xlu0 %278  ;;  %v700_v20 = vpop.permute.xlu1 %699 }
 0x188   :  { %v281_v53 = vmul.f32 %v279_v23, %v2579_v56  ;;  %v282_v36 = vmul.f32 %v279_v23, %v3763_v15  ;;  %v702_v29 = vmul.f32 %v700_v20, %v2619_v50  ;;  %v704_v45 = vmul.f32 0.0, %v700_v20 }
 0x189   :  { %v703_v33 = vmul.f32 %v700_v20, %v2631_v8 }
 0x18a   :  { %285 = vrot.lane.b32.xlu1 %v281_v53, %s2423_s23  ;;  %461 = vrot.lane.b32.xlu0 %v457_v41, %s2423_s23 }
 0x18c   :  { %v525_v27 = vpop.permute.xlu0 %524  ;;  %v875_v43 = vpop.permute.xlu1 %874 }
 0x18d   :  { %v527_v34 = vmul.f32 %v525_v27, %v2598_v19  ;;  %v529_v44 = vmul.f32 0.0, %v525_v27  ;;  %v528_v28 = vmul.f32 %v525_v27, %v2609_v38  ;;  %v878_v16 = vmul.f32 %v875_v43, %v3758_v22 }
 0x18e   :  { %287 = vrot.lane.b32.xlu1 %v282_v36, %s2423_s23  ;;  %v877_v59 = vmul.f32 %v875_v43, %v2642_v24  ;;  %v879_v31 = vmul.f32 %v2959_v6, %v875_v43 }
 0x18f   :  { %533 = vrot.lane.b32.xlu0 %v527_v34, %s2424_s24 }
 0x191   :  { %v805_v47 = vpop.permute.xlu0 %804 }
 0x192   :  { %360 = vrot.lane.b32.xlu1 %v353_v4, %s2424_s24  ;;  %v808_v18 = vmul.f32 %v3758_v22, %v805_v47  ;;  %v807_v49 = vmul.f32 %v805_v47, %v2642_v24 }
 0x193   :  { %537 = vrot.lane.b32.xlu0 %v529_v44, %s2424_s24 }
 0x196   :  { %585 = vperm.xlu1 %2312, %v3761_v52  }
 0x197   :  { %636 = vrot.lane.b32.xlu0 %v632_v51, %s2423_s23 }
 0x19a   :  { %463 = vrot.lane.b32.xlu1 %v458_v26, %s2423_s23 }
 0x19b   :  { %2313 = vset.pattern.permute.xlu1 %v2436_v14  ;;  %708 = vrot.lane.b32.xlu0 %v702_v29, %s2424_s24 }
 0x19e   :  { %535 = vrot.lane.b32.xlu1 %v528_v28, %s2424_s24 }
 0x19f   :  { %712 = vrot.lane.b32.xlu0 %v704_v45, %s2424_s24 }
 0x1a2   :  { %760 = vperm.xlu1 %2313, %v2359_v57  }
 0x1a3   :  { %813 = vrot.lane.b32.xlu0 %v808_v18, %s2423_s23 }
 0x1a6   :  { %638 = vrot.lane.b32.xlu1 %v633_v39, %s2423_s23 }
 0x1a7   :  { %885 = vrot.lane.b32.xlu0 %v878_v16, %s2424_s24  ;;  %2315 = vset.pattern.permute.xlu1 %v3764_v17 }
 0x1aa   :  { %710 = vrot.lane.b32.xlu1 %v703_v33, %s2424_s24 }
 0x1ae   :  { %811 = vrot.lane.b32.xlu1 %v807_v49, %s2423_s23 }
 0x1b2   :  { %883 = vrot.lane.b32.xlu1 %v877_v59, %s2424_s24 }
 0x1b6   :  { %887 = vrot.lane.b32.xlu1 %v879_v31, %s2424_s24 }
 0x1d8   :  { %v954_v25 = vpop.permute.xlu0 %953 }
 0x1e4   :  { %v927_v10 = vpop.permute.xlu0 %926 }
 0x1e8   :  { %v929_v11 = vpop.permute.xlu1 %928 }
 0x1e9   :  { %v932_v7 = vsel %vm930_vm2, %v927_v10, %v929_v11 }
 0x1ea   :  { %v936_v30 = vsel %vm2965_vm3, %v932_v7, 0.0 }
 0x1eb   :  { %941 = vrot.lane.b32.xlu1 %v936_v30, %s2423_s23 }
 0x1ec   :  { %v925_v0 = vpop.permute.xlu1 %924  ;;  %v958_v46 = vpop.permute.xlu0 %957 }
 0x1ed   :  { %v931_v40 = vsel %vm930_vm2, %v925_v0, %v927_v10 }
 0x1ee   :  { %v935_v62 = vsel %vm2973_vm4, %v931_v40, 0.0 }
 0x1ef   :  { %939 = vrot.lane.b32.xlu0 %v935_v62, %s2423_s23 }
 0x1f0   :  { %v956_v12 = vpop.permute.xlu1 %955 }
 0x1f1   :  { %v960_v55 = vsel %vm959_vm5, %v954_v25, %v956_v12  ;;  %v961_v21 = vsel %vm959_vm5, %v956_v12, %v958_v46 }
 0x1f2   :  { %v964_v32 = vsel %vm2981_vm6, %v960_v55, 0.0  ;;  %v965_v52 = vsel %vm2985_vm7, %v961_v21, 0.0 }
 0x1f3   :  { %968 = vrot.lane.b32.xlu0 %v964_v32, %s2423_s23  ;;  %970 = vrot.lane.b32.xlu1 %v965_v52, %s2423_s23 }
 0x1fd   :  { %v411_v35 = vpop.permute.xlu0 %410 }
 0x1fe   :  { %v413_v18 = vmul.f32 %v2959_v6, %v411_v35  ;;  %v414_v39 = vmul.f32 %v411_v35, %v2598_v19  ;;  %v415_v17 = vmul.f32 %v411_v35, %v2609_v38 }
 0x201   :  { %v234_v3 = vpop.permute.xlu1 %233  ;;  %v359_v23 = vpop.permute.xlu0 %358 }
 0x202   :  { %v236_v4 = vmul.f32 %v2959_v6, %v234_v3  ;;  %v237_v9 = vmul.f32 %v234_v3, %v2579_v56  ;;  %v238_v29 = vmul.f32 %v234_v3, %v3763_v15 }
 0x205   :  { %v286_v37 = vpop.permute.xlu1 %285  ;;  %v363_v36 = vpop.permute.xlu0 %362 }
 0x206   :  { %v293_v26 = vadd.f32 %v286_v37, %v236_v4 }
 0x208   :  { %v369_v57 = vadd.f32 %v359_v23, %v293_v26 }
 0x209   :  { %v288_v61 = vpop.permute.xlu1 %287  ;;  %v462_v34 = vpop.permute.xlu0 %461 }
 0x20a   :  { %v289_v44 = vsel %vm268_vm0, %v286_v37, %v288_v61  ;;  %v295_v47 = vadd.f32 %v288_v61, %v238_v29  ;;  %v416_v59 = vadd.f32 %v413_v18, %v369_v57 }
 0x20b   :  { %v294_v28 = vadd.f32 %v289_v44, %v237_v9 }
 0x20c   :  { %v469_v13 = vadd.f32 %v462_v34, %v416_v59 }
 0x20d   :  { %v361_v41 = vpop.permute.xlu1 %360  ;;  %v534_v20 = vpop.permute.xlu0 %533 }
 0x20e   :  { %v364_v45 = vsel %vm339_vm1, %v359_v23, %v361_v41  ;;  %v365_v16 = vsel %vm339_vm1, %v361_v41, %v363_v36  ;;  %v544_v11 = vadd.f32 %v534_v20, %v469_v13 }
 0x20f   :  { %v370_v43 = vadd.f32 %v364_v45, %v294_v28  ;;  %v371_v49 = vadd.f32 %v365_v16, %v295_v47 }
 0x211   :  { %v538_v33 = vpop.permute.xlu0 %537  ;;  %v417_v31 = vadd.f32 %v414_v39, %v370_v43  ;;  %v418_v60 = vadd.f32 %v415_v17, %v371_v49 }
 0x215   :  { %v586_v53 = vpop.permute.xlu1 %585  ;;  %v637_v42 = vpop.permute.xlu0 %636 }
 0x216   :  { %v588_v19 = vmul.f32 %v2959_v6, %v586_v53  ;;  %v589_v7 = vmul.f32 %v586_v53, %v2619_v50  ;;  %v590_v62 = vmul.f32 %v2631_v8, %v586_v53 }
 0x218   :  { %v591_v12 = vadd.f32 %v588_v19, %v544_v11 }
 0x219   :  { %v464_v27 = vpop.permute.xlu1 %463  ;;  %v709_v40 = vpop.permute.xlu0 %708 }
 0x21a   :  { %v465_v15 = vsel %vm268_vm0, %v462_v34, %v464_v27  ;;  %v471_v10 = vadd.f32 %v464_v27, %v418_v60  ;;  %v644_v37 = vadd.f32 %v637_v42, %v591_v12 }
 0x21b   :  { %v470_v25 = vadd.f32 %v465_v15, %v417_v31 }
 0x21c   :  { %v719_v23 = vadd.f32 %v709_v40, %v644_v37 }
 0x21d   :  { %v536_v51 = vpop.permute.xlu1 %535  ;;  %v713_v52 = vpop.permute.xlu0 %712 }
 0x21e   :  { %v539_v58 = vsel %vm339_vm1, %v534_v20, %v536_v51  ;;  %v540_v38 = vsel %vm339_vm1, %v536_v51, %v538_v33 }
 0x21f   :  { %v545_v30 = vadd.f32 %v539_v58, %v470_v25  ;;  %v546_v46 = vadd.f32 %v540_v38, %v471_v10 }
 0x221   :  { %v761_v56 = vpop.permute.xlu1 %760  ;;  %v592_v55 = vadd.f32 %v589_v7, %v545_v30  ;;  %v593_v3 = vadd.f32 %v590_v62, %v546_v46  ;;  %v814_v34 = vpop.permute.xlu0 %813  ;;  %v3775_v62 = vld [vmem:[#allocation12_spill] sm:$0xff] }
 0x222   :  { %v763_v50 = vmul.f32 %v2959_v6, %v761_v56  ;;  %v764_v36 = vmul.f32 %v761_v56, %v2642_v24  ;;  %v765_v4 = vmul.f32 %v3758_v22, %v761_v56 }
 0x224   :  { %v766_v9 = vadd.f32 %v763_v50, %v719_v23 }
 0x225   :  { %v639_v5 = vpop.permute.xlu1 %638  ;;  %v886_v29 = vpop.permute.xlu0 %885 }
 0x226   :  { %v640_v21 = vsel %vm268_vm0, %v637_v42, %v639_v5  ;;  %v646_v41 = vadd.f32 %v639_v5, %v593_v3 }
 0x227   :  { %v645_v61 = vadd.f32 %v640_v21, %v592_v55 }
 0x229   :  { %v711_v0 = vpop.permute.xlu1 %710 }
 0x22a   :  { %v714_v35 = vsel %vm339_vm1, %v709_v40, %v711_v0  ;;  %v715_v8 = vsel %vm339_vm1, %v711_v0, %v713_v52  ;;  %v3774_v0 = vld [vmem:[#allocation11_spill] sm:$0xff] }
 0x22b   :  { %v720_v27 = vadd.f32 %v714_v35, %v645_v61  ;;  %v721_v44 = vadd.f32 %v715_v8, %v646_v41 }
 0x22d   :  { %v812_v32 = vpop.permute.xlu1 %811  ;;  %v767_v51 = vadd.f32 %v764_v36, %v720_v27  ;;  %v768_v45 = vadd.f32 %v765_v4, %v721_v44 }
 0x22e   :  { %v815_v20 = vsel %vm268_vm0, %v812_v32, %v814_v34  ;;  %v819_v28 = vadd.f32 %v812_v32, %v766_v9 }
 0x22f   :  { %v820_v47 = vadd.f32 %v815_v20, %v767_v51  ;;  %v821_v43 = vadd.f32 %v814_v34, %v768_v45 }
 0x231   :  { %v884_v53 = vpop.permute.xlu1 %883 }
 0x232   :  { %v889_v18 = vsel %vm339_vm1, %v884_v53, %v886_v29  ;;  %v894_v39 = vadd.f32 %v884_v53, %v819_v28 }
 0x233   :  { %v895_v56 = vadd.f32 %v889_v18, %v820_v47 }
 0x235   :  { %v888_v26 = vpop.permute.xlu1 %887 }
 0x236   :  { %v890_v22 = vsel %vm339_vm1, %v886_v29, %v888_v26 }
 0x237   :  { %v896_v31 = vadd.f32 %v890_v22, %v821_v43 }
 0x25d   :  { %v942_v24 = vpop.permute.xlu1 %941 }
 0x25e   :  { %v949_v60 = vadd.f32 %v942_v24, %v896_v31 }
 0x261   :  { %v940_v57 = vpop.permute.xlu0 %939 }
 0x262   :  { %v943_v16 = vsel %vm268_vm0, %v940_v57, %v942_v24  ;;  %v947_v33 = vadd.f32 %v940_v57, %v894_v39 }
 0x263   :  { %v948_v17 = vadd.f32 %v943_v16, %v895_v56 }
 0x265   :  { %v969_v49 = vpop.permute.xlu0 %968  ;;  %v971_v59 = vpop.permute.xlu1 %970 }
 0x266   :  { %v976_v15 = vadd.f32 %v969_v49, %v947_v33  ;;  %v972_v5 = vsel %vm268_vm0, %v969_v49, %v971_v59  ;;  %v978_v13 = vadd.f32 %v971_v59, %v949_v60 }
 0x267   :  { %v977_v42 = vadd.f32 %v972_v5, %v948_v17 }
 0x268   :  { %982 = vrot.lane.b32.xlu0 %v976_v15, %s2437_s1 }
 0x269   :  { %984 = vrot.lane.b32.xlu1 %v977_v42, %s2437_s1 }
 0x26c   :  { %986 = vrot.lane.b32.xlu0 %v978_v13, %s2437_s1 }
 0x2da   :  { %v983_v25 = vpop.permute.xlu0 %982 }
 0x2db   :  { %v985_v58 = vpop.permute.xlu1 %984 }
 0x2dc   :  { %v989_v19 = vsel %vm988_vm8, %v983_v25, %v985_v58 }
 0x2dd   :  { %993 = vst [vmem:[#allocation3] sm:$0xff] %v989_v19  ;;  %v3776_v19 = vmov 23  }
 0x2de   :  { %v987_v10 = vpop.permute.xlu0 %986 }
 0x2df   :  { %v990_v11 = vsel %vm988_vm8, %v985_v58, %v987_v10  ;;  %v3081_v58 = vld [vmem:[%s3696_s2] sm:$0xff]  ;;  %v3777_v10 = vmov 30  }
 0x2e0   :  { %994 = vst [vmem:[#allocation3 + $0x8] sm:$0xff] %v990_v11  ;;  %v3778_v11 = vmov 35  }
 0x2e7   :  { %v3028_v7 = vld [vmem:[#allocation3] ss:$8 sm:$0x3]  ;;  %v3030_v30 = vld [vmem:[#allocation3 + $0x4] ss:$8 sm:$0x3] }
 0x2e8   :  { %v998_v38 = vadd.f32 %v3030_v30, %v3028_v7  ;;  %v3040_v36 = vld [vmem:[#allocation3 + $0x1] ss:$8 sm:$0x3]  ;;  %v3042_v27 = vld [vmem:[#allocation3 + $0x5] ss:$8 sm:$0x3] }
 0x2e9   :  { %v1068_v9 = vadd.f32 %v3042_v27, %v3040_v36  ;;  %v3050_v44 = vld [vmem:[#allocation3 + $0x2] ss:$8 sm:$0x3]  ;;  %v3052_v51 = vld [vmem:[#allocation3 + $0x6] ss:$8 sm:$0x3] }
 0x2ea   :  { %v1003_v40 = vrot.slane %v998_v38, %v3774_v0  ;;  %v1007_v46 = vrot.slane %v998_v38, %v3775_v62  ;;  %v1137_v26 = vadd.f32 %v3052_v51, %v3050_v44  ;;  %v3060_v18 = vld [vmem:[#allocation3 + $0x3] ss:$8 sm:$0x3]  ;;  %v3062_v24 = vld [vmem:[#allocation3 + $0x7] ss:$8 sm:$0x3] }
 0x2eb   :  { %v1073_v45 = vrot.slane %v1068_v9, %v3774_v0  ;;  %v1077_v47 = vrot.slane %v1068_v9, %v3775_v62  ;;  %v1206_v16 = vadd.f32 %v3062_v24, %v3060_v18  ;;  %v3779_v38 = vmov 9  }
 0x2ec   :  { %v1011_v12 = vsel %vm1010_vm9, %v1003_v40, 0.0  ;;  %v1012_v55 = vsel %vm1010_vm9, %v1007_v46, 0.0  ;;  %v1142_v33 = vrot.slane %v1137_v26, %v3774_v0  ;;  %v1146_v17 = vrot.slane %v1137_v26, %v3775_v62 }
 0x2ed   :  { %v1013_v21 = vadd.f32 %v1012_v55, %v1011_v12  ;;  %v1080_v22 = vsel %vm1010_vm9, %v1073_v45, 0.0  ;;  %v1081_v56 = vsel %vm1010_vm9, %v1077_v47, 0.0  ;;  %v1211_v15 = vrot.slane %v1206_v16, %v3774_v0 }
 0x2ee   :  { %v1082_v49 = vadd.f32 %v1081_v56, %v1080_v22  ;;  %v1149_v59 = vsel %vm1010_vm9, %v1142_v33, 0.0  ;;  %v1150_v31 = vsel %vm1010_vm9, %v1146_v17, 0.0  ;;  %v1215_v5 = vrot.slane %v1206_v16, %v3775_v62 }
 0x2ef   :  { %1014 = vadd.xlane.f32.xlu1 %v1013_v21  ;;  %v1151_v42 = vadd.f32 %v1150_v31, %v1149_v59  ;;  %v1218_v60 = vsel %vm1010_vm9, %v1211_v15, 0.0  ;;  %v3780_v40 = vmov 18   ;;  %v1062_v59 = vstv %s1060_s9 }
 0x2f0   :  { %v1219_v13 = vsel %vm1010_vm9, %v1215_v5, 0.0 }
 0x2f1   :  { %v1220_v25 = vadd.f32 %v1219_v13, %v1218_v60 }
 0x37c   :  { %v1015_v32 = vpop.xlane.xlu1 %1014 }
 0x37d   :  { %v1016_v52 = vrot.slane %v1015_v32, 4 }
 0x37f   :  { %v1017_v3 = vadd.f32 %v1016_v52, %v1015_v32 }
 0x381   :  { %v1018_v37 = vrot.slane %v1017_v3, 2 }
 0x383   :  { %v1019_v61 = vadd.f32 %v1018_v37, %v1017_v3 }
 0x385   :  { %v1020_v35 = vrot.slane %v1019_v61, 1 }
 0x387   :  { %v1021_v50 = vadd.f32 %v1020_v35, %v1019_v61 }
 0x389   :  { %2218 = vpush %v1021_v50 }
 0x3ba   :  { %s2219_s29 = spop %2218 }
 0x3bb   :  { %v1023_v41 = vstv %s2219_s29 }
 0x3bc   :  { %v3038_v23 = vmul.f32 0.001953125, %v1023_v41 }
 0x3be   :  { %v1025_v8 = vsub.f32 %v3028_v7, %v3038_v23  ;;  %v1027_v53 = vsub.f32 %v3030_v30, %v3038_v23 }
 0x3c0   :  { %v1026_v34 = vmul.f32 %v1025_v8, %v1025_v8  ;;  %v1028_v4 = vmul.f32 %v1027_v53, %v1027_v53 }
 0x3c2   :  { %v1029_v20 = vadd.f32 %v1028_v4, %v1026_v34 }
 0x3c4   :  { %v1034_v29 = vrot.slane %v1029_v20, %v3774_v0  ;;  %v1038_v28 = vrot.slane %v1029_v20, %v3775_v62 }
 0x3c6   :  { %v1041_v57 = vsel %vm1010_vm9, %v1034_v29, 0.0  ;;  %v1042_v39 = vsel %vm1010_vm9, %v1038_v28, 0.0 }
 0x3c7   :  { %v1043_v43 = vadd.f32 %v1042_v39, %v1041_v57  ;;  %v1058_v39 = vstv %s1055_s8 }
 0x3c9   :  { %1044 = vadd.xlane.f32.xlu0 %v1043_v43 }
 0x3cd   :  { %1083 = vadd.xlane.f32.xlu0 %v1082_v49 }
 0x3d1   :  { %1152 = vadd.xlane.f32.xlu0 %v1151_v42 }
 0x3d5   :  { %1221 = vadd.xlane.f32.xlu0 %v1220_v25 }
 0x3eb   :  { %1435 = vperm.xlu0 %2314, %v3081_v58  }
 0x3ef   :  { %2323 = vset.pattern.permute.xlu0 %v3776_v19 }
 0x3f0   :  { %1831 = vperm.xlu0 %2323, %v3081_v58  }
 0x3f4   :  { %2326 = vset.pattern.permute.xlu0 %v3777_v10 }
 0x3f5   :  { %1960 = vperm.xlu0 %2326, %v3081_v58  }
 0x3f9   :  { %2329 = vset.pattern.permute.xlu0 %v3778_v11 }
 0x3fa   :  { %2078 = vperm.xlu0 %2329, %v3081_v58  }
 0x3fe   :  { %2332 = vset.pattern.permute.xlu0 %v3779_v38 }
 0x3ff   :  { %1580 = vperm.xlu0 %2332, %v3081_v58  }
 0x403   :  { %2334 = vset.pattern.permute.xlu0 %v3780_v40 }
 0x456   :  { %v1045_v46 = vpop.xlane.xlu0 %1044 }
 0x457   :  { %v1046_v12 = vrot.slane %v1045_v46, 4 }
 0x459   :  { %v1047_v55 = vadd.f32 %v1046_v12, %v1045_v46 }
 0x45a   :  { %v1084_v21 = vpop.xlane.xlu0 %1083 }
 0x45b   :  { %v1085_v32 = vrot.slane %v1084_v21, 4  ;;  %v1048_v52 = vrot.slane %v1047_v55, 2 }
 0x45d   :  { %v1086_v3 = vadd.f32 %v1085_v32, %v1084_v21  ;;  %v1049_v37 = vadd.f32 %v1048_v52, %v1047_v55 }
 0x45e   :  { %v1153_v25 = vpop.xlane.xlu0 %1152 }
 0x45f   :  { %v1050_v61 = vrot.slane %v1049_v37, 1  ;;  %v1087_v35 = vrot.slane %v1086_v3, 2  ;;  %v1154_v55 = vrot.slane %v1153_v25, 4 }
 0x461   :  { %v1051_v50 = vadd.f32 %v1050_v61, %v1049_v37  ;;  %v1088_v41 = vadd.f32 %v1087_v35, %v1086_v3  ;;  %v1155_v21 = vadd.f32 %v1154_v55, %v1153_v25  ;;  %v3784_v55 = vmov 14  }
 0x463   :  { %2220 = vpush %v1051_v50  ;;  %v1089_v8 = vrot.slane %v1088_v41, 1  ;;  %v1156_v52 = vrot.slane %v1155_v21, 2 }
 0x465   :  { %v1090_v53 = vadd.f32 %v1089_v8, %v1088_v41  ;;  %v1157_v61 = vadd.f32 %v1156_v52, %v1155_v21  ;;  %v3785_v21 = vmov 15  }
 0x467   :  { %2222 = vpush %v1090_v53  ;;  %v1158_v41 = vrot.slane %v1157_v61, 1 }
 0x494   :  { %s2221_s30 = spop %2220 }
 0x495   :  { %v1053_v34 = vstv %s2221_s30 }
 0x496   :  { %v1054_v4 = vmul.f32 0.001953125, %v1053_v34  ;;  %v1159_v34 = vadd.f32 %v1158_v41, %v1157_v61 }
 0x498   :  { %v1056_v9 = vadd.f32 1e-05, %v1054_v4  ;;  %s2223_s7 = spop %2222 }
 0x499   :  { %v1092_v20 = vstv %s2223_s7 }
 0x49a   :  { %2351 = vrsqrt.f32 %v1056_v9  ;;  %v3093_v26 = vmul.f32 0.001953125, %v1092_v20 }
 0x49c   :  { %v1094_v29 = vsub.f32 %v3040_v36, %v3093_v26  ;;  %v1096_v28 = vsub.f32 %v3042_v27, %v3093_v26 }
 0x49e   :  { %v1095_v45 = vmul.f32 %v1094_v29, %v1094_v29  ;;  %v1097_v47 = vmul.f32 %v1096_v28, %v1096_v28 }
 0x4a0   :  { %v1098_v57 = vadd.f32 %v1097_v47, %v1095_v45 }
 0x4a2   :  { %v1103_v43 = vrot.slane %v1098_v57, %v3774_v0  ;;  %v1107_v16 = vrot.slane %v1098_v57, %v3775_v62 }
 0x4a4   :  { %v2352_v22 = vpop.eup %2351  ;;  %v1110_v56 = vsel %vm1010_vm9, %v1103_v43, 0.0  ;;  %v1111_v33 = vsel %vm1010_vm9, %v1107_v16, 0.0 }
 0x4a5   :  { %v1059_v17 = vmul.f32 %v2352_v22, %v1058_v39  ;;  %v1112_v49 = vadd.f32 %v1111_v33, %v1110_v56 }
 0x4a7   :  { %v1061_v31 = vmul.f32 %v1059_v17, %v3038_v23  ;;  %1113 = vadd.xlane.f32.xlu1 %v1112_v49  ;;  %v1271_v5 = vmul.f32 %v1059_v17, %v3028_v7  ;;  %v1287_v42 = vmul.f32 %v1059_v17, %v3030_v30  ;;  %v3110_v7 = vpop.xlane.xlu0 %1221  ;;  %v1127_v17 = vstv %s2212_s12 }
 0x4a8   :  { %v1223_v52 = vrot.slane %v3110_v7, 4 }
 0x4a9   :  { %v1063_v15 = vsub.f32 %v1062_v59, %v1061_v31 }
 0x4ab   :  { %v1272_v60 = vadd.f32 %v1271_v5, %v1063_v15  ;;  %v1288_v13 = vadd.f32 %v1287_v42, %v1063_v15  ;;  %v3112_v30 = vpop.permute.xlu0 %1435  ;;  %v1131_v15 = vstv %s2213_s13 }
 0x4ad   :  { %v1273_v19 = vmax.f32 %v1272_v60, 0.0  ;;  %v1289_v10 = vmax.f32 %v1288_v13, 0.0 }
 0x4af   :  { %v1278_v11 = vrot.slane %v1273_v19, %v3774_v0  ;;  %v1282_v38 = vrot.slane %v1273_v19, %v3775_v62  ;;  %v1294_v40 = vrot.slane %v1289_v10, %v3774_v0  ;;  %v1298_v46 = vrot.slane %v1289_v10, %v3775_v62 }
 0x4b1   :  { %1285 = vst [vmem:[#allocation2 + $0x8] sm:$0xf] %v1278_v11  ;;  %1286 = vst [vmem:[#allocation2 + $0x10] sm:$0xf] %v1282_v38 }
 0x4b2   :  { %1301 = vst [vmem:[#allocation2 + $0x8] sm:$0xf0] %v1294_v40  ;;  %1302 = vst [vmem:[#allocation2 + $0x10] sm:$0xf0] %v1298_v46 }
 0x4b9   :  { %v3114_v23 = vld [vmem:[#allocation2 + $0x8] sm:$0xff] }
 0x4ba   :  { %v1439_v12 = vmul.f32 %v3112_v30, %v3114_v23 }
 0x4bc   :  { %1446 = vrot.lane.b32.xlu0 %v1439_v12, %s2423_s23 }
 0x534   :  { %v1114_v32 = vpop.xlane.xlu1 %1113 }
 0x535   :  { %v1115_v3 = vrot.slane %v1114_v32, 4 }
 0x537   :  { %v1116_v37 = vadd.f32 %v1115_v3, %v1114_v32  ;;  %v3786_v32 = vmov 17   ;;  %v1224_v3 = vadd.f32 %v1223_v52, %v3110_v7 }
 0x539   :  { %v1117_v35 = vrot.slane %v1116_v37, 2  ;;  %v1225_v61 = vrot.slane %v1224_v3, 2 }
 0x53b   :  { %v1118_v50 = vadd.f32 %v1117_v35, %v1116_v37 }
 0x53d   :  { %v1119_v8 = vrot.slane %v1118_v50, 1 }
 0x53f   :  { %v1120_v53 = vadd.f32 %v1119_v8, %v1118_v50  ;;  %v1226_v8 = vadd.f32 %v1225_v61, %v1224_v3  ;;  %v1200_v61 = vstv %s2215_s17 }
 0x541   :  { %2224 = vpush %v1120_v53 }
 0x542   :  { %2226 = vpush %v1159_v34 }
 0x572   :  { %s2225_s10 = spop %2224 }
 0x573   :  { %v1122_v4 = vstv %s2225_s10  ;;  %s2227_s11 = spop %2226 }
 0x574   :  { %v1123_v9 = vmul.f32 0.001953125, %v1122_v4  ;;  %v1161_v20 = vstv %s2227_s11 }
 0x575   :  { %v3119_v29 = vmul.f32 0.001953125, %v1161_v20  ;;  %v1227_v20 = vrot.slane %v1226_v8, 1 }
 0x576   :  { %v1125_v28 = vadd.f32 1e-05, %v1123_v9 }
 0x577   :  { %v1163_v45 = vsub.f32 %v3050_v44, %v3119_v29  ;;  %v1165_v47 = vsub.f32 %v3052_v51, %v3119_v29 }
 0x578   :  { %2353 = vrsqrt.f32 %v1125_v28 }
 0x579   :  { %v1164_v57 = vmul.f32 %v1163_v45, %v1163_v45  ;;  %v1166_v39 = vmul.f32 %v1165_v47, %v1165_v47  ;;  %v3160_v47 = vld [vmem:[#allocation2 + $0x10] sm:$0xff] }
 0x57b   :  { %v1167_v43 = vadd.f32 %v1166_v39, %v1164_v57  ;;  %v1228_v57 = vadd.f32 %v1227_v20, %v1226_v8 }
 0x57d   :  { %v1172_v16 = vrot.slane %v1167_v43, %v3774_v0  ;;  %v1176_v22 = vrot.slane %v1167_v43, %v3775_v62 }
 0x57f   :  { %v1179_v56 = vsel %vm1010_vm9, %v1172_v16, 0.0  ;;  %v1180_v33 = vsel %vm1010_vm9, %v1176_v22, 0.0 }
 0x580   :  { %v1181_v49 = vadd.f32 %v1180_v33, %v1179_v56  ;;  %v3787_v33 = vmov 4  }
 0x582   :  { %v2354_v59 = vpop.eup %2353  ;;  %1182 = vadd.xlane.f32.xlu1 %v1181_v49 }
 0x583   :  { %v1128_v31 = vmul.f32 %v2354_v59, %v1127_v17 }
 0x585   :  { %v1130_v5 = vmul.f32 %v1128_v31, %v3093_v26  ;;  %v1303_v60 = vmul.f32 %v1128_v31, %v3040_v36  ;;  %v1319_v13 = vmul.f32 %v1128_v31, %v3042_v27  ;;  %v3781_v36 = vmov 6  }
 0x586   :  { %v3782_v27 = vmov 8   ;;  %v3783_v26 = vmov 12  }
 0x587   :  { %v1132_v42 = vsub.f32 %v1131_v15, %v1130_v5 }
 0x589   :  { %v1304_v25 = vadd.f32 %v1303_v60, %v1132_v42  ;;  %v1320_v19 = vadd.f32 %v1319_v13, %v1132_v42 }
 0x58b   :  { %v1305_v10 = vmax.f32 %v1304_v25, 0.0  ;;  %v1321_v11 = vmax.f32 %v1320_v19, 0.0 }
 0x58d   :  { %v1310_v38 = vrot.slane %v1305_v10, %v3774_v0  ;;  %v1314_v40 = vrot.slane %v1305_v10, %v3775_v62  ;;  %v1326_v46 = vrot.slane %v1321_v11, %v3774_v0  ;;  %v1330_v12 = vrot.slane %v1321_v11, %v3775_v62 }
 0x58f   :  { %1317 = vst [vmem:[#allocation2 + $0x28] sm:$0xf] %v1310_v38  ;;  %1318 = vst [vmem:[#allocation2 + $0x30] sm:$0xf] %v1314_v40 }
 0x590   :  { %1333 = vst [vmem:[#allocation2 + $0x28] sm:$0xf0] %v1326_v46  ;;  %1334 = vst [vmem:[#allocation2 + $0x30] sm:$0xf0] %v1330_v12 }
 0x593   :  { %1481 = vperm.xlu1 %2315, %v3081_v58  }
 0x597   :  { %2316 = vset.pattern.permute.xlu1 %v3781_v36  ;;  %v3177_v17 = vld [vmem:[#allocation2 + $0x30] sm:$0xff]  ;;  %v3189_v5 = vld [vmem:[#allocation2 + $0x28] sm:$0xff] }
 0x598   :  { %1505 = vperm.xlu1 %2316, %v3081_v58  }
 0x59c   :  { %2317 = vset.pattern.permute.xlu1 %v3782_v27 }
 0x59d   :  { %1553 = vperm.xlu1 %2317, %v3081_v58  }
 0x5a1   :  { %2318 = vset.pattern.permute.xlu1 %v3783_v26 }
 0x5a2   :  { %1610 = vperm.xlu1 %2318, %v3081_v58  }
 0x5a6   :  { %2319 = vset.pattern.permute.xlu1 %v3784_v55 }
 0x5a7   :  { %1656 = vperm.xlu1 %2319, %v3081_v58  }
 0x5ab   :  { %2320 = vset.pattern.permute.xlu1 %v3785_v21 }
 0x5ac   :  { %1680 = vperm.xlu1 %2320, %v3081_v58  }
 0x5b0   :  { %2321 = vset.pattern.permute.xlu1 %v3786_v32  ;;  %v1196_v32 = vstv %s2214_s16 }
 0x60f   :  { %v1183_v37 = vpop.xlane.xlu1 %1182 }
 0x610   :  { %v1184_v35 = vrot.slane %v1183_v37, 4 }
 0x612   :  { %v1185_v50 = vadd.f32 %v1184_v35, %v1183_v37 }
 0x613   :  { %v3150_v41 = vpop.permute.xlu1 %1481 }
 0x614   :  { %v1484_v53 = vmul.f32 %v3150_v41, %v3114_v23  ;;  %v1186_v34 = vrot.slane %v1185_v50, 2  ;;  %v1486_v4 = vmul.f32 %v2959_v6, %v3150_v41 }
 0x616   :  { %1490 = vrot.lane.b32.xlu0 %v1484_v53, %s2423_s23  ;;  %v1187_v9 = vadd.f32 %v1186_v34, %v1185_v50 }
 0x617   :  { %v3157_v7 = vpop.permute.xlu1 %1505 }
 0x618   :  { %v1188_v28 = vrot.slane %v1187_v9, 1  ;;  %v1509_v39 = vmul.f32 %v3157_v7, %v3160_v47 }
 0x61a   :  { %1494 = vrot.lane.b32.xlu0 %v1486_v4, %s2423_s23  ;;  %v1189_v45 = vadd.f32 %v1188_v28, %v1187_v9 }
 0x61c   :  { %2228 = vpush %v1189_v45  ;;  %v3165_v43 = vpop.permute.xlu1 %1553 }
 0x61d   :  { %2230 = vpush %v1228_v57  ;;  %v1558_v16 = vmul.f32 %v2959_v6, %v3165_v43 }
 0x61e   :  { %1516 = vrot.lane.b32.xlu0 %v1509_v39, %s2424_s24 }
 0x621   :  { %v3170_v22 = vpop.permute.xlu1 %1610 }
 0x622   :  { %1755 = vperm.xlu0 %2334, %v3081_v58   ;;  %v1613_v56 = vmul.f32 %v2959_v6, %v3170_v22  ;;  %v1615_v59 = vmul.f32 %v3170_v22, %v3177_v17 }
 0x626   :  { %1566 = vrot.lane.b32.xlu0 %v1558_v16, %s2424_s24  ;;  %v3179_v49 = vpop.permute.xlu1 %1656  ;;  %v3791_v16 = vmov 32  }
 0x627   :  { %2338 = vset.pattern.permute.xlu0 %v3787_v33  ;;  %v1660_v31 = vmul.f32 %v3179_v49, %v3177_v17  ;;  %v3793_v33 = vmov 0  }
 0x62a   :  { %1619 = vrot.lane.b32.xlu0 %v1613_v56, %s2423_s23  ;;  %v3792_v56 = vmov 33  }
 0x62b   :  { %v3186_v15 = vpop.permute.xlu1 %1680 }
 0x62c   :  { %v1683_v42 = vmul.f32 %v3186_v15, %v3189_v5  ;;  %v1685_v60 = vmul.f32 %v2959_v6, %v3186_v15 }
 0x62e   :  { %1623 = vrot.lane.b32.xlu0 %v1615_v59, %s2423_s23  ;;  %v3794_v59 = vmov 2  }
 0x632   :  { %1667 = vrot.lane.b32.xlu0 %v1660_v31, %s2423_s23  ;;  %v3795_v31 = vmov 11  }
 0x636   :  { %1689 = vrot.lane.b32.xlu0 %v1683_v42, %s2424_s24  ;;  %v1438_v42 = vmul.f32 %v2959_v6, %v3112_v30 }
 0x63a   :  { %1693 = vrot.lane.b32.xlu0 %v1685_v60, %s2424_s24  ;;  %v3796_v60 = vmov 20  }
 0x64d   :  { %s2229_s14 = spop %2228 }
 0x64e   :  { %v1191_v13 = vstv %s2229_s14  ;;  %s2231_s15 = spop %2230 }
 0x64f   :  { %v1192_v25 = vmul.f32 0.001953125, %v1191_v13  ;;  %v1230_v19 = vstv %s2231_s15  ;;  %v1440_v13 = vmul.f32 %v3112_v30, %v3160_v47  ;;  %v1556_v30 = vmul.f32 %v3165_v43, %v3114_v23 }
 0x650   :  { %v3197_v10 = vmul.f32 0.001953125, %v1230_v19  ;;  %v1508_v19 = vmul.f32 %v3157_v7, %v3114_v23 }
 0x651   :  { %v1194_v11 = vadd.f32 1e-05, %v1192_v25  ;;  %v1485_v25 = vmul.f32 %v3150_v41, %v3160_v47  ;;  %v1557_v41 = vmul.f32 %v3165_v43, %v3160_v47  ;;  %v1684_v43 = vmul.f32 %v3186_v15, %v3177_v17 }
 0x652   :  { %v1232_v38 = vsub.f32 %v3060_v18, %v3197_v10  ;;  %v1234_v40 = vsub.f32 %v3062_v24, %v3197_v10 }
 0x653   :  { %2355 = vrsqrt.f32 %v1194_v11  ;;  %v1510_v11 = vmul.f32 %v2959_v6, %v3157_v7  ;;  %v3797_v7 = vmov 27  }
 0x654   :  { %v1233_v46 = vmul.f32 %v1232_v38, %v1232_v38  ;;  %v1235_v12 = vmul.f32 %v1234_v40, %v1234_v40  ;;  %v1614_v38 = vmul.f32 %v3170_v22, %v3189_v5  ;;  %v1659_v40 = vmul.f32 %v3179_v49, %v3189_v5 }
 0x655   :  { %v3798_v22 = vmov 29  }
 0x656   :  { %v1236_v36 = vadd.f32 %v1235_v12, %v1233_v46  ;;  %v1661_v46 = vmul.f32 %v2959_v6, %v3179_v49 }
 0x658   :  { %v1241_v27 = vrot.slane %v1236_v36, %v3774_v0  ;;  %v1245_v26 = vrot.slane %v1236_v36, %v3775_v62 }
 0x65a   :  { %v1248_v55 = vsel %vm1010_vm9, %v1241_v27, 0.0  ;;  %v1249_v21 = vsel %vm1010_vm9, %v1245_v26, 0.0 }
 0x65b   :  { %v1250_v52 = vadd.f32 %v1249_v21, %v1248_v55 }
 0x65d   :  { %v2356_v3 = vpop.eup %2355  ;;  %1251 = vadd.xlane.f32.xlu1 %v1250_v52 }
 0x65e   :  { %v1197_v37 = vmul.f32 %v2356_v3, %v1196_v32 }
 0x660   :  { %v1199_v35 = vmul.f32 %v1197_v37, %v3119_v29  ;;  %v1335_v8 = vmul.f32 %v1197_v37, %v3050_v44  ;;  %v1351_v53 = vmul.f32 %v1197_v37, %v3052_v51  ;;  %v3788_v44 = vmov 21   ;;  %v1832_v37 = vpop.permute.xlu0 %1831 }
 0x661   :  { %v3789_v51 = vmov 24   ;;  %v3790_v29 = vmov 26  }
 0x662   :  { %v1201_v50 = vsub.f32 %v1200_v61, %v1199_v35  ;;  %v1836_v61 = vmul.f32 %v2959_v6, %v1832_v37 }
 0x664   :  { %v1336_v34 = vadd.f32 %v1335_v8, %v1201_v50  ;;  %v1352_v4 = vadd.f32 %v1351_v53, %v1201_v50 }
 0x666   :  { %v1337_v9 = vmax.f32 %v1336_v34, 0.0  ;;  %v1353_v20 = vmax.f32 %v1352_v4, 0.0  ;;  %v3799_v34 = vmov 7   ;;  %v3282_v4 = vpop.permute.xlu0 %1960 }
 0x668   :  { %v1342_v28 = vrot.slane %v1337_v9, %v3774_v0  ;;  %v1346_v45 = vrot.slane %v1337_v9, %v3775_v62  ;;  %v1358_v57 = vrot.slane %v1353_v20, %v3774_v0  ;;  %v1362_v39 = vrot.slane %v1353_v20, %v3775_v62 }
 0x669   :  { %v1963_v20 = vmul.f32 %v2959_v6, %v3282_v4 }
 0x66a   :  { %1349 = vst [vmem:[#allocation2 + $0x48] sm:$0xf] %v1342_v28  ;;  %1350 = vst [vmem:[#allocation2 + $0x50] sm:$0xf] %v1346_v45 }
 0x66b   :  { %1365 = vst [vmem:[#allocation2 + $0x48] sm:$0xf0] %v1358_v57  ;;  %1366 = vst [vmem:[#allocation2 + $0x50] sm:$0xf0] %v1362_v39 }
 0x66e   :  { %1728 = vperm.xlu1 %2321, %v3081_v58  }
 0x672   :  { %2322 = vset.pattern.permute.xlu1 %v3788_v44  ;;  %v3295_v39 = vld [vmem:[#allocation2 + $0x48] sm:$0xff] }
 0x673   :  { %1785 = vperm.xlu1 %2322, %v3081_v58  }
 0x677   :  { %2324 = vset.pattern.permute.xlu1 %v3789_v51 }
 0x678   :  { %1855 = vperm.xlu1 %2324, %v3081_v58  }
 0x67c   :  { %2325 = vset.pattern.permute.xlu1 %v3790_v29  ;;  %v3300_v29 = vpop.permute.xlu0 %2078 }
 0x67d   :  { %1903 = vperm.xlu1 %2325, %v3081_v58  }
 0x681   :  { %2327 = vset.pattern.permute.xlu1 %v3791_v16 }
 0x682   :  { %2006 = vperm.xlu1 %2327, %v3081_v58  }
 0x686   :  { %2328 = vset.pattern.permute.xlu1 %v3792_v56  ;;  %v3306_v56 = vld [vmem:[#allocation2 + $0x50] sm:$0xff] }
 0x687   :  { %2030 = vperm.xlu1 %2328, %v3081_v58  }
 0x68b   :  { %2330 = vset.pattern.permute.xlu1 %v3793_v33 }
 0x68c   :  { %1405 = vperm.xlu1 %2330, %v3081_v58  }
 0x690   :  { %2331 = vset.pattern.permute.xlu1 %v3794_v59  ;;  %v1834_v59 = vmul.f32 %v1832_v37, %v3295_v39 }
 0x691   :  { %1425 = vperm.xlu1 %2331, %v3081_v58  }
 0x695   :  { %2333 = vset.pattern.permute.xlu1 %v3795_v31 }
 0x696   :  { %1600 = vperm.xlu1 %2333, %v3081_v58  }
 0x69a   :  { %1444 = vrot.lane.b32.xlu1 %v1438_v42, %s2423_s23 }
 0x69b   :  { %2335 = vset.pattern.permute.xlu1 %v3796_v60  ;;  %v3313_v60 = vpop.permute.xlu0 %1580 }
 0x69e   :  { %1448 = vrot.lane.b32.xlu1 %v1440_v13, %s2423_s23  ;;  %v1835_v13 = vmul.f32 %v1832_v37, %v3306_v56 }
 0x6a2   :  { %1492 = vrot.lane.b32.xlu1 %v1485_v25, %s2423_s23 }
 0x6a6   :  { %1514 = vrot.lane.b32.xlu1 %v1508_v19, %s2424_s24 }
 0x6aa   :  { %1518 = vrot.lane.b32.xlu1 %v1510_v11, %s2424_s24  ;;  %v3323_v11 = vpop.permute.xlu0 %1446 }
 0x6ae   :  { %1562 = vrot.lane.b32.xlu1 %v1556_v30, %s2424_s24 }
 0x6b2   :  { %1564 = vrot.lane.b32.xlu1 %v1557_v41, %s2424_s24 }
 0x6b6   :  { %1775 = vperm.xlu1 %2335, %v3081_v58  }
 0x6ba   :  { %1621 = vrot.lane.b32.xlu1 %v1614_v38, %s2423_s23  ;;  %v3330_v38 = vpop.permute.xlu0 %1490 }
 0x6bb   :  { %2336 = vset.pattern.permute.xlu1 %v3797_v7 }
 0x6be   :  { %1665 = vrot.lane.b32.xlu1 %v1659_v40, %s2423_s23 }
 0x6c2   :  { %1669 = vrot.lane.b32.xlu1 %v1661_v46, %s2423_s23  ;;  %v3336_v46 = vpop.permute.xlu0 %1494 }
 0x6c6   :  { %1691 = vrot.lane.b32.xlu1 %v1684_v43, %s2424_s24 }
 0x6ca   :  { %1930 = vperm.xlu1 %2336, %v3081_v58  }
 0x6ce   :  { %2337 = vset.pattern.permute.xlu1 %v3798_v22 }
 0x6ea   :  { %v1252_v12 = vpop.xlane.xlu1 %1251 }
 0x6eb   :  { %v1253_v36 = vrot.slane %v1252_v12, 4 }
 0x6ed   :  { %v1254_v27 = vadd.f32 %v1253_v36, %v1252_v12  ;;  %v3342_v12 = vpop.permute.xlu0 %1516 }
 0x6ee   :  { %v1729_v26 = vpop.permute.xlu1 %1728 }
 0x6ef   :  { %v1731_v55 = vmul.f32 %v1729_v26, %v3189_v5  ;;  %v1732_v21 = vmul.f32 %v1729_v26, %v3177_v17  ;;  %v1255_v49 = vrot.slane %v1254_v27, 2  ;;  %v1733_v32 = vmul.f32 %v2959_v6, %v1729_v26 }
 0x6f1   :  { %1737 = vrot.lane.b32.xlu0 %v1731_v55, %s2424_s24  ;;  %1739 = vrot.lane.b32.xlu1 %v1732_v21, %s2424_s24  ;;  %v1256_v15 = vadd.f32 %v1255_v49, %v1254_v27  ;;  %v3346_v27 = vpop.permute.xlu0 %1755 }
 0x6f2   :  { %v1786_v52 = vpop.permute.xlu1 %1785 }
 0x6f3   :  { %v1257_v3 = vrot.slane %v1256_v15, 1  ;;  %v1788_v35 = vmul.f32 %v2959_v6, %v1786_v52  ;;  %v1789_v44 = vmul.f32 %v1786_v52, %v3295_v39  ;;  %v1790_v31 = vmul.f32 %v1786_v52, %v3306_v56 }
 0x6f5   :  { %1741 = vrot.lane.b32.xlu0 %v1733_v32, %s2424_s24  ;;  %1950 = vperm.xlu1 %2337, %v3081_v58   ;;  %v1258_v50 = vadd.f32 %v1257_v3, %v1256_v15  ;;  %v3350_v32 = vpop.permute.xlu0 %1566 }
 0x6f7   :  { %2232 = vpush %v1258_v50  ;;  %v1856_v8 = vpop.permute.xlu1 %1855 }
 0x6f8   :  { %v1860_v53 = vmul.f32 %v2959_v6, %v1856_v8  ;;  %v1858_v30 = vmul.f32 %v1856_v8, %v3295_v39 }
 0x6f9   :  { %1844 = vrot.lane.b32.xlu1 %v1836_v61, %s2423_s23  ;;  %1794 = vrot.lane.b32.xlu0 %v1788_v35, %s2423_s23  ;;  %v3356_v3 = vpop.permute.xlu0 %1619  ;;  %v1265_v61 = vstv %s2216_s19 }
 0x6fa   :  { %2339 = vset.pattern.permute.xlu1 %v3799_v34 }
 0x6fc   :  { %v1904_v9 = vpop.permute.xlu1 %1903 }
 0x6fd   :  { %v1908_v28 = vmul.f32 %v2959_v6, %v1904_v9  ;;  %1868 = vrot.lane.b32.xlu0 %v1860_v53, %s2424_s24  ;;  %v1906_v19 = vmul.f32 %v1904_v9, %v3295_v39  ;;  %v1907_v7 = vmul.f32 %v1904_v9, %v3306_v56  ;;  %v3360_v50 = vpop.permute.xlu0 %1623 }
 0x6ff   :  { %1916 = vrot.lane.b32.xlu1 %v1908_v28, %s2424_s24 }
 0x701   :  { %v3289_v45 = vpop.permute.xlu1 %2006  ;;  %1969 = vrot.lane.b32.xlu0 %v1963_v20, %s2423_s23  ;;  %v1269_v20 = vstv %s2217_s20 }
 0x702   :  { %v2011_v57 = vmul.f32 %v2959_v6, %v3289_v45 }
 0x704   :  { %2019 = vrot.lane.b32.xlu1 %v2011_v57, %s2423_s23 }
 0x706   :  { %v3298_v51 = vpop.permute.xlu1 %2030 }
 0x707   :  { %v2035_v16 = vmul.f32 %v2959_v6, %v3298_v51  ;;  %v1859_v6 = vmul.f32 %v1856_v8, %v3306_v56 }
 0x708   :  { %1796 = vrot.lane.b32.xlu1 %v1789_v44, %s2423_s23 }
 0x709   :  { %2043 = vrot.lane.b32.xlu0 %v2035_v16, %s2424_s24 }
 0x70b   :  { %v3310_v42 = vpop.permute.xlu1 %1405 }
 0x70c   :  { %1840 = vrot.lane.b32.xlu1 %v1834_v59, %s2423_s23  ;;  %v1409_v9 = vmul.f32 %v3310_v42, %v3114_v23 }
 0x70d   :  { %1798 = vrot.lane.b32.xlu0 %v1790_v31, %s2423_s23 }
 0x710   :  { %v3318_v25 = vpop.permute.xlu1 %1425  ;;  %1866 = vrot.lane.b32.xlu1 %v1859_v6, %s2424_s24 }
 0x711   :  { %1842 = vrot.lane.b32.xlu0 %v1835_v13, %s2423_s23 }
 0x714   :  { %1912 = vrot.lane.b32.xlu1 %v1906_v19, %s2424_s24  ;;  %v3377_v19 = vpop.permute.xlu0 %1667 }
 0x715   :  { %v3327_v41 = vpop.permute.xlu1 %1600  ;;  %1864 = vrot.lane.b32.xlu0 %v1858_v30, %s2424_s24 }
 0x719   :  { %v3333_v40 = vpop.permute.xlu1 %1444  ;;  %1914 = vrot.lane.b32.xlu0 %v1907_v7, %s2424_s24 }
 0x71d   :  { %v3338_v43 = vpop.permute.xlu1 %1448 }
 0x71e   :  { %v1451_v8 = vsel %vm268_vm0, %v3323_v11, %v3338_v43 }
 0x71f   :  { %v1456_v44 = vadd.f32 %v1451_v8, %v1409_v9  ;;  %v3388_v9 = vpop.permute.xlu0 %1689 }
 0x721   :  { %v3340_v22 = vpop.permute.xlu1 %1492 }
 0x725   :  { %v3344_v36 = vpop.permute.xlu1 %1514 }
 0x726   :  { %v1520_v28 = vsel %vm339_vm1, %v3344_v36, %v3342_v12 }
 0x727   :  { %v1526_v13 = vadd.f32 %v1520_v28, %v1456_v44  ;;  %v1759_v44 = vmul.f32 %v3346_v27, %v3295_v39 }
 0x728   :  { %s2233_s18 = spop %2232 }
 0x729   :  { %v1260_v26 = vstv %s2233_s18  ;;  %v3348_v55 = vpop.permute.xlu1 %1518 }
 0x72a   :  { %v1261_v21 = vmul.f32 0.001953125, %v1260_v26  ;;  %v1584_v26 = vmul.f32 %v3313_v60, %v3189_v5 }
 0x72c   :  { %v1263_v49 = vadd.f32 1e-05, %v1261_v21 }
 0x72d   :  { %v3352_v15 = vpop.permute.xlu1 %1562 }
 0x72e   :  { %2357 = vrsqrt.f32 %v1263_v49 }
 0x731   :  { %v3354_v52 = vpop.permute.xlu1 %1564 }
 0x735   :  { %v3358_v37 = vpop.permute.xlu1 %1775 }
 0x738   :  { %v2358_v35 = vpop.eup %2357 }
 0x739   :  { %v1266_v53 = vmul.f32 %v2358_v35, %v1265_v61  ;;  %v3365_v34 = vpop.permute.xlu1 %1621 }
 0x73b   :  { %v1268_v57 = vmul.f32 %v1266_v53, %v3197_v10  ;;  %v1367_v59 = vmul.f32 %v1266_v53, %v3060_v18  ;;  %v1383_v31 = vmul.f32 %v1266_v53, %v3062_v24  ;;  %v1587_v10 = vadd.f32 %v1584_v26, %v1526_v13 }
 0x73c   :  { %v1626_v18 = vsel %vm268_vm0, %v3365_v34, %v3360_v50 }
 0x73d   :  { %v1270_v16 = vsub.f32 %v1269_v20, %v1268_v57  ;;  %v3375_v6 = vpop.permute.xlu1 %1665  ;;  %v1631_v20 = vadd.f32 %v1626_v18, %v1587_v10 }
 0x73f   :  { %v1368_v30 = vadd.f32 %v1367_v59, %v1270_v16  ;;  %v1384_v7 = vadd.f32 %v1383_v31, %v1270_v16 }
 0x741   :  { %v1369_v21 = vmax.f32 %v1368_v30, 0.0  ;;  %v1385_v49 = vmax.f32 %v1384_v7, 0.0  ;;  %v1670_v61 = vpop.permute.xlu1 %1669 }
 0x743   :  { %v1374_v24 = vrot.slane %v1369_v21, %v3774_v0  ;;  %v1378_v35 = vrot.slane %v1369_v21, %v3775_v62  ;;  %v1390_v8 = vrot.slane %v1385_v49, %v3774_v0  ;;  %v1394_v53 = vrot.slane %v1385_v49, %v3775_v62 }
 0x744   :  { %v1496_v21 = vsel %vm268_vm0, %v3330_v38, %v3340_v22 }
 0x745   :  { %1381 = vst [vmem:[#allocation2 + $0x68] sm:$0xf] %v1374_v24  ;;  %1382 = vst [vmem:[#allocation2 + $0x70] sm:$0xf] %v1378_v35  ;;  %v3390_v28 = vpop.permute.xlu1 %1691  ;;  %v1497_v24 = vsel %vm268_vm0, %v3340_v22, %v3336_v46  ;;  %v3438_v35 = vld [vmem:[#allocation2] sm:$0xff] }
 0x746   :  { %1397 = vst [vmem:[#allocation2 + $0x68] sm:$0xf0] %v1390_v8  ;;  %1398 = vst [vmem:[#allocation2 + $0x70] sm:$0xf0] %v1394_v53  ;;  %v1695_v57 = vsel %vm339_vm1, %v3388_v9, %v3390_v28  ;;  %v2083_v8 = vmul.f32 %v3438_v35, %v3300_v29  ;;  %v1430_v53 = vmul.f32 %v3318_v25, %v3160_v47 }
 0x747   :  { %v1701_v16 = vadd.f32 %v1695_v57, %v1631_v20  ;;  %v1569_v57 = vsel %vm339_vm1, %v3354_v52, %v3350_v32  ;;  %v1605_v32 = vmul.f32 %v3327_v41, %v3177_v17 }
 0x749   :  { %v3397_v0 = vadd.f32 %v1759_v44, %v1701_v16  ;;  %v1604_v44 = vmul.f32 %v3327_v41, %v3189_v5  ;;  %v1503_v16 = vadd.f32 %v1497_v24, %v1430_v53  ;;  %v3451_v46 = vpop.permute.xlu1 %1930 }
 0x74b   :  { %v1575_v22 = vadd.f32 %v1569_v57, %v1503_v16  ;;  %v3804_v16 = vmov 10  }
 0x74d   :  { %v3399_v62 = vld [vmem:[#allocation2 + $0x68] sm:$0xff]  ;;  %v3401_v59 = vld [vmem:[#allocation2 + $0x70] sm:$0xff] }
 0x74e   :  { %v1964_v31 = vmul.f32 %v3282_v4, %v3399_v62  ;;  %v1965_v13 = vmul.f32 %v3282_v4, %v3401_v59  ;;  %v2009_v30 = vmul.f32 %v3289_v45, %v3399_v62  ;;  %v2010_v7 = vmul.f32 %v3289_v45, %v3401_v59 }
 0x74f   :  { %v2034_v26 = vmul.f32 %v3298_v51, %v3401_v59  ;;  %v2033_v4 = vmul.f32 %v3298_v51, %v3399_v62  ;;  %v1429_v45 = vmul.f32 %v3318_v25, %v3114_v23  ;;  %v2082_v49 = vmul.f32 %v3300_v29, %v3401_v59 }
 0x750   :  { %1971 = vrot.lane.b32.xlu1 %v1964_v31, %s2423_s23  ;;  %1973 = vrot.lane.b32.xlu0 %v1965_v13, %s2423_s23  ;;  %v2081_v10 = vmul.f32 %v3300_v29, %v3399_v62  ;;  %v1568_v51 = vsel %vm339_vm1, %v3352_v15, %v3354_v52  ;;  %v3449_v31 = vpop.permute.xlu0 %1693  ;;  %v1671_v29 = vsel %vm268_vm0, %v3375_v6, %v3377_v19 }
 0x751   :  { %v1502_v18 = vadd.f32 %v1496_v21, %v1429_v45  ;;  %v1779_v45 = vmul.f32 %v3358_v37, %v3295_v39 }
 0x753   :  { %v1574_v20 = vadd.f32 %v1568_v51, %v1502_v18  ;;  %v3801_v18 = vmov 13  }
 0x754   :  { %2015 = vrot.lane.b32.xlu1 %v2009_v30, %s2423_s23  ;;  %2017 = vrot.lane.b32.xlu0 %v2010_v7, %s2423_s23  ;;  %v3800_v7 = vmov 16  }
 0x755   :  { %v1607_v13 = vadd.f32 %v1604_v44, %v1574_v20  ;;  %v3802_v20 = vmov 31   ;;  %v3803_v44 = vmov 22  }
 0x757   :  { %v1677_v52 = vadd.f32 %v1671_v29, %v1607_v13  ;;  %v3805_v29 = vmov 25   ;;  %v3807_v13 = vmov 1  }
 0x758   :  { %2041 = vrot.lane.b32.xlu1 %v2034_v26, %s2424_s24  ;;  %2039 = vrot.lane.b32.xlu0 %v2033_v4, %s2424_s24  ;;  %v1672_v4 = vsel %vm268_vm0, %v3377_v19, %v1670_v61  ;;  %v1780_v19 = vmul.f32 %v3358_v37, %v3306_v56 }
 0x75c   :  { %2089 = vrot.lane.b32.xlu0 %v2082_v49, %s2424_s24  ;;  %2087 = vrot.lane.b32.xlu1 %v2081_v10, %s2424_s24  ;;  %v1608_v49 = vadd.f32 %v1605_v32, %v1575_v22  ;;  %v3806_v22 = vmov 34  }
 0x75e   :  { %v1678_v51 = vadd.f32 %v1672_v4, %v1608_v49 }
 0x760   :  { %1459 = vperm.xlu0 %2338, %v3081_v58   ;;  %2091 = vrot.lane.b32.xlu1 %v2083_v8, %s2424_s24 }
 0x763   :  { %v1740_v30 = vpop.permute.xlu1 %1739  ;;  %v3462_v26 = vpop.permute.xlu0 %1737 }
 0x764   :  { %2341 = vset.pattern.permute.xlu0 %v3800_v7  ;;  %1529 = vperm.xlu1 %2339, %v3081_v58   ;;  %v1743_v21 = vsel %vm339_vm1, %v3462_v26, %v1740_v30 }
 0x765   :  { %1704 = vperm.xlu0 %2341, %v3081_v58   ;;  %v1749_v10 = vadd.f32 %v1743_v21, %v1677_v52 }
 0x767   :  { %v1742_v24 = vpop.permute.xlu0 %1741  ;;  %v3472_v8 = vadd.f32 %v1779_v45, %v1749_v10 }
 0x768   :  { %2340 = vset.pattern.permute.xlu1 %v3801_v18  ;;  %v1744_v53 = vsel %vm339_vm1, %v1740_v30, %v1742_v24  ;;  %v1450_v18 = vsel %vm268_vm0, %v3333_v40, %v3323_v11  ;;  %v1521_v24 = vsel %vm339_vm1, %v3342_v12, %v3348_v55  ;;  %v1585_v11 = vmul.f32 %v3313_v60, %v3177_v17 }
 0x769   :  { %2344 = vset.pattern.permute.xlu0 %v3802_v20  ;;  %1634 = vperm.xlu1 %2340, %v3081_v58   ;;  %v1750_v61 = vadd.f32 %v1744_v53, %v1678_v51  ;;  %v1428_v20 = vmul.f32 %v3438_v35, %v3318_v25  ;;  %v1625_v25 = vsel %vm268_vm0, %v3356_v3, %v3365_v34 }
 0x76a   :  { %1984 = vperm.xlu0 %2344, %v3081_v58   ;;  %v1603_v55 = vmul.f32 %v3438_v35, %v3327_v41  ;;  %v1758_v3 = vmul.f32 %v3438_v35, %v3346_v27  ;;  %v1760_v41 = vmul.f32 %v3346_v27, %v3306_v56 }
 0x76b   :  { %v3480_v57 = vadd.f32 %v1780_v19, %v1750_v61  ;;  %v1795_v32 = vpop.permute.xlu0 %1794  ;;  %v1501_v40 = vadd.f32 %v3330_v38, %v1428_v20 }
 0x76d   :  { %2342 = vset.pattern.permute.xlu1 %v3803_v44 }
 0x76e   :  { %1809 = vperm.xlu1 %2342, %v3081_v58   ;;  %2347 = vset.pattern.permute.xlu0 %v3804_v16 }
 0x76f   :  { %v1869_v30 = vpop.permute.xlu0 %1868 }
 0x772   :  { %2343 = vset.pattern.permute.xlu1 %v3805_v29 }
 0x773   :  { %1879 = vperm.xlu1 %2343, %v3081_v58   ;;  %v3496_v4 = vpop.permute.xlu0 %1969 }
 0x774   :  { %v3492_v52 = vpop.permute.xlu1 %1950 }
 0x777   :  { %2345 = vset.pattern.permute.xlu1 %v3806_v22 }
 0x778   :  { %2054 = vperm.xlu1 %2345, %v3081_v58   ;;  %v3494_v7 = vpop.permute.xlu1 %1844 }
 0x77b   :  { %v3500_v45 = vpop.permute.xlu0 %2043 }
 0x77c   :  { %2346 = vset.pattern.permute.xlu1 %v3807_v13  ;;  %v3498_v21 = vpop.permute.xlu1 %1916 }
 0x77d   :  { %1415 = vperm.xlu1 %2346, %v3081_v58   ;;  %v1408_v58 = vmul.f32 %v3438_v35, %v3310_v42 }
 0x77f   :  { %v1799_v10 = vpop.permute.xlu0 %1798  ;;  %v1455_v19 = vadd.f32 %v1450_v18, %v1408_v58 }
 0x780   :  { %v3502_v49 = vpop.permute.xlu1 %2019 }
 0x781   :  { %2348 = vset.pattern.permute.xlu1 %v2435_v63  ;;  %v1410_v63 = vmul.f32 %v3310_v42, %v3160_v47  ;;  %v1583_v42 = vmul.f32 %v3438_v35, %v3313_v60  ;;  %v1525_v29 = vadd.f32 %v3344_v36, %v1455_v19  ;;  %v1696_v36 = vsel %vm339_vm1, %v3390_v28, %v3449_v31 }
 0x782   :  { %v1778_v28 = vmul.f32 %v3438_v35, %v3358_v37 }
 0x783   :  { %v1457_v53 = vadd.f32 %v3338_v43, %v1410_v63  ;;  %v1843_v44 = vpop.permute.xlu0 %1842  ;;  %v1573_v43 = vadd.f32 %v3352_v15, %v1501_v40  ;;  %v1586_v22 = vadd.f32 %v1583_v42, %v1525_v29 }
 0x784   :  { %v1797_v51 = vpop.permute.xlu1 %1796 }
 0x785   :  { %v1527_v61 = vadd.f32 %v1521_v24, %v1457_v53  ;;  %v1630_v60 = vadd.f32 %v1625_v25, %v1586_v22  ;;  %v1606_v63 = vadd.f32 %v1603_v55, %v1573_v43  ;;  %v1800_v20 = vsel %vm268_vm0, %v1795_v32, %v1797_v51 }
 0x786   :  { %v1801_v37 = vsel %vm268_vm0, %v1797_v51, %v1799_v10  ;;  %v1953_v32 = vmul.f32 %v3438_v35, %v3492_v52  ;;  %v1933_v55 = vmul.f32 %v3438_v35, %v3451_v46 }
 0x787   :  { %v1588_v12 = vadd.f32 %v1585_v11, %v1527_v61  ;;  %v1865_v13 = vpop.permute.xlu0 %1864  ;;  %v1676_v15 = vadd.f32 %v3375_v6, %v1606_v63  ;;  %v1700_v34 = vadd.f32 %v3388_v9, %v1630_v60 }
 0x788   :  { %v1841_v16 = vpop.permute.xlu1 %1840 }
 0x789   :  { %v1632_v38 = vadd.f32 %v3360_v50, %v1588_v12  ;;  %v1748_v31 = vadd.f32 %v3462_v26, %v1676_v15  ;;  %v1761_v61 = vadd.f32 %v1758_v3, %v1700_v34  ;;  %v1935_v12 = vmul.f32 %v3451_v46, %v3401_v59 }
 0x78b   :  { %v1702_v18 = vadd.f32 %v1696_v36, %v1632_v38  ;;  %v1915_v24 = vpop.permute.xlu0 %1914  ;;  %v1781_v11 = vadd.f32 %v1778_v28, %v1748_v31  ;;  %v1805_v27 = vadd.f32 %v1800_v20, %v1761_v61  ;;  %v1806_v38 = vadd.f32 %v1801_v37, %v3397_v0 }
 0x78c   :  { %v1867_v58 = vpop.permute.xlu1 %1866  ;;  %v1919_v0 = vsel %vm339_vm1, %v1915_v24, %v3498_v21  ;;  %v1954_v31 = vmul.f32 %v3492_v52, %v3399_v62 }
 0x78d   :  { %v1763_v50 = vadd.f32 %v1760_v41, %v1702_v18  ;;  %v1871_v6 = vsel %vm339_vm1, %v1867_v58, %v1869_v30  ;;  %v1851_v9 = vadd.f32 %v1841_v16, %v1781_v11  ;;  %v1846_v30 = vsel %vm268_vm0, %v1841_v16, %v1843_v44 }
 0x78e   :  { %v1875_v22 = vadd.f32 %v1865_v13, %v1805_v27  ;;  %v1870_v36 = vsel %vm339_vm1, %v1865_v13, %v1867_v58  ;;  %v1852_v51 = vadd.f32 %v1846_v30, %v3472_v8  ;;  %v1934_v8 = vmul.f32 %v3451_v46, %v3399_v62 }
 0x78f   :  { %v1807_v19 = vadd.f32 %v1799_v10, %v1763_v50  ;;  %v1847_v10 = vsel %vm268_vm0, %v1843_v44, %v3494_v7  ;;  %v1876_v3 = vadd.f32 %v1870_v36, %v1806_v38  ;;  %v1955_v11 = vmul.f32 %v3492_v52, %v3401_v59  ;;  %v3591_v36 = vld [vmem:[#allocation2 + $0x8] sm:$0xff] }
 0x790   :  { %v1913_v53 = vpop.permute.xlu1 %1912  ;;  %v1936_v58 = vadd.f32 %v1933_v55, %v1875_v22  ;;  %v1853_v7 = vadd.f32 %v1847_v10, %v3480_v57 }
 0x791   :  { %v1877_v40 = vadd.f32 %v1871_v6, %v1807_v19  ;;  %v1923_v25 = vadd.f32 %v1913_v53, %v1851_v9  ;;  %v1918_v63 = vsel %vm339_vm1, %v1913_v53, %v1915_v24  ;;  %v1937_v21 = vadd.f32 %v1934_v8, %v1876_v3 }
 0x792   :  { %v1924_v53 = vadd.f32 %v1918_v63, %v1852_v51  ;;  %v1925_v6 = vadd.f32 %v1919_v0, %v1853_v7 }
 0x793   :  { %v1938_v60 = vadd.f32 %v1935_v12, %v1877_v40  ;;  %v1956_v34 = vadd.f32 %v1953_v32, %v1923_v25 }
 0x794   :  { %v1957_v61 = vadd.f32 %v1954_v31, %v1924_v53  ;;  %v1958_v12 = vadd.f32 %v1955_v11, %v1925_v6  ;;  %v2157_v31 = vld [vmem:[%s3697_s3] sm:$0xff] }
 0x7c2   :  { %v1972_v42 = vpop.permute.xlu1 %1971  ;;  %v1974_v29 = vpop.permute.xlu0 %1973 }
 0x7c3   :  { %v1982_v18 = vadd.f32 %v1974_v29, %v1938_v60  ;;  %v1975_v41 = vsel %vm268_vm0, %v3496_v4, %v1972_v42  ;;  %v1976_v50 = vsel %vm268_vm0, %v1972_v42, %v1974_v29 }
 0x7c4   :  { %v1980_v4 = vadd.f32 %v1975_v41, %v1936_v58  ;;  %v1981_v27 = vadd.f32 %v1976_v50, %v1937_v21 }
 0x7c6   :  { %v2016_v43 = vpop.permute.xlu1 %2015  ;;  %v2018_v26 = vpop.permute.xlu0 %2017 }
 0x7c7   :  { %v2026_v44 = vadd.f32 %v2016_v43, %v1956_v34  ;;  %v2021_v24 = vsel %vm268_vm0, %v2016_v43, %v2018_v26  ;;  %v2022_v42 = vsel %vm268_vm0, %v2018_v26, %v3502_v49  ;;  %v2362_v49 = vld [vmem:[%s3696_s2] sm:$0xff] }
 0x7c8   :  { %v2027_v29 = vadd.f32 %v2021_v24, %v1957_v61  ;;  %v2028_v30 = vadd.f32 %v2022_v42, %v1958_v12  ;;  %v2167_v42 = vld [vmem:[%s3694_s0 + $0x8] sm:$0xff] }
 0x7ca   :  { %v2042_v15 = vpop.permute.xlu1 %2041  ;;  %v2040_v16 = vpop.permute.xlu0 %2039 }
 0x7cb   :  { %v2046_v13 = vsel %vm339_vm1, %v2042_v15, %v3500_v45  ;;  %v2045_v46 = vsel %vm339_vm1, %v2040_v16, %v2042_v15  ;;  %v2050_v57 = vadd.f32 %v2040_v16, %v1980_v4 }
 0x7cc   :  { %v2052_v28 = vadd.f32 %v2046_v13, %v1982_v18  ;;  %v2051_v37 = vadd.f32 %v2045_v46, %v1981_v27  ;;  %v2166_v27 = vld [vmem:[%s3694_s0] sm:$0xff] }
 0x7ce   :  { %v2088_v20 = vpop.permute.xlu1 %2087  ;;  %2108 = vrot.lane.b32.xlu1 %v2052_v28, %s2434_s26  ;;  %v2090_v45 = vpop.permute.xlu0 %2089 }
 0x7cf   :  { %v2098_v19 = vadd.f32 %v2088_v20, %v2026_v44  ;;  %v2093_v40 = vsel %vm339_vm1, %v2088_v20, %v2090_v45 }
 0x7d0   :  { %v2099_v43 = vadd.f32 %v2093_v40, %v2027_v29 }
 0x7d1   :  { %2132 = vrot.lane.b32.xlu0 %v2098_v19, %s2433_s25 }
 0x7d2   :  { %v2092_v9 = vpop.permute.xlu1 %2091  ;;  %2104 = vrot.lane.b32.xlu1 %v2050_v57, %s2434_s26 }
 0x7d3   :  { %v2094_v32 = vsel %vm339_vm1, %v2090_v45, %v2092_v9 }
 0x7d4   :  { %v2100_v52 = vadd.f32 %v2094_v32, %v2028_v30 }
 0x7d5   :  { %2106 = vrot.lane.b32.xlu0 %v2051_v37, %s2434_s26 }
 0x7d6   :  { %2134 = vrot.lane.b32.xlu1 %v2099_v43, %s2433_s25 }
 0x7d9   :  { %2136 = vrot.lane.b32.xlu0 %v2100_v52, %s2433_s25 }
 0x7dd   :  { %1590 = vperm.xlu0 %2347, %v2362_v49  }
 0x7df   :  { %v1460_v26 = vpop.permute.xlu0 %1459 }
 0x7e0   :  { %v1462_v25 = vmul.f32 %v1460_v26, %v3114_v23  ;;  %v1463_v22 = vmul.f32 %v1460_v26, %v3160_v47 }
 0x7e1   :  { %2350 = vset.pattern.permute.xlu0 %v3793_v33 }
 0x7e2   :  { %1466 = vrot.lane.b32.xlu1 %v1462_v25, %s2423_s23 }
 0x7e3   :  { %v1530_v55 = vpop.permute.xlu1 %1529 }
 0x7e4   :  { %v1532_v60 = vmul.f32 %v3591_v36, %v1530_v55  ;;  %v1534_v38 = vmul.f32 %v3438_v35, %v1530_v55  ;;  %v1533_v63 = vmul.f32 %v1530_v55, %v3160_v47  ;;  %v1705_v10 = vpop.permute.xlu0 %1704 }
 0x7e5   :  { %v1707_v51 = vmul.f32 %v1705_v10, %v3189_v5  ;;  %v1709_v15 = vmul.f32 %v3438_v35, %v1705_v10  ;;  %v1708_v16 = vmul.f32 %v1705_v10, %v3177_v17 }
 0x7e6   :  { %1538 = vrot.lane.b32.xlu0 %v1532_v60, %s2424_s24  ;;  %1468 = vrot.lane.b32.xlu1 %v1463_v22, %s2423_s23 }
 0x7e8   :  { %v1635_v23 = vpop.permute.xlu1 %1634 }
 0x7e9   :  { %v1637_v33 = vmul.f32 %v1635_v23, %v3189_v5  ;;  %v1638_v18 = vmul.f32 %v1635_v23, %v3177_v17  ;;  %v1985_v17 = vpop.permute.xlu0 %1984  ;;  %v2364_v23 = vld [vmem:[#allocation2 + $0x10] sm:$0xff] }
 0x7ea   :  { %1542 = vrot.lane.b32.xlu0 %v1534_v38, %s2424_s24  ;;  %1540 = vrot.lane.b32.xlu1 %v1533_v63, %s2424_s24  ;;  %v1987_v0 = vmul.f32 %v1985_v17, %v3399_v62  ;;  %v1988_v53 = vmul.f32 %v1985_v17, %v3401_v59 }
 0x7ed   :  { %v1810_v47 = vpop.permute.xlu1 %1809 }
 0x7ee   :  { %1641 = vrot.lane.b32.xlu0 %v1637_v33, %s2423_s23  ;;  %1765 = vperm.xlu1 %2348, %v2362_v49   ;;  %v1812_v3 = vmul.f32 %v1810_v47, %v3295_v39  ;;  %v1813_v34 = vmul.f32 %v1810_v47, %v3306_v56 }
 0x7f2   :  { %1643 = vrot.lane.b32.xlu1 %v1638_v18, %s2423_s23  ;;  %1713 = vrot.lane.b32.xlu0 %v1707_v51, %s2424_s24  ;;  %v1880_v41 = vpop.permute.xlu1 %1879 }
 0x7f3   :  { %2349 = vset.pattern.permute.xlu1 %v2436_v14  ;;  %v1882_v13 = vmul.f32 %v1880_v41, %v3295_v39  ;;  %v1884_v58 = vmul.f32 %v3438_v35, %v1880_v41  ;;  %v1883_v14 = vmul.f32 %v1880_v41, %v3306_v56 }
 0x7f6   :  { %1715 = vrot.lane.b32.xlu1 %v1708_v16, %s2424_s24  ;;  %1717 = vrot.lane.b32.xlu0 %v1709_v15, %s2424_s24 }
 0x7f7   :  { %v2055_v28 = vpop.permute.xlu1 %2054 }
 0x7f8   :  { %v2057_v8 = vmul.f32 %v2055_v28, %v3399_v62  ;;  %v2058_v7 = vmul.f32 %v2055_v28, %v3401_v59  ;;  %v2059_v44 = vmul.f32 %v3438_v35, %v2055_v28 }
 0x7fa   :  { %1940 = vperm.xlu1 %2349, %v2362_v49   ;;  %1816 = vrot.lane.b32.xlu0 %v1812_v3, %s2423_s23 }
 0x7fc   :  { %v1416_v4 = vpop.permute.xlu1 %1415 }
 0x7fd   :  { %v1418_v22 = vmul.f32 %v3438_v35, %v1416_v4  ;;  %v1420_v33 = vmul.f32 %v2364_v23, %v1416_v4  ;;  %v1419_v15 = vmul.f32 %v3591_v36, %v1416_v4 }
 0x7fe   :  { %1818 = vrot.lane.b32.xlu1 %v1813_v34, %s2423_s23  ;;  %1888 = vrot.lane.b32.xlu0 %v1882_v13, %s2424_s24 }
 0x802   :  { %1890 = vrot.lane.b32.xlu1 %v1883_v14, %s2424_s24  ;;  %1892 = vrot.lane.b32.xlu0 %v1884_v58, %s2424_s24 }
 0x806   :  { %1993 = vrot.lane.b32.xlu0 %v1988_v53, %s2423_s23  ;;  %1991 = vrot.lane.b32.xlu1 %v1987_v0, %s2423_s23  ;;  %v2365_v0 = vld [vmem:[#allocation2 + $0x30] sm:$0xff] }
 0x80a   :  { %2065 = vrot.lane.b32.xlu0 %v2058_v7, %s2424_s24  ;;  %2063 = vrot.lane.b32.xlu1 %v2057_v8, %s2424_s24 }
 0x80e   :  { %2067 = vrot.lane.b32.xlu1 %v2059_v44, %s2424_s24  ;;  %2160 = vperm.xlu0 %2350, %v2157_v31  }
 0x840   :  { %v2109_v50 = vpop.permute.xlu1 %2108 }
 0x843   :  { %v2133_v20 = vpop.permute.xlu0 %2132 }
 0x844   :  { %v2105_v45 = vpop.permute.xlu1 %2104 }
 0x847   :  { %v2107_v6 = vpop.permute.xlu0 %2106 }
 0x848   :  { %v2110_v21 = vsel %vm930_vm2, %v2105_v45, %v2107_v6  ;;  %v2135_v24 = vpop.permute.xlu1 %2134  ;;  %v2111_v46 = vsel %vm930_vm2, %v2107_v6, %v2109_v50 }
 0x849   :  { %v2114_v19 = vsel %vm2973_vm4, %v2110_v21, 0.0  ;;  %v2138_v61 = vsel %vm959_vm5, %v2133_v20, %v2135_v24  ;;  %v2115_v54 = vsel %vm2965_vm3, %v2111_v46, 0.0 }
 0x84a   :  { %v2142_v57 = vsel %vm2981_vm6, %v2138_v61, 0.0  ;;  %2118 = vrot.lane.b32.xlu1 %v2114_v19, %s2423_s23 }
 0x84b   :  { %2146 = vrot.lane.b32.xlu0 %v2142_v57, %s2423_s23  ;;  %v2137_v11 = vpop.permute.xlu0 %2136 }
 0x84c   :  { %v2139_v40 = vsel %vm959_vm5, %v2135_v24, %v2137_v11 }
 0x84d   :  { %v2143_v1 = vsel %vm2985_vm7, %v2139_v40, 0.0 }
 0x84e   :  { %2120 = vrot.lane.b32.xlu1 %v2115_v54, %s2423_s23 }
 0x84f   :  { %2170 = vrot.lane.b32.xlu0 %v2166_v27, %s2423_s23 }
 0x852   :  { %2148 = vrot.lane.b32.xlu1 %v2143_v1, %s2423_s23 }
 0x854   :  { %v1467_v2 = vpop.permute.xlu1 %1466 }
 0x855   :  { %v1474_v38 = vadd.f32 %v1467_v2, %v1418_v22 }
 0x856   :  { %2172 = vrot.lane.b32.xlu1 %v2167_v42, %s2423_s23 }
 0x858   :  { %v1469_v12 = vpop.permute.xlu1 %1468 }
 0x859   :  { %v1470_v10 = vsel %vm268_vm0, %v1467_v2, %v1469_v12  ;;  %v1476_v16 = vadd.f32 %v1469_v12, %v1420_v33 }
 0x85a   :  { %v1475_v41 = vadd.f32 %v1470_v10, %v1419_v15 }
 0x85c   :  { %v1591_v29 = vpop.permute.xlu0 %1590  ;;  %v1541_v43 = vpop.permute.xlu1 %1540 }
 0x85d   :  { %v1593_v51 = vmul.f32 %v3438_v35, %v1591_v29  ;;  %v1595_v53 = vmul.f32 %v2365_v0, %v1591_v29  ;;  %v1594_v8 = vmul.f32 %v1591_v29, %v3189_v5 }
 0x860   :  { %v1539_v9 = vpop.permute.xlu0 %1538 }
 0x861   :  { %v1549_v18 = vadd.f32 %v1539_v9, %v1474_v38  ;;  %v1544_v3 = vsel %vm339_vm1, %v1539_v9, %v1541_v43 }
 0x862   :  { %v1550_v17 = vadd.f32 %v1544_v3, %v1475_v41 }
 0x863   :  { %v1596_v58 = vadd.f32 %v1593_v51, %v1549_v18 }
 0x864   :  { %v1543_v37 = vpop.permute.xlu0 %1542  ;;  %v1597_v4 = vadd.f32 %v1594_v8, %v1550_v17 }
 0x865   :  { %v1545_v47 = vsel %vm339_vm1, %v1541_v43, %v1543_v37 }
 0x866   :  { %v1551_v13 = vadd.f32 %v1545_v47, %v1476_v16 }
 0x868   :  { %v1642_v30 = vpop.permute.xlu0 %1641  ;;  %v1598_v36 = vadd.f32 %v1595_v53, %v1551_v13 }
 0x869   :  { %v1649_v28 = vadd.f32 %v1642_v30, %v1596_v58 }
 0x86c   :  { %v1714_v49 = vpop.permute.xlu0 %1713 }
 0x86d   :  { %v1766_v32 = vpop.permute.xlu1 %1765  ;;  %v1724_v7 = vadd.f32 %v1714_v49, %v1649_v28 }
 0x86e   :  { %v1768_v44 = vmul.f32 %v3438_v35, %v1766_v32  ;;  %v1770_v5 = vmul.f32 %v1766_v32, %v3306_v56  ;;  %v1769_v11 = vmul.f32 %v1766_v32, %v3295_v39 }
 0x870   :  { %v1718_v26 = vpop.permute.xlu0 %1717  ;;  %v1771_v19 = vadd.f32 %v1768_v44, %v1724_v7 }
 0x871   :  { %v1644_v52 = vpop.permute.xlu1 %1643 }
 0x872   :  { %v1645_v31 = vsel %vm268_vm0, %v1642_v30, %v1644_v52  ;;  %v1651_v45 = vadd.f32 %v1644_v52, %v1598_v36 }
 0x873   :  { %v1650_v24 = vadd.f32 %v1645_v31, %v1597_v4 }
 0x874   :  { %v1817_v55 = vpop.permute.xlu0 %1816 }
 0x875   :  { %v1716_v48 = vpop.permute.xlu1 %1715  ;;  %v1824_v57 = vadd.f32 %v1817_v55, %v1771_v19 }
 0x876   :  { %v1720_v50 = vsel %vm339_vm1, %v1716_v48, %v1718_v26  ;;  %v1719_v6 = vsel %vm339_vm1, %v1714_v49, %v1716_v48 }
 0x877   :  { %v1726_v61 = vadd.f32 %v1720_v50, %v1651_v45  ;;  %v1725_v46 = vadd.f32 %v1719_v6, %v1650_v24 }
 0x878   :  { %v1889_v63 = vpop.permute.xlu0 %1888 }
 0x879   :  { %v1941_v25 = vpop.permute.xlu1 %1940  ;;  %v1899_v54 = vadd.f32 %v1889_v63, %v1824_v57  ;;  %v1773_v1 = vadd.f32 %v1770_v5, %v1726_v61  ;;  %v1772_v2 = vadd.f32 %v1769_v11, %v1725_v46 }
 0x87a   :  { %v1943_v40 = vmul.f32 %v3438_v35, %v1941_v25  ;;  %v1945_v32 = vmul.f32 %v1941_v25, %v3401_v59  ;;  %v1944_v35 = vmul.f32 %v1941_v25, %v3399_v62 }
 0x87c   :  { %v1893_v14 = vpop.permute.xlu0 %1892  ;;  %v1946_v56 = vadd.f32 %v1943_v40, %v1899_v54 }
 0x87d   :  { %v1819_v60 = vpop.permute.xlu1 %1818 }
 0x87e   :  { %v1820_v42 = vsel %vm268_vm0, %v1817_v55, %v1819_v60  ;;  %v1826_v12 = vadd.f32 %v1819_v60, %v1773_v1 }
 0x87f   :  { %v1825_v43 = vadd.f32 %v1820_v42, %v1772_v2 }
 0x880   :  { %v1994_v21 = vpop.permute.xlu0 %1993 }
 0x881   :  { %v1891_v34 = vpop.permute.xlu1 %1890 }
 0x882   :  { %v1895_v9 = vsel %vm339_vm1, %v1891_v34, %v1893_v14  ;;  %v1894_v37 = vsel %vm339_vm1, %v1889_v63, %v1891_v34 }
 0x883   :  { %v1901_v30 = vadd.f32 %v1895_v9, %v1826_v12  ;;  %v1900_v49 = vadd.f32 %v1894_v37, %v1825_v43 }
 0x884   :  { %v2066_v29 = vpop.permute.xlu0 %2065 }
 0x885   :  { %v1992_v20 = vpop.permute.xlu1 %1991  ;;  %v1948_v26 = vadd.f32 %v1945_v32, %v1901_v30  ;;  %v1947_v22 = vadd.f32 %v1944_v35, %v1900_v49 }
 0x886   :  { %v1999_v48 = vadd.f32 %v1992_v20, %v1946_v56  ;;  %v1995_v23 = vsel %vm268_vm0, %v1992_v20, %v1994_v21 }
 0x887   :  { %v2001_v51 = vadd.f32 %v1994_v21, %v1948_v26  ;;  %v2000_v15 = vadd.f32 %v1995_v23, %v1947_v22 }
 0x889   :  { %v2064_v27 = vpop.permute.xlu1 %2063 }
 0x88a   :  { %v2074_v55 = vadd.f32 %v2064_v27, %v1999_v48  ;;  %v2069_v10 = vsel %vm339_vm1, %v2064_v27, %v2066_v29 }
 0x88b   :  { %v2075_v3 = vadd.f32 %v2069_v10, %v2000_v15 }
 0x88d   :  { %v2161_v52 = vpop.permute.xlu0 %2160  ;;  %v2068_v39 = vpop.permute.xlu1 %2067 }
 0x88e   :  { %v2070_v63 = vsel %vm339_vm1, %v2066_v29, %v2068_v39 }
 0x88f   :  { %v2076_v59 = vadd.f32 %v2070_v63, %v2001_v51 }
 0x8bc   :  { %v2119_v38 = vpop.permute.xlu1 %2118 }
 0x8bd   :  { %v2126_v60 = vadd.f32 %v2119_v38, %v2074_v55  ;;  %v2147_v33 = vpop.permute.xlu0 %2146 }
 0x8bf   :  { %v2154_v18 = vadd.f32 %v2147_v33, %v2126_v60 }
 0x8c0   :  { %v2121_v47 = vpop.permute.xlu1 %2120 }
 0x8c1   :  { %v2122_v16 = vsel %vm268_vm0, %v2119_v38, %v2121_v47  ;;  %v2163_v62 = vadd.f32 %v2161_v52, %v2154_v18  ;;  %v2171_v25 = vpop.permute.xlu0 %2170  ;;  %v2128_v41 = vadd.f32 %v2121_v47, %v2076_v59 }
 0x8c2   :  { %v2127_v13 = vadd.f32 %v2122_v16, %v2075_v3 }
 0x8c3   :  { %v2178_v34 = vadd.f32 %v2171_v25, %v2163_v62 }
 0x8c4   :  { %v2149_v58 = vpop.permute.xlu1 %2148 }
 0x8c5   :  { %v2181_v14 = vmax.f32 %v2178_v34, 0.0  ;;  %v2150_v17 = vsel %vm268_vm0, %v2147_v33, %v2149_v58  ;;  %v2156_v0 = vadd.f32 %v2149_v58, %v2128_v41 }
 0x8c6   :  { %v2155_v53 = vadd.f32 %v2150_v17, %v2127_v13 }
 0x8c7   :  { %2187 = vrot.lane.b32.xlu0 %v2181_v14, %s2437_s1  ;;  %v2165_v28 = vadd.f32 %v2161_v52, %v2156_v0 }
 0x8c8   :  { %v2173_v8 = vpop.permute.xlu1 %2172  ;;  %v2164_v7 = vadd.f32 %v2161_v52, %v2155_v53 }
 0x8c9   :  { %v2174_v44 = vsel %vm268_vm0, %v2171_v25, %v2173_v8  ;;  %v2180_v36 = vadd.f32 %v2173_v8, %v2165_v28 }
 0x8ca   :  { %v2179_v31 = vadd.f32 %v2174_v44, %v2164_v7 }
 0x8cb   :  { %v2183_v4 = vmax.f32 %v2180_v36, 0.0 }
 0x8cc   :  { %v2182_v50 = vmax.f32 %v2179_v31, 0.0 }
 0x8cd   :  { %2191 = vrot.lane.b32.xlu0 %v2183_v4, %s2437_s1 }
 0x8ce   :  { %2189 = vrot.lane.b32.xlu1 %v2182_v50, %s2437_s1 }
 0x939   :  { %v2188_v20 = vpop.permute.xlu0 %2187 }
 0x93f   :  { %v2192_v45 = vpop.permute.xlu0 %2191 }
 0x940   :  { %v2190_v6 = vpop.permute.xlu1 %2189 }
 0x941   :  { %v2193_v21 = vsel %vm988_vm8, %v2188_v20, %v2190_v6  ;;  %v2194_v24 = vsel %vm988_vm8, %v2190_v6, %v2192_v45 }
 0x942   :  { %2197 = vst [vmem:[%s3700_s6] sm:$0xff] %v2193_v21  ;;  %2198 = vst [vmem:[%s3700_s6 + $0x8] sm:$0xff] %v2194_v24 }
 0x943   :  { %2203 = vsyncpa [#allocation5], 1 }
 0x944   :  { %2204 = vsyncpa [#allocation7], 1 }

</bundles_post_ra>
